<compile_context>
chip_gen: v7x
topology: tpu7x:2x2x1
jax: 0.10.0
libtpu: 0.0.40
codegen_flags: <defaults>
</compile_context>

<pallas_src>
import jax
import jax.numpy as jnp
import numpy as np
from jax.experimental import pallas as pl
from jax.experimental.pallas import tpu as pltpu  # noqa: F401  (TPU backend)

# --- small, TPU-friendly shapes consistent with the module's forward ---------
BATCH = 2          # input.size(0)
SEQ = 8            # decoder_input.size(1)  (loop trip count)
INPUT_SIZE = 32    # "input_size" (word-vector length); 600 in the original
HIDDEN = 32        # "hidden_size"; 1000 in the original
DICT_SIZE = 128    # "dict_size"; 5633 in the original
OUT_LEN = 22       # hard-coded output length in the PyTorch module


# ----------------------------- Pallas kernel ---------------------------------
def decoder_kernel(x_ref, st_ref, w_ref, b_ref, out_ref):
    TB, IN = x_ref.shape                 # x is time-major: row = t*B + b
    H = st_ref.shape[1]
    B = st_ref.shape[0] // 4
    T = TB // B
    D = out_ref.shape[1]
    OUTL = out_ref.shape[0] // B
    H4 = 4 * H

    # Row offsets inside the packed weight array (wrapper layout).
    o_w1x = 0                            # (IN, 4H)  layer∘decoder1 data rows
    o_w1h = IN                           # (H , 4H)  decoder1 h rows (+W_hh1)
    o_w2hh = IN + H                      # (2H, 4H)  decoder2 [h2;h1] rows
    o_w2f = IN + 3 * H                   # (D , 4H)  emb∘decoder2 zeros rows
    o_wout = IN + 3 * H + D              # (H , D )  output head

    # Zero the fixed-length (B*22, D) output once with a dense store; the T
    # valid rows are overwritten at the end of the recurrence.
    out_ref[...] = jnp.zeros(out_ref.shape, jnp.float32)

    # Small, reused weights hoisted as values; biases pre-broadcast once so
    # the unrolled loop contains no repeated broadcast_in_dim.
    w1h = w_ref[o_w1h:o_w1h + H, :H4]
    w2hh = w_ref[o_w2hh:o_w2hh + 2 * H, :H4]
    wout = w_ref[o_wout:o_wout + H, :D]
    b1 = jnp.broadcast_to(b_ref[0:1, :H4], (B, H4))
    b2 = jnp.broadcast_to(b_ref[1:2, :H4], (B, H4))
    bout = jnp.broadcast_to(b_ref[2:3, :D], (B, D))

    # Recurrent state carried as values across the unrolled loop.
    h1 = st_ref[0 * B:1 * B, :]
    c1 = st_ref[1 * B:2 * B, :]
    h2 = st_ref[2 * B:3 * B, :]
    c2 = st_ref[3 * B:4 * B, :]

    # Input projection for all T steps at once (one MXU matmul outside the
    # recurrence); per-step slab is a contiguous 2-sublane slice.
    gx_all = jnp.dot(x_ref[...], w_ref[o_w1x:o_w1x + IN, :H4],
                     preferred_element_type=jnp.float32)        # (T*B, 4H)

    fb = jnp.zeros((B, H4), jnp.float32)       # step-0 feedback = literal zeros
    lane = jax.lax.broadcasted_iota(jnp.int32, (B, D), 1)

    def lstm_gates(g, c_prev):
        # One whole-tile sigmoid + one whole-tile tanh (EUP), slice afterwards.
        s = jax.nn.sigmoid(g)
        th = jnp.tanh(g)
        i = s[:, 0:H]
        f = s[:, H:2 * H]
        o = s[:, 3 * H:4 * H]
        gg = th[:, 2 * H:3 * H]
        c_new = f * c_prev + i * gg
        return o * jnp.tanh(c_new), c_new

    probs_rows = []
    for t in range(T):                                   # static unroll
        # decoder1:  g1 = data@W1x + h1@(W1h + Whh1) + b1'
        g1 = (gx_all[B * t:B * (t + 1), :]
              + jnp.dot(h1, w1h, preferred_element_type=jnp.float32)
              + b1)
        h1, c1 = lstm_gates(g1, c1)

        # decoder2: fused [h2;h1] matmul  +  precomposed feedback  +  bias
        h2h1 = jnp.concatenate([h2, h1], axis=1)         # (B, 2H)
        g2 = (fb
              + jnp.dot(h2h1, w2hh, preferred_element_type=jnp.float32)
              + b2)
        h2, c2 = lstm_gates(g2, c2)

        # output head + softmax over dim=0 (the batch axis, as in the module)
        logits = jnp.dot(h2, wout, preferred_element_type=jnp.float32) + bout
        m = jnp.max(logits, axis=0, keepdims=True)
        e = jnp.exp(logits - m)
        probs = e / jnp.sum(e, axis=0, keepdims=True)    # (B, D), exact divide
        probs_rows.append(probs)

        if t + 1 < T:
            # First-occurrence argmax over the dict dim -> one-hot matmul with
            # the (emb ∘ decoder2-zeros-rows) weight, read from VMEM in place
            # (not hoisted: 16 vregs of live range avoided).
            mx = jnp.max(probs, axis=1, keepdims=True)
            idx = jnp.min(jnp.where(probs >= mx, lane, D), axis=1,
                          keepdims=True)
            onehot = (lane == idx).astype(jnp.float32)   # (B, D)
            fb = jnp.dot(onehot, w_ref[o_w2f:o_w2f + D, :H4],
                         preferred_element_type=jnp.float32)

    # One dense (T, D) slab store per batch row instead of T masked partial
    # stores per step.
    for b in range(B):
        slab = jnp.concatenate([p[b:b + 1, :] for p in probs_rows], axis=0)
        out_ref[b * OUTL:b * OUTL + T, :] = slab


# --------------------- one-time folding / packing (not jitted per call) -------
def fold_params(params):
    """Algebraic weight folding + operand packing. Run once, reuse per call."""
    H, IN = params["w_layer"].shape
    D = params["w_out"].shape[0]

    wlay_t = params["w_layer"].T                       # (IN, H)
    blay = params["b_layer"][None, :]                  # (1, H)

    wih1_t = params["w_ih1"].T                         # (2H, 4H)
    w1x = wlay_t @ wih1_t[:H]                          # (IN, 4H) layer folded
    w1h = wih1_t[H:] + params["w_hh1"].T               # (H, 4H)  hh folded
    b1 = (params["b_ih1"] + params["b_hh1"])[None, :] + blay @ wih1_t[:H]

    wih2_t = params["w_ih2"].T                         # (IN+2H, 4H)
    w2f = params["emb"] @ wih2_t[:IN]                  # (D, 4H) emb∘zeros rows
    w2h2 = wih2_t[IN:IN + H] + params["w_hh2"].T       # (H, 4H)  hh folded
    w2h1 = wih2_t[IN + H:]                             # (H, 4H)
    w2hh = jnp.concatenate([w2h2, w2h1], axis=0)       # (2H, 4H) fused pair
    b2 = (params["b_ih2"] + params["b_hh2"])[None, :]

    wout = params["w_out"].T                           # (H, D)
    bout = params["b_out"][None, :]                    # (1, D)

    nw = max(4 * H, D)

    def padw(w):
        return jnp.pad(w, ((0, 0), (0, nw - w.shape[1])))

    w_packed = jnp.concatenate(
        [padw(w1x), padw(w1h), padw(w2hh), padw(w2f), padw(wout)], axis=0)
    b_packed = jnp.concatenate([padw(b1), padw(b2), padw(bout)], axis=0)
    return {"w": jnp.asarray(w_packed, jnp.float32),
            "b": jnp.asarray(b_packed, jnp.float32)}


# ------------------------------ JAX wrapper ----------------------------------
@jax.jit
def decoder_forward(folded, x, h, hh):
    """x: (B, T, INPUT); h = (h_t, c_t), hh = (h_t2, c_t2), each (B, HIDDEN)."""
    h_t, c_t = h
    h_t2, c_t2 = hh
    B, T, IN = x.shape
    H = h_t.shape[1]
    D = folded["w"].shape[0] - IN - 4 * H

    # Time-major flattened input (row = t*B + b) and packed recurrent state:
    # 4 operands total -> 4 HBM->VMEM DMAs instead of 15.
    x_tm = jnp.transpose(x, (1, 0, 2)).reshape(T * B, IN)
    state = jnp.concatenate([h_t, c_t, h_t2, c_t2], axis=0)   # (4B, H)

    out_flat = pl.pallas_call(
        decoder_kernel,
        out_shape=jax.ShapeDtypeStruct((B * OUT_LEN, D), jnp.float32),
    )(x_tm, state, folded["w"], folded["b"])

    # Kernel already produced the zero-padded fixed-length output; this
    # reshape is layout-compatible (free), no transpose/pad HLOs remain.
    return out_flat.reshape(B, OUT_LEN, D)


# ---------------------------- pure-JAX reference ------------------------------
def decoder_reference(params, x, h, hh):
    h_t, c_t = h
    h_t2, c_t2 = hh
    B, T, IN = x.shape
    D = params["w_out"].shape[0]

    def lstm_cell(xin, hp, cp, w_ih, w_hh, b_ih, b_hh):
        g = xin @ w_ih.T + b_ih + hp @ w_hh.T + b_hh
        i, f, gg, o = jnp.split(g, 4, axis=1)
        c = jax.nn.sigmoid(f) * cp + jax.nn.sigmoid(i) * jnp.tanh(gg)
        return jax.nn.sigmoid(o) * jnp.tanh(c), c

    dec_in = x @ params["w_layer"].T + params["b_layer"]
    zeros = jnp.zeros((B, IN), jnp.float32)
    out = jnp.zeros((B, OUT_LEN, D), jnp.float32)
    for t in range(T):
        data = dec_in[:, t, :]
        h_t, c_t = lstm_cell(jnp.concatenate([data, h_t], axis=1), h_t, c_t,
                             params["w_ih1"], params["w_hh1"],
                             params["b_ih1"], params["b_hh1"])
        h_t2, c_t2 = lstm_cell(jnp.concatenate([zeros, h_t2, h_t], axis=1),
                               h_t2, c_t2,
                               params["w_ih2"], params["w_hh2"],
                               params["b_ih2"], params["b_hh2"])
        probs = jax.nn.softmax(h_t2 @ params["w_out"].T + params["b_out"],
                               axis=0)
        out = out.at[:, t, :].set(probs)
        zeros = params["emb"][jnp.argmax(probs, axis=1)]
    return out


# ----------------------------------- main -------------------------------------
if __name__ == "__main__":
    key = jax.random.PRNGKey(0)
    ks = jax.random.split(key, 20)

    def rnd(k, shape, scale=0.1):
        return jax.random.normal(k, shape, dtype=jnp.float32) * scale

    params = {
        "w_layer": rnd(ks[0], (HIDDEN, INPUT_SIZE)),
        "b_layer": rnd(ks[1], (HIDDEN,)),
        "w_ih1": rnd(ks[2], (4 * HIDDEN, 2 * HIDDEN)),
        "w_hh1": rnd(ks[3], (4 * HIDDEN, HIDDEN)),
        "b_ih1": rnd(ks[4], (4 * HIDDEN,)),
        "b_hh1": rnd(ks[5], (4 * HIDDEN,)),
        "w_ih2": rnd(ks[6], (4 * HIDDEN, INPUT_SIZE + 2 * HIDDEN)),
        "w_hh2": rnd(ks[7], (4 * HIDDEN, HIDDEN)),
        "b_ih2": rnd(ks[8], (4 * HIDDEN,)),
        "b_hh2": rnd(ks[9], (4 * HIDDEN,)),
        "w_out": rnd(ks[10], (DICT_SIZE, HIDDEN)),
        "b_out": rnd(ks[11], (DICT_SIZE,)),
        "emb": rnd(ks[12], (DICT_SIZE, INPUT_SIZE), scale=0.5),
    }

    x = rnd(ks[13], (BATCH, SEQ, INPUT_SIZE), scale=1.0)
    h = (rnd(ks[14], (BATCH, HIDDEN), 0.5), rnd(ks[15], (BATCH, HIDDEN), 0.5))
    hh = (rnd(ks[16], (BATCH, HIDDEN), 0.5), rnd(ks[17], (BATCH, HIDDEN), 0.5))

    folded = fold_params(params)           # one-time, outside the per-call jit

    out = decoder_forward(folded, x, h, hh)
    out = jax.block_until_ready(out)
    assert out.shape == (BATCH, OUT_LEN, DICT_SIZE)

    ref = decoder_reference(params, x, h, hh)
    np.testing.assert_allclose(np.asarray(out), np.asarray(ref),
                               rtol=2e-4, atol=2e-4)

    print("KERNEL_OK")
</pallas_src>

<mosaic_0001>
module attributes {stable_mosaic.version = 11 : i64} {
  func.func @decoder_kernel(%arg0: memref<16x32xf32, #tpu.memory_space<vmem>>, %arg1: memref<8x32xf32, #tpu.memory_space<vmem>>, %arg2: memref<288x128xf32, #tpu.memory_space<vmem>>, %arg3: memref<3x128xf32, #tpu.memory_space<vmem>>, %arg4: memref<44x128xf32, #tpu.memory_space<vmem>>) attributes {dimension_semantics = [], scalar_prefetch = 0 : i64, scratch_operands = 0 : i64, tpu.core_type = #tpu.core_type<tc>} {
    %cst = arith.constant 0.000000e+00 : f32
    %0 = vector.broadcast %cst : f32 to vector<44x128xf32>
    %c0 = arith.constant 0 : index
    %c0_0 = arith.constant 0 : index
    %1 = vector.load %arg4[%c0, %c0_0] : memref<44x128xf32, #tpu.memory_space<vmem>>, vector<44x128xf32>
    tpu.vector_store %arg4[%c0, %c0_0], %0 {strides = array<i32>} : memref<44x128xf32, #tpu.memory_space<vmem>>, vector<44x128xf32>,
    %c32 = arith.constant 32 : index
    %c0_1 = arith.constant 0 : index
    %2 = vector.load %arg2[%c32, %c0_1] : memref<288x128xf32, #tpu.memory_space<vmem>>, vector<32x128xf32>
    %c64 = arith.constant 64 : index
    %c0_2 = arith.constant 0 : index
    %3 = vector.load %arg2[%c64, %c0_2] : memref<288x128xf32, #tpu.memory_space<vmem>>, vector<64x128xf32>
    %c256 = arith.constant 256 : index
    %c0_3 = arith.constant 0 : index
    %4 = vector.load %arg2[%c256, %c0_3] : memref<288x128xf32, #tpu.memory_space<vmem>>, vector<32x128xf32>
    %c0_4 = arith.constant 0 : index
    %c0_5 = arith.constant 0 : index
    %5 = vector.load %arg3[%c0_4, %c0_5] : memref<3x128xf32, #tpu.memory_space<vmem>>, vector<1x128xf32>
    %6 = vector.shape_cast %5 : vector<1x128xf32> to vector<1x128xf32>
    %7 = vector.broadcast %6 : vector<1x128xf32> to vector<2x128xf32>
    %c1 = arith.constant 1 : index
    %c0_6 = arith.constant 0 : index
    %8 = vector.load %arg3[%c1, %c0_6] : memref<3x128xf32, #tpu.memory_space<vmem>>, vector<1x128xf32>
    %9 = vector.shape_cast %8 : vector<1x128xf32> to vector<1x128xf32>
    %10 = vector.broadcast %9 : vector<1x128xf32> to vector<2x128xf32>
    %c2 = arith.constant 2 : index
    %c0_7 = arith.constant 0 : index
    %11 = vector.load %arg3[%c2, %c0_7] : memref<3x128xf32, #tpu.memory_space<vmem>>, vector<1x128xf32>
    %12 = vector.shape_cast %11 : vector<1x128xf32> to vector<1x128xf32>
    %13 = vector.broadcast %12 : vector<1x128xf32> to vector<2x128xf32>
    %c0_8 = arith.constant 0 : index
    %c0_9 = arith.constant 0 : index
    %14 = vector.load %arg1[%c0_8, %c0_9] : memref<8x32xf32, #tpu.memory_space<vmem>>, vector<2x32xf32>
    %c2_10 = arith.constant 2 : index
    %c0_11 = arith.constant 0 : index
    %15 = vector.load %arg1[%c2_10, %c0_11] : memref<8x32xf32, #tpu.memory_space<vmem>>, vector<2x32xf32>
    %c4 = arith.constant 4 : index
    %c0_12 = arith.constant 0 : index
    %16 = vector.load %arg1[%c4, %c0_12] : memref<8x32xf32, #tpu.memory_space<vmem>>, vector<2x32xf32>
    %c6 = arith.constant 6 : index
    %c0_13 = arith.constant 0 : index
    %17 = vector.load %arg1[%c6, %c0_13] : memref<8x32xf32, #tpu.memory_space<vmem>>, vector<2x32xf32>
    %c0_14 = arith.constant 0 : index
    %c0_15 = arith.constant 0 : index
    %18 = vector.load %arg0[%c0_14, %c0_15] : memref<16x32xf32, #tpu.memory_space<vmem>>, vector<16x32xf32>
    %c0_16 = arith.constant 0 : index
    %c0_17 = arith.constant 0 : index
    %19 = vector.load %arg2[%c0_16, %c0_17] : memref<288x128xf32, #tpu.memory_space<vmem>>, vector<32x128xf32>
    %cst_18 = arith.constant dense<0.000000e+00> : vector<16x128xf32>
    %20 = tpu.matmul %18, %19, %cst_18 {dimension_numbers = #tpu.dot_dimension_numbers<[1], [0], [0], [1], [0, 0, 1, 1], [], []>} : vector<16x32xf32>, vector<32x128xf32>, vector<16x128xf32> -> vector<16x128xf32>
    %cst_19 = arith.constant 0.000000e+00 : f32
    %21 = vector.broadcast %cst_19 : f32 to vector<2x128xf32>
    %22 = tpu.iota {dimensions = array<i32: 1>} : vector<2x128xi32>
    %23 = vector.extract_strided_slice %20 {offsets = [0, 0], sizes = [2, 128], strides = [1, 1]} : vector<16x128xf32> to vector<2x128xf32>
    %cst_20 = arith.constant dense<0.000000e+00> : vector<2x128xf32>
    %24 = tpu.matmul %14, %2, %cst_20 {dimension_numbers = #tpu.dot_dimension_numbers<[1], [0], [0], [1], [0, 0, 1, 1], [], []>} : vector<2x32xf32>, vector<32x128xf32>, vector<2x128xf32> -> vector<2x128xf32>
    %25 = arith.addf %23, %24 : vector<2x128xf32>
    %26 = arith.addf %25, %7 : vector<2x128xf32>
    %27 = arith.negf %26 : vector<2x128xf32>
    %28 = math.exp %27 : vector<2x128xf32>
    %cst_21 = arith.constant 1.000000e+00 : f32
    %29 = vector.broadcast %cst_21 : f32 to vector<2x128xf32>
    %30 = arith.addf %29, %28 : vector<2x128xf32>
    %31 = arith.divf %29, %30 : vector<2x128xf32>
    %32 = math.tanh %26 : vector<2x128xf32>
    %33 = vector.extract_strided_slice %31 {offsets = [0, 0], sizes = [2, 32], strides = [1, 1]} : vector<2x128xf32> to vector<2x32xf32>
    %34 = vector.extract_strided_slice %31 {offsets = [0, 32], sizes = [2, 32], strides = [1, 1]} : vector<2x128xf32> to vector<2x32xf32>
    %35 = vector.extract_strided_slice %31 {offsets = [0, 96], sizes = [2, 32], strides = [1, 1]} : vector<2x128xf32> to vector<2x32xf32>
    %36 = vector.extract_strided_slice %32 {offsets = [0, 64], sizes = [2, 32], strides = [1, 1]} : vector<2x128xf32> to vector<2x32xf32>
    %37 = arith.mulf %34, %15 : vector<2x32xf32>
    %38 = arith.mulf %33, %36 : vector<2x32xf32>
    %39 = arith.addf %37, %38 : vector<2x32xf32>
    %40 = math.tanh %39 : vector<2x32xf32>
    %41 = arith.mulf %35, %40 : vector<2x32xf32>
    %42 = tpu.concatenate %16, %41 in 1 : vector<2x32xf32>, vector<2x32xf32> -> vector<2x64xf32>
    %cst_22 = arith.constant dense<0.000000e+00> : vector<2x128xf32>
    %43 = tpu.matmul %42, %3, %cst_22 {dimension_numbers = #tpu.dot_dimension_numbers<[1], [0], [0], [1], [0, 0, 1, 1], [], []>} : vector<2x64xf32>, vector<64x128xf32>, vector<2x128xf32> -> vector<2x128xf32>
    %44 = arith.addf %21, %43 : vector<2x128xf32>
    %45 = arith.addf %44, %10 : vector<2x128xf32>
    %46 = arith.negf %45 : vector<2x128xf32>
    %47 = math.exp %46 : vector<2x128xf32>
    %cst_23 = arith.constant 1.000000e+00 : f32
    %48 = vector.broadcast %cst_23 : f32 to vector<2x128xf32>
    %49 = arith.addf %48, %47 : vector<2x128xf32>
    %50 = arith.divf %48, %49 : vector<2x128xf32>
    %51 = math.tanh %45 : vector<2x128xf32>
    %52 = vector.extract_strided_slice %50 {offsets = [0, 0], sizes = [2, 32], strides = [1, 1]} : vector<2x128xf32> to vector<2x32xf32>
    %53 = vector.extract_strided_slice %50 {offsets = [0, 32], sizes = [2, 32], strides = [1, 1]} : vector<2x128xf32> to vector<2x32xf32>
    %54 = vector.extract_strided_slice %50 {offsets = [0, 96], sizes = [2, 32], strides = [1, 1]} : vector<2x128xf32> to vector<2x32xf32>
    %55 = vector.extract_strided_slice %51 {offsets = [0, 64], sizes = [2, 32], strides = [1, 1]} : vector<2x128xf32> to vector<2x32xf32>
    %56 = arith.mulf %53, %17 : vector<2x32xf32>
    %57 = arith.mulf %52, %55 : vector<2x32xf32>
    %58 = arith.addf %56, %57 : vector<2x32xf32>
    %59 = math.tanh %58 : vector<2x32xf32>
    %60 = arith.mulf %54, %59 : vector<2x32xf32>
    %cst_24 = arith.constant dense<0.000000e+00> : vector<2x128xf32>
    %61 = tpu.matmul %60, %4, %cst_24 {dimension_numbers = #tpu.dot_dimension_numbers<[1], [0], [0], [1], [0, 0, 1, 1], [], []>} : vector<2x32xf32>, vector<32x128xf32>, vector<2x128xf32> -> vector<2x128xf32>
    %62 = arith.addf %61, %13 : vector<2x128xf32>
    %cst_25 = arith.constant dense<0xFF800000> : vector<128xf32>
    %63 = vector.multi_reduction <maximumf>, %62, %cst_25 [0] : vector<2x128xf32> to vector<128xf32>
    %64 = vector.shape_cast %63 : vector<128xf32> to vector<1x128xf32>
    %65 = vector.broadcast %64 : vector<1x128xf32> to vector<2x128xf32>
    %66 = arith.subf %62, %65 : vector<2x128xf32>
    %67 = math.exp %66 : vector<2x128xf32>
    %cst_26 = arith.constant dense<0.000000e+00> : vector<128xf32>
    %68 = vector.multi_reduction <add>, %67, %cst_26 [0] : vector<2x128xf32> to vector<128xf32>
    %69 = vector.shape_cast %68 : vector<128xf32> to vector<1x128xf32>
    %70 = vector.broadcast %69 : vector<1x128xf32> to vector<2x128xf32>
    %71 = arith.divf %67, %70 : vector<2x128xf32>
    %cst_27 = arith.constant dense<0xFF800000> : vector<2xf32>
    %72 = vector.multi_reduction <maximumf>, %71, %cst_27 [1] : vector<2x128xf32> to vector<2xf32>
    %73 = vector.shape_cast %72 : vector<2xf32> to vector<2x1xf32>
    %74 = vector.broadcast %73 : vector<2x1xf32> to vector<2x128xf32>
    %75 = arith.cmpf oge, %71, %74 : vector<2x128xf32>
    %c128_i32 = arith.constant 128 : i32
    %76 = vector.broadcast %c128_i32 : i32 to vector<2x128xi32>
    %77 = arith.select %75, %22, %76 : vector<2x128xi1>, vector<2x128xi32>
    %cst_28 = arith.constant dense<2147483647> : vector<2xi32>
    %78 = vector.multi_reduction <minsi>, %77, %cst_28 [1] : vector<2x128xi32> to vector<2xi32>
    %79 = vector.shape_cast %78 : vector<2xi32> to vector<2x1xi32>
    %80 = vector.broadcast %79 : vector<2x1xi32> to vector<2x128xi32>
    %81 = arith.cmpi eq, %22, %80 : vector<2x128xi32>
    %82 = arith.extui %81 : vector<2x128xi1> to vector<2x128xi32>
    %83 = arith.sitofp %82 : vector<2x128xi32> to vector<2x128xf32>
    %c128 = arith.constant 128 : index
    %c0_29 = arith.constant 0 : index
    %84 = vector.load %arg2[%c128, %c0_29] : memref<288x128xf32, #tpu.memory_space<vmem>>, vector<128x128xf32>
    %cst_30 = arith.constant dense<0.000000e+00> : vector<2x128xf32>
    %85 = tpu.matmul %83, %84, %cst_30 {dimension_numbers = #tpu.dot_dimension_numbers<[1], [0], [0], [1], [0, 0, 1, 1], [], []>} : vector<2x128xf32>, vector<128x128xf32>, vector<2x128xf32> -> vector<2x128xf32>
    %86 = vector.extract_strided_slice %20 {offsets = [2, 0], sizes = [2, 128], strides = [1, 1]} : vector<16x128xf32> to vector<2x128xf32>
    %cst_31 = arith.constant dense<0.000000e+00> : vector<2x128xf32>
    %87 = tpu.matmul %41, %2, %cst_31 {dimension_numbers = #tpu.dot_dimension_numbers<[1], [0], [0], [1], [0, 0, 1, 1], [], []>} : vector<2x32xf32>, vector<32x128xf32>, vector<2x128xf32> -> vector<2x128xf32>
    %88 = arith.addf %86, %87 : vector<2x128xf32>
    %89 = arith.addf %88, %7 : vector<2x128xf32>
    %90 = arith.negf %89 : vector<2x128xf32>
    %91 = math.exp %90 : vector<2x128xf32>
    %cst_32 = arith.constant 1.000000e+00 : f32
    %92 = vector.broadcast %cst_32 : f32 to vector<2x128xf32>
    %93 = arith.addf %92, %91 : vector<2x128xf32>
    %94 = arith.divf %92, %93 : vector<2x128xf32>
    %95 = math.tanh %89 : vector<2x128xf32>
    %96 = vector.extract_strided_slice %94 {offsets = [0, 0], sizes = [2, 32], strides = [1, 1]} : vector<2x128xf32> to vector<2x32xf32>
    %97 = vector.extract_strided_slice %94 {offsets = [0, 32], sizes = [2, 32], strides = [1, 1]} : vector<2x128xf32> to vector<2x32xf32>
    %98 = vector.extract_strided_slice %94 {offsets = [0, 96], sizes = [2, 32], strides = [1, 1]} : vector<2x128xf32> to vector<2x32xf32>
    %99 = vector.extract_strided_slice %95 {offsets = [0, 64], sizes = [2, 32], strides = [1, 1]} : vector<2x128xf32> to vector<2x32xf32>
    %100 = arith.mulf %97, %39 : vector<2x32xf32>
    %101 = arith.mulf %96, %99 : vector<2x32xf32>
    %102 = arith.addf %100, %101 : vector<2x32xf32>
    %103 = math.tanh %102 : vector<2x32xf32>
    %104 = arith.mulf %98, %103 : vector<2x32xf32>
    %105 = tpu.concatenate %60, %104 in 1 : vector<2x32xf32>, vector<2x32xf32> -> vector<2x64xf32>
    %cst_33 = arith.constant dense<0.000000e+00> : vector<2x128xf32>
    %106 = tpu.matmul %105, %3, %cst_33 {dimension_numbers = #tpu.dot_dimension_numbers<[1], [0], [0], [1], [0, 0, 1, 1], [], []>} : vector<2x64xf32>, vector<64x128xf32>, vector<2x128xf32> -> vector<2x128xf32>
    %107 = arith.addf %85, %106 : vector<2x128xf32>
    %108 = arith.addf %107, %10 : vector<2x128xf32>
    %109 = arith.negf %108 : vector<2x128xf32>
    %110 = math.exp %109 : vector<2x128xf32>
    %cst_34 = arith.constant 1.000000e+00 : f32
    %111 = vector.broadcast %cst_34 : f32 to vector<2x128xf32>
    %112 = arith.addf %111, %110 : vector<2x128xf32>
    %113 = arith.divf %111, %112 : vector<2x128xf32>
    %114 = math.tanh %108 : vector<2x128xf32>
    %115 = vector.extract_strided_slice %113 {offsets = [0, 0], sizes = [2, 32], strides = [1, 1]} : vector<2x128xf32> to vector<2x32xf32>
    %116 = vector.extract_strided_slice %113 {offsets = [0, 32], sizes = [2, 32], strides = [1, 1]} : vector<2x128xf32> to vector<2x32xf32>
    %117 = vector.extract_strided_slice %113 {offsets = [0, 96], sizes = [2, 32], strides = [1, 1]} : vector<2x128xf32> to vector<2x32xf32>
    %118 = vector.extract_strided_slice %114 {offsets = [0, 64], sizes = [2, 32], strides = [1, 1]} : vector<2x128xf32> to vector<2x32xf32>
    %119 = arith.mulf %116, %58 : vector<2x32xf32>
    %120 = arith.mulf %115, %118 : vector<2x32xf32>
    %121 = arith.addf %119, %120 : vector<2x32xf32>
    %122 = math.tanh %121 : vector<2x32xf32>
    %123 = arith.mulf %117, %122 : vector<2x32xf32>
    %cst_35 = arith.constant dense<0.000000e+00> : vector<2x128xf32>
    %124 = tpu.matmul %123, %4, %cst_35 {dimension_numbers = #tpu.dot_dimension_numbers<[1], [0], [0], [1], [0, 0, 1, 1], [], []>} : vector<2x32xf32>, vector<32x128xf32>, vector<2x128xf32> -> vector<2x128xf32>
    %125 = arith.addf %124, %13 : vector<2x128xf32>
    %cst_36 = arith.constant dense<0xFF800000> : vector<128xf32>
    %126 = vector.multi_reduction <maximumf>, %125, %cst_36 [0] : vector<2x128xf32> to vector<128xf32>
    %127 = vector.shape_cast %126 : vector<128xf32> to vector<1x128xf32>
    %128 = vector.broadcast %127 : vector<1x128xf32> to vector<2x128xf32>
    %129 = arith.subf %125, %128 : vector<2x128xf32>
    %130 = math.exp %129 : vector<2x128xf32>
    %cst_37 = arith.constant dense<0.000000e+00> : vector<128xf32>
    %131 = vector.multi_reduction <add>, %130, %cst_37 [0] : vector<2x128xf32> to vector<128xf32>
    %132 = vector.shape_cast %131 : vector<128xf32> to vector<1x128xf32>
    %133 = vector.broadcast %132 : vector<1x128xf32> to vector<2x128xf32>
    %134 = arith.divf %130, %133 : vector<2x128xf32>
    %cst_38 = arith.constant dense<0xFF800000> : vector<2xf32>
    %135 = vector.multi_reduction <maximumf>, %134, %cst_38 [1] : vector<2x128xf32> to vector<2xf32>
    %136 = vector.shape_cast %135 : vector<2xf32> to vector<2x1xf32>
    %137 = vector.broadcast %136 : vector<2x1xf32> to vector<2x128xf32>
    %138 = arith.cmpf oge, %134, %137 : vector<2x128xf32>
    %c128_i32_39 = arith.constant 128 : i32
    %139 = vector.broadcast %c128_i32_39 : i32 to vector<2x128xi32>
    %140 = arith.select %138, %22, %139 : vector<2x128xi1>, vector<2x128xi32>
    %cst_40 = arith.constant dense<2147483647> : vector<2xi32>
    %141 = vector.multi_reduction <minsi>, %140, %cst_40 [1] : vector<2x128xi32> to vector<2xi32>
    %142 = vector.shape_cast %141 : vector<2xi32> to vector<2x1xi32>
    %143 = vector.broadcast %142 : vector<2x1xi32> to vector<2x128xi32>
    %144 = arith.cmpi eq, %22, %143 : vector<2x128xi32>
    %145 = arith.extui %144 : vector<2x128xi1> to vector<2x128xi32>
    %146 = arith.sitofp %145 : vector<2x128xi32> to vector<2x128xf32>
    %c128_41 = arith.constant 128 : index
    %c0_42 = arith.constant 0 : index
    %147 = vector.load %arg2[%c128_41, %c0_42] : memref<288x128xf32, #tpu.memory_space<vmem>>, vector<128x128xf32>
    %cst_43 = arith.constant dense<0.000000e+00> : vector<2x128xf32>
    %148 = tpu.matmul %146, %147, %cst_43 {dimension_numbers = #tpu.dot_dimension_numbers<[1], [0], [0], [1], [0, 0, 1, 1], [], []>} : vector<2x128xf32>, vector<128x128xf32>, vector<2x128xf32> -> vector<2x128xf32>
    %149 = vector.extract_strided_slice %20 {offsets = [4, 0], sizes = [2, 128], strides = [1, 1]} : vector<16x128xf32> to vector<2x128xf32>
    %cst_44 = arith.constant dense<0.000000e+00> : vector<2x128xf32>
    %150 = tpu.matmul %104, %2, %cst_44 {dimension_numbers = #tpu.dot_dimension_numbers<[1], [0], [0], [1], [0, 0, 1, 1], [], []>} : vector<2x32xf32>, vector<32x128xf32>, vector<2x128xf32> -> vector<2x128xf32>
    %151 = arith.addf %149, %150 : vector<2x128xf32>
    %152 = arith.addf %151, %7 : vector<2x128xf32>
    %153 = arith.negf %152 : vector<2x128xf32>
    %154 = math.exp %153 : vector<2x128xf32>
    %cst_45 = arith.constant 1.000000e+00 : f32
    %155 = vector.broadcast %cst_45 : f32 to vector<2x128xf32>
    %156 = arith.addf %155, %154 : vector<2x128xf32>
    %157 = arith.divf %155, %156 : vector<2x128xf32>
    %158 = math.tanh %152 : vector<2x128xf32>
    %159 = vector.extract_strided_slice %157 {offsets = [0, 0], sizes = [2, 32], strides = [1, 1]} : vector<2x128xf32> to vector<2x32xf32>
    %160 = vector.extract_strided_slice %157 {offsets = [0, 32], sizes = [2, 32], strides = [1, 1]} : vector<2x128xf32> to vector<2x32xf32>
    %161 = vector.extract_strided_slice %157 {offsets = [0, 96], sizes = [2, 32], strides = [1, 1]} : vector<2x128xf32> to vector<2x32xf32>
    %162 = vector.extract_strided_slice %158 {offsets = [0, 64], sizes = [2, 32], strides = [1, 1]} : vector<2x128xf32> to vector<2x32xf32>
    %163 = arith.mulf %160, %102 : vector<2x32xf32>
    %164 = arith.mulf %159, %162 : vector<2x32xf32>
    %165 = arith.addf %163, %164 : vector<2x32xf32>
    %166 = math.tanh %165 : vector<2x32xf32>
    %167 = arith.mulf %161, %166 : vector<2x32xf32>
    %168 = tpu.concatenate %123, %167 in 1 : vector<2x32xf32>, vector<2x32xf32> -> vector<2x64xf32>
    %cst_46 = arith.constant dense<0.000000e+00> : vector<2x128xf32>
    %169 = tpu.matmul %168, %3, %cst_46 {dimension_numbers = #tpu.dot_dimension_numbers<[1], [0], [0], [1], [0, 0, 1, 1], [], []>} : vector<2x64xf32>, vector<64x128xf32>, vector<2x128xf32> -> vector<2x128xf32>
    %170 = arith.addf %148, %169 : vector<2x128xf32>
    %171 = arith.addf %170, %10 : vector<2x128xf32>
    %172 = arith.negf %171 : vector<2x128xf32>
    %173 = math.exp %172 : vector<2x128xf32>
    %cst_47 = arith.constant 1.000000e+00 : f32
    %174 = vector.broadcast %cst_47 : f32 to vector<2x128xf32>
    %175 = arith.addf %174, %173 : vector<2x128xf32>
    %176 = arith.divf %174, %175 : vector<2x128xf32>
    %177 = math.tanh %171 : vector<2x128xf32>
    %178 = vector.extract_strided_slice %176 {offsets = [0, 0], sizes = [2, 32], strides = [1, 1]} : vector<2x128xf32> to vector<2x32xf32>
    %179 = vector.extract_strided_slice %176 {offsets = [0, 32], sizes = [2, 32], strides = [1, 1]} : vector<2x128xf32> to vector<2x32xf32>
    %180 = vector.extract_strided_slice %176 {offsets = [0, 96], sizes = [2, 32], strides = [1, 1]} : vector<2x128xf32> to vector<2x32xf32>
    %181 = vector.extract_strided_slice %177 {offsets = [0, 64], sizes = [2, 32], strides = [1, 1]} : vector<2x128xf32> to vector<2x32xf32>
    %182 = arith.mulf %179, %121 : vector<2x32xf32>
    %183 = arith.mulf %178, %181 : vector<2x32xf32>
    %184 = arith.addf %182, %183 : vector<2x32xf32>
    %185 = math.tanh %184 : vector<2x32xf32>
    %186 = arith.mulf %180, %185 : vector<2x32xf32>
    %cst_48 = arith.constant dense<0.000000e+00> : vector<2x128xf32>
    %187 = tpu.matmul %186, %4, %cst_48 {dimension_numbers = #tpu.dot_dimension_numbers<[1], [0], [0], [1], [0, 0, 1, 1], [], []>} : vector<2x32xf32>, vector<32x128xf32>, vector<2x128xf32> -> vector<2x128xf32>
    %188 = arith.addf %187, %13 : vector<2x128xf32>
    %cst_49 = arith.constant dense<0xFF800000> : vector<128xf32>
    %189 = vector.multi_reduction <maximumf>, %188, %cst_49 [0] : vector<2x128xf32> to vector<128xf32>
    %190 = vector.shape_cast %189 : vector<128xf32> to vector<1x128xf32>
    %191 = vector.broadcast %190 : vector<1x128xf32> to vector<2x128xf32>
    %192 = arith.subf %188, %191 : vector<2x128xf32>
    %193 = math.exp %192 : vector<2x128xf32>
    %cst_50 = arith.constant dense<0.000000e+00> : vector<128xf32>
    %194 = vector.multi_reduction <add>, %193, %cst_50 [0] : vector<2x128xf32> to vector<128xf32>
    %195 = vector.shape_cast %194 : vector<128xf32> to vector<1x128xf32>
    %196 = vector.broadcast %195 : vector<1x128xf32> to vector<2x128xf32>
    %197 = arith.divf %193, %196 : vector<2x128xf32>
    %cst_51 = arith.constant dense<0xFF800000> : vector<2xf32>
    %198 = vector.multi_reduction <maximumf>, %197, %cst_51 [1] : vector<2x128xf32> to vector<2xf32>
    %199 = vector.shape_cast %198 : vector<2xf32> to vector<2x1xf32>
    %200 = vector.broadcast %199 : vector<2x1xf32> to vector<2x128xf32>
    %201 = arith.cmpf oge, %197, %200 : vector<2x128xf32>
    %c128_i32_52 = arith.constant 128 : i32
    %202 = vector.broadcast %c128_i32_52 : i32 to vector<2x128xi32>
    %203 = arith.select %201, %22, %202 : vector<2x128xi1>, vector<2x128xi32>
    %cst_53 = arith.constant dense<2147483647> : vector<2xi32>
    %204 = vector.multi_reduction <minsi>, %203, %cst_53 [1] : vector<2x128xi32> to vector<2xi32>
    %205 = vector.shape_cast %204 : vector<2xi32> to vector<2x1xi32>
    %206 = vector.broadcast %205 : vector<2x1xi32> to vector<2x128xi32>
    %207 = arith.cmpi eq, %22, %206 : vector<2x128xi32>
    %208 = arith.extui %207 : vector<2x128xi1> to vector<2x128xi32>
    %209 = arith.sitofp %208 : vector<2x128xi32> to vector<2x128xf32>
    %c128_54 = arith.constant 128 : index
    %c0_55 = arith.constant 0 : index
    %210 = vector.load %arg2[%c128_54, %c0_55] : memref<288x128xf32, #tpu.memory_space<vmem>>, vector<128x128xf32>
    %cst_56 = arith.constant dense<0.000000e+00> : vector<2x128xf32>
    %211 = tpu.matmul %209, %210, %cst_56 {dimension_numbers = #tpu.dot_dimension_numbers<[1], [0], [0], [1], [0, 0, 1, 1], [], []>} : vector<2x128xf32>, vector<128x128xf32>, vector<2x128xf32> -> vector<2x128xf32>
    %212 = vector.extract_strided_slice %20 {offsets = [6, 0], sizes = [2, 128], strides = [1, 1]} : vector<16x128xf32> to vector<2x128xf32>
    %cst_57 = arith.constant dense<0.000000e+00> : vector<2x128xf32>
    %213 = tpu.matmul %167, %2, %cst_57 {dimension_numbers = #tpu.dot_dimension_numbers<[1], [0], [0], [1], [0, 0, 1, 1], [], []>} : vector<2x32xf32>, vector<32x128xf32>, vector<2x128xf32> -> vector<2x128xf32>
    %214 = arith.addf %212, %213 : vector<2x128xf32>
    %215 = arith.addf %214, %7 : vector<2x128xf32>
    %216 = arith.negf %215 : vector<2x128xf32>
    %217 = math.exp %216 : vector<2x128xf32>
    %cst_58 = arith.constant 1.000000e+00 : f32
    %218 = vector.broadcast %cst_58 : f32 to vector<2x128xf32>
    %219 = arith.addf %218, %217 : vector<2x128xf32>
    %220 = arith.divf %218, %219 : vector<2x128xf32>
    %221 = math.tanh %215 : vector<2x128xf32>
    %222 = vector.extract_strided_slice %220 {offsets = [0, 0], sizes = [2, 32], strides = [1, 1]} : vector<2x128xf32> to vector<2x32xf32>
    %223 = vector.extract_strided_slice %220 {offsets = [0, 32], sizes = [2, 32], strides = [1, 1]} : vector<2x128xf32> to vector<2x32xf32>
    %224 = vector.extract_strided_slice %220 {offsets = [0, 96], sizes = [2, 32], strides = [1, 1]} : vector<2x128xf32> to vector<2x32xf32>
    %225 = vector.extract_strided_slice %221 {offsets = [0, 64], sizes = [2, 32], strides = [1, 1]} : vector<2x128xf32> to vector<2x32xf32>
    %226 = arith.mulf %223, %165 : vector<2x32xf32>
    %227 = arith.mulf %222, %225 : vector<2x32xf32>
    %228 = arith.addf %226, %227 : vector<2x32xf32>
    %229 = math.tanh %228 : vector<2x32xf32>
    %230 = arith.mulf %224, %229 : vector<2x32xf32>
    %231 = tpu.concatenate %186, %230 in 1 : vector<2x32xf32>, vector<2x32xf32> -> vector<2x64xf32>
    %cst_59 = arith.constant dense<0.000000e+00> : vector<2x128xf32>
    %232 = tpu.matmul %231, %3, %cst_59 {dimension_numbers = #tpu.dot_dimension_numbers<[1], [0], [0], [1], [0, 0, 1, 1], [], []>} : vector<2x64xf32>, vector<64x128xf32>, vector<2x128xf32> -> vector<2x128xf32>
    %233 = arith.addf %211, %232 : vector<2x128xf32>
    %234 = arith.addf %233, %10 : vector<2x128xf32>
    %235 = arith.negf %234 : vector<2x128xf32>
    %236 = math.exp %235 : vector<2x128xf32>
    %cst_60 = arith.constant 1.000000e+00 : f32
    %237 = vector.broadcast %cst_60 : f32 to vector<2x128xf32>
    %238 = arith.addf %237, %236 : vector<2x128xf32>
    %239 = arith.divf %237, %238 : vector<2x128xf32>
    %240 = math.tanh %234 : vector<2x128xf32>
    %241 = vector.extract_strided_slice %239 {offsets = [0, 0], sizes = [2, 32], strides = [1, 1]} : vector<2x128xf32> to vector<2x32xf32>
    %242 = vector.extract_strided_slice %239 {offsets = [0, 32], sizes = [2, 32], strides = [1, 1]} : vector<2x128xf32> to vector<2x32xf32>
    %243 = vector.extract_strided_slice %239 {offsets = [0, 96], sizes = [2, 32], strides = [1, 1]} : vector<2x128xf32> to vector<2x32xf32>
    %244 = vector.extract_strided_slice %240 {offsets = [0, 64], sizes = [2, 32], strides = [1, 1]} : vector<2x128xf32> to vector<2x32xf32>
    %245 = arith.mulf %242, %184 : vector<2x32xf32>
    %246 = arith.mulf %241, %244 : vector<2x32xf32>
    %247 = arith.addf %245, %246 : vector<2x32xf32>
    %248 = math.tanh %247 : vector<2x32xf32>
    %249 = arith.mulf %243, %248 : vector<2x32xf32>
    %cst_61 = arith.constant dense<0.000000e+00> : vector<2x128xf32>
    %250 = tpu.matmul %249, %4, %cst_61 {dimension_numbers = #tpu.dot_dimension_numbers<[1], [0], [0], [1], [0, 0, 1, 1], [], []>} : vector<2x32xf32>, vector<32x128xf32>, vector<2x128xf32> -> vector<2x128xf32>
    %251 = arith.addf %250, %13 : vector<2x128xf32>
    %cst_62 = arith.constant dense<0xFF800000> : vector<128xf32>
    %252 = vector.multi_reduction <maximumf>, %251, %cst_62 [0] : vector<2x128xf32> to vector<128xf32>
    %253 = vector.shape_cast %252 : vector<128xf32> to vector<1x128xf32>
    %254 = vector.broadcast %253 : vector<1x128xf32> to vector<2x128xf32>
    %255 = arith.subf %251, %254 : vector<2x128xf32>
    %256 = math.exp %255 : vector<2x128xf32>
    %cst_63 = arith.constant dense<0.000000e+00> : vector<128xf32>
    %257 = vector.multi_reduction <add>, %256, %cst_63 [0] : vector<2x128xf32> to vector<128xf32>
    %258 = vector.shape_cast %257 : vector<128xf32> to vector<1x128xf32>
    %259 = vector.broadcast %258 : vector<1x128xf32> to vector<2x128xf32>
    %260 = arith.divf %256, %259 : vector<2x128xf32>
    %cst_64 = arith.constant dense<0xFF800000> : vector<2xf32>
    %261 = vector.multi_reduction <maximumf>, %260, %cst_64 [1] : vector<2x128xf32> to vector<2xf32>
    %262 = vector.shape_cast %261 : vector<2xf32> to vector<2x1xf32>
    %263 = vector.broadcast %262 : vector<2x1xf32> to vector<2x128xf32>
    %264 = arith.cmpf oge, %260, %263 : vector<2x128xf32>
    %c128_i32_65 = arith.constant 128 : i32
    %265 = vector.broadcast %c128_i32_65 : i32 to vector<2x128xi32>
    %266 = arith.select %264, %22, %265 : vector<2x128xi1>, vector<2x128xi32>
    %cst_66 = arith.constant dense<2147483647> : vector<2xi32>
    %267 = vector.multi_reduction <minsi>, %266, %cst_66 [1] : vector<2x128xi32> to vector<2xi32>
    %268 = vector.shape_cast %267 : vector<2xi32> to vector<2x1xi32>
    %269 = vector.broadcast %268 : vector<2x1xi32> to vector<2x128xi32>
    %270 = arith.cmpi eq, %22, %269 : vector<2x128xi32>
    %271 = arith.extui %270 : vector<2x128xi1> to vector<2x128xi32>
    %272 = arith.sitofp %271 : vector<2x128xi32> to vector<2x128xf32>
    %c128_67 = arith.constant 128 : index
    %c0_68 = arith.constant 0 : index
    %273 = vector.load %arg2[%c128_67, %c0_68] : memref<288x128xf32, #tpu.memory_space<vmem>>, vector<128x128xf32>
    %cst_69 = arith.constant dense<0.000000e+00> : vector<2x128xf32>
    %274 = tpu.matmul %272, %273, %cst_69 {dimension_numbers = #tpu.dot_dimension_numbers<[1], [0], [0], [1], [0, 0, 1, 1], [], []>} : vector<2x128xf32>, vector<128x128xf32>, vector<2x128xf32> -> vector<2x128xf32>
    %275 = vector.extract_strided_slice %20 {offsets = [8, 0], sizes = [2, 128], strides = [1, 1]} : vector<16x128xf32> to vector<2x128xf32>
    %cst_70 = arith.constant dense<0.000000e+00> : vector<2x128xf32>
    %276 = tpu.matmul %230, %2, %cst_70 {dimension_numbers = #tpu.dot_dimension_numbers<[1], [0], [0], [1], [0, 0, 1, 1], [], []>} : vector<2x32xf32>, vector<32x128xf32>, vector<2x128xf32> -> vector<2x128xf32>
    %277 = arith.addf %275, %276 : vector<2x128xf32>
    %278 = arith.addf %277, %7 : vector<2x128xf32>
    %279 = arith.negf %278 : vector<2x128xf32>
    %280 = math.exp %279 : vector<2x128xf32>
    %cst_71 = arith.constant 1.000000e+00 : f32
    %281 = vector.broadcast %cst_71 : f32 to vector<2x128xf32>
    %282 = arith.addf %281, %280 : vector<2x128xf32>
    %283 = arith.divf %281, %282 : vector<2x128xf32>
    %284 = math.tanh %278 : vector<2x128xf32>
    %285 = vector.extract_strided_slice %283 {offsets = [0, 0], sizes = [2, 32], strides = [1, 1]} : vector<2x128xf32> to vector<2x32xf32>
    %286 = vector.extract_strided_slice %283 {offsets = [0, 32], sizes = [2, 32], strides = [1, 1]} : vector<2x128xf32> to vector<2x32xf32>
    %287 = vector.extract_strided_slice %283 {offsets = [0, 96], sizes = [2, 32], strides = [1, 1]} : vector<2x128xf32> to vector<2x32xf32>
    %288 = vector.extract_strided_slice %284 {offsets = [0, 64], sizes = [2, 32], strides = [1, 1]} : vector<2x128xf32> to vector<2x32xf32>
    %289 = arith.mulf %286, %228 : vector<2x32xf32>
    %290 = arith.mulf %285, %288 : vector<2x32xf32>
    %291 = arith.addf %289, %290 : vector<2x32xf32>
    %292 = math.tanh %291 : vector<2x32xf32>
    %293 = arith.mulf %287, %292 : vector<2x32xf32>
    %294 = tpu.concatenate %249, %293 in 1 : vector<2x32xf32>, vector<2x32xf32> -> vector<2x64xf32>
    %cst_72 = arith.constant dense<0.000000e+00> : vector<2x128xf32>
    %295 = tpu.matmul %294, %3, %cst_72 {dimension_numbers = #tpu.dot_dimension_numbers<[1], [0], [0], [1], [0, 0, 1, 1], [], []>} : vector<2x64xf32>, vector<64x128xf32>, vector<2x128xf32> -> vector<2x128xf32>
    %296 = arith.addf %274, %295 : vector<2x128xf32>
    %297 = arith.addf %296, %10 : vector<2x128xf32>
    %298 = arith.negf %297 : vector<2x128xf32>
    %299 = math.exp %298 : vector<2x128xf32>
    %cst_73 = arith.constant 1.000000e+00 : f32
    %300 = vector.broadcast %cst_73 : f32 to vector<2x128xf32>
    %301 = arith.addf %300, %299 : vector<2x128xf32>
    %302 = arith.divf %300, %301 : vector<2x128xf32>
    %303 = math.tanh %297 : vector<2x128xf32>
    %304 = vector.extract_strided_slice %302 {offsets = [0, 0], sizes = [2, 32], strides = [1, 1]} : vector<2x128xf32> to vector<2x32xf32>
    %305 = vector.extract_strided_slice %302 {offsets = [0, 32], sizes = [2, 32], strides = [1, 1]} : vector<2x128xf32> to vector<2x32xf32>
    %306 = vector.extract_strided_slice %302 {offsets = [0, 96], sizes = [2, 32], strides = [1, 1]} : vector<2x128xf32> to vector<2x32xf32>
    %307 = vector.extract_strided_slice %303 {offsets = [0, 64], sizes = [2, 32], strides = [1, 1]} : vector<2x128xf32> to vector<2x32xf32>
    %308 = arith.mulf %305, %247 : vector<2x32xf32>
    %309 = arith.mulf %304, %307 : vector<2x32xf32>
    %310 = arith.addf %308, %309 : vector<2x32xf32>
    %311 = math.tanh %310 : vector<2x32xf32>
    %312 = arith.mulf %306, %311 : vector<2x32xf32>
    %cst_74 = arith.constant dense<0.000000e+00> : vector<2x128xf32>
    %313 = tpu.matmul %312, %4, %cst_74 {dimension_numbers = #tpu.dot_dimension_numbers<[1], [0], [0], [1], [0, 0, 1, 1], [], []>} : vector<2x32xf32>, vector<32x128xf32>, vector<2x128xf32> -> vector<2x128xf32>
    %314 = arith.addf %313, %13 : vector<2x128xf32>
    %cst_75 = arith.constant dense<0xFF800000> : vector<128xf32>
    %315 = vector.multi_reduction <maximumf>, %314, %cst_75 [0] : vector<2x128xf32> to vector<128xf32>
    %316 = vector.shape_cast %315 : vector<128xf32> to vector<1x128xf32>
    %317 = vector.broadcast %316 : vector<1x128xf32> to vector<2x128xf32>
    %318 = arith.subf %314, %317 : vector<2x128xf32>
    %319 = math.exp %318 : vector<2x128xf32>
    %cst_76 = arith.constant dense<0.000000e+00> : vector<128xf32>
    %320 = vector.multi_reduction <add>, %319, %cst_76 [0] : vector<2x128xf32> to vector<128xf32>
    %321 = vector.shape_cast %320 : vector<128xf32> to vector<1x128xf32>
    %322 = vector.broadcast %321 : vector<1x128xf32> to vector<2x128xf32>
    %323 = arith.divf %319, %322 : vector<2x128xf32>
    %cst_77 = arith.constant dense<0xFF800000> : vector<2xf32>
    %324 = vector.multi_reduction <maximumf>, %323, %cst_77 [1] : vector<2x128xf32> to vector<2xf32>
    %325 = vector.shape_cast %324 : vector<2xf32> to vector<2x1xf32>
    %326 = vector.broadcast %325 : vector<2x1xf32> to vector<2x128xf32>
    %327 = arith.cmpf oge, %323, %326 : vector<2x128xf32>
    %c128_i32_78 = arith.constant 128 : i32
    %328 = vector.broadcast %c128_i32_78 : i32 to vector<2x128xi32>
    %329 = arith.select %327, %22, %328 : vector<2x128xi1>, vector<2x128xi32>
    %cst_79 = arith.constant dense<2147483647> : vector<2xi32>
    %330 = vector.multi_reduction <minsi>, %329, %cst_79 [1] : vector<2x128xi32> to vector<2xi32>
    %331 = vector.shape_cast %330 : vector<2xi32> to vector<2x1xi32>
    %332 = vector.broadcast %331 : vector<2x1xi32> to vector<2x128xi32>
    %333 = arith.cmpi eq, %22, %332 : vector<2x128xi32>
    %334 = arith.extui %333 : vector<2x128xi1> to vector<2x128xi32>
    %335 = arith.sitofp %334 : vector<2x128xi32> to vector<2x128xf32>
    %c128_80 = arith.constant 128 : index
    %c0_81 = arith.constant 0 : index
    %336 = vector.load %arg2[%c128_80, %c0_81] : memref<288x128xf32, #tpu.memory_space<vmem>>, vector<128x128xf32>
    %cst_82 = arith.constant dense<0.000000e+00> : vector<2x128xf32>
    %337 = tpu.matmul %335, %336, %cst_82 {dimension_numbers = #tpu.dot_dimension_numbers<[1], [0], [0], [1], [0, 0, 1, 1], [], []>} : vector<2x128xf32>, vector<128x128xf32>, vector<2x128xf32> -> vector<2x128xf32>
    %338 = vector.extract_strided_slice %20 {offsets = [10, 0], sizes = [2, 128], strides = [1, 1]} : vector<16x128xf32> to vector<2x128xf32>
    %cst_83 = arith.constant dense<0.000000e+00> : vector<2x128xf32>
    %339 = tpu.matmul %293, %2, %cst_83 {dimension_numbers = #tpu.dot_dimension_numbers<[1], [0], [0], [1], [0, 0, 1, 1], [], []>} : vector<2x32xf32>, vector<32x128xf32>, vector<2x128xf32> -> vector<2x128xf32>
    %340 = arith.addf %338, %339 : vector<2x128xf32>
    %341 = arith.addf %340, %7 : vector<2x128xf32>
    %342 = arith.negf %341 : vector<2x128xf32>
    %343 = math.exp %342 : vector<2x128xf32>
    %cst_84 = arith.constant 1.000000e+00 : f32
    %344 = vector.broadcast %cst_84 : f32 to vector<2x128xf32>
    %345 = arith.addf %344, %343 : vector<2x128xf32>
    %346 = arith.divf %344, %345 : vector<2x128xf32>
    %347 = math.tanh %341 : vector<2x128xf32>
    %348 = vector.extract_strided_slice %346 {offsets = [0, 0], sizes = [2, 32], strides = [1, 1]} : vector<2x128xf32> to vector<2x32xf32>
    %349 = vector.extract_strided_slice %346 {offsets = [0, 32], sizes = [2, 32], strides = [1, 1]} : vector<2x128xf32> to vector<2x32xf32>
    %350 = vector.extract_strided_slice %346 {offsets = [0, 96], sizes = [2, 32], strides = [1, 1]} : vector<2x128xf32> to vector<2x32xf32>
    %351 = vector.extract_strided_slice %347 {offsets = [0, 64], sizes = [2, 32], strides = [1, 1]} : vector<2x128xf32> to vector<2x32xf32>
    %352 = arith.mulf %349, %291 : vector<2x32xf32>
    %353 = arith.mulf %348, %351 : vector<2x32xf32>
    %354 = arith.addf %352, %353 : vector<2x32xf32>
    %355 = math.tanh %354 : vector<2x32xf32>
    %356 = arith.mulf %350, %355 : vector<2x32xf32>
    %357 = tpu.concatenate %312, %356 in 1 : vector<2x32xf32>, vector<2x32xf32> -> vector<2x64xf32>
    %cst_85 = arith.constant dense<0.000000e+00> : vector<2x128xf32>
    %358 = tpu.matmul %357, %3, %cst_85 {dimension_numbers = #tpu.dot_dimension_numbers<[1], [0], [0], [1], [0, 0, 1, 1], [], []>} : vector<2x64xf32>, vector<64x128xf32>, vector<2x128xf32> -> vector<2x128xf32>
    %359 = arith.addf %337, %358 : vector<2x128xf32>
    %360 = arith.addf %359, %10 : vector<2x128xf32>
    %361 = arith.negf %360 : vector<2x128xf32>
    %362 = math.exp %361 : vector<2x128xf32>
    %cst_86 = arith.constant 1.000000e+00 : f32
    %363 = vector.broadcast %cst_86 : f32 to vector<2x128xf32>
    %364 = arith.addf %363, %362 : vector<2x128xf32>
    %365 = arith.divf %363, %364 : vector<2x128xf32>
    %366 = math.tanh %360 : vector<2x128xf32>
    %367 = vector.extract_strided_slice %365 {offsets = [0, 0], sizes = [2, 32], strides = [1, 1]} : vector<2x128xf32> to vector<2x32xf32>
    %368 = vector.extract_strided_slice %365 {offsets = [0, 32], sizes = [2, 32], strides = [1, 1]} : vector<2x128xf32> to vector<2x32xf32>
    %369 = vector.extract_strided_slice %365 {offsets = [0, 96], sizes = [2, 32], strides = [1, 1]} : vector<2x128xf32> to vector<2x32xf32>
    %370 = vector.extract_strided_slice %366 {offsets = [0, 64], sizes = [2, 32], strides = [1, 1]} : vector<2x128xf32> to vector<2x32xf32>
    %371 = arith.mulf %368, %310 : vector<2x32xf32>
    %372 = arith.mulf %367, %370 : vector<2x32xf32>
    %373 = arith.addf %371, %372 : vector<2x32xf32>
    %374 = math.tanh %373 : vector<2x32xf32>
    %375 = arith.mulf %369, %374 : vector<2x32xf32>
    %cst_87 = arith.constant dense<0.000000e+00> : vector<2x128xf32>
    %376 = tpu.matmul %375, %4, %cst_87 {dimension_numbers = #tpu.dot_dimension_numbers<[1], [0], [0], [1], [0, 0, 1, 1], [], []>} : vector<2x32xf32>, vector<32x128xf32>, vector<2x128xf32> -> vector<2x128xf32>
    %377 = arith.addf %376, %13 : vector<2x128xf32>
    %cst_88 = arith.constant dense<0xFF800000> : vector<128xf32>
    %378 = vector.multi_reduction <maximumf>, %377, %cst_88 [0] : vector<2x128xf32> to vector<128xf32>
    %379 = vector.shape_cast %378 : vector<128xf32> to vector<1x128xf32>
    %380 = vector.broadcast %379 : vector<1x128xf32> to vector<2x128xf32>
    %381 = arith.subf %377, %380 : vector<2x128xf32>
    %382 = math.exp %381 : vector<2x128xf32>
    %cst_89 = arith.constant dense<0.000000e+00> : vector<128xf32>
    %383 = vector.multi_reduction <add>, %382, %cst_89 [0] : vector<2x128xf32> to vector<128xf32>
    %384 = vector.shape_cast %383 : vector<128xf32> to vector<1x128xf32>
    %385 = vector.broadcast %384 : vector<1x128xf32> to vector<2x128xf32>
    %386 = arith.divf %382, %385 : vector<2x128xf32>
    %cst_90 = arith.constant dense<0xFF800000> : vector<2xf32>
    %387 = vector.multi_reduction <maximumf>, %386, %cst_90 [1] : vector<2x128xf32> to vector<2xf32>
    %388 = vector.shape_cast %387 : vector<2xf32> to vector<2x1xf32>
    %389 = vector.broadcast %388 : vector<2x1xf32> to vector<2x128xf32>
    %390 = arith.cmpf oge, %386, %389 : vector<2x128xf32>
    %c128_i32_91 = arith.constant 128 : i32
    %391 = vector.broadcast %c128_i32_91 : i32 to vector<2x128xi32>
    %392 = arith.select %390, %22, %391 : vector<2x128xi1>, vector<2x128xi32>
    %cst_92 = arith.constant dense<2147483647> : vector<2xi32>
    %393 = vector.multi_reduction <minsi>, %392, %cst_92 [1] : vector<2x128xi32> to vector<2xi32>
    %394 = vector.shape_cast %393 : vector<2xi32> to vector<2x1xi32>
    %395 = vector.broadcast %394 : vector<2x1xi32> to vector<2x128xi32>
    %396 = arith.cmpi eq, %22, %395 : vector<2x128xi32>
    %397 = arith.extui %396 : vector<2x128xi1> to vector<2x128xi32>
    %398 = arith.sitofp %397 : vector<2x128xi32> to vector<2x128xf32>
    %c128_93 = arith.constant 128 : index
    %c0_94 = arith.constant 0 : index
    %399 = vector.load %arg2[%c128_93, %c0_94] : memref<288x128xf32, #tpu.memory_space<vmem>>, vector<128x128xf32>
    %cst_95 = arith.constant dense<0.000000e+00> : vector<2x128xf32>
    %400 = tpu.matmul %398, %399, %cst_95 {dimension_numbers = #tpu.dot_dimension_numbers<[1], [0], [0], [1], [0, 0, 1, 1], [], []>} : vector<2x128xf32>, vector<128x128xf32>, vector<2x128xf32> -> vector<2x128xf32>
    %401 = vector.extract_strided_slice %20 {offsets = [12, 0], sizes = [2, 128], strides = [1, 1]} : vector<16x128xf32> to vector<2x128xf32>
    %cst_96 = arith.constant dense<0.000000e+00> : vector<2x128xf32>
    %402 = tpu.matmul %356, %2, %cst_96 {dimension_numbers = #tpu.dot_dimension_numbers<[1], [0], [0], [1], [0, 0, 1, 1], [], []>} : vector<2x32xf32>, vector<32x128xf32>, vector<2x128xf32> -> vector<2x128xf32>
    %403 = arith.addf %401, %402 : vector<2x128xf32>
    %404 = arith.addf %403, %7 : vector<2x128xf32>
    %405 = arith.negf %404 : vector<2x128xf32>
    %406 = math.exp %405 : vector<2x128xf32>
    %cst_97 = arith.constant 1.000000e+00 : f32
    %407 = vector.broadcast %cst_97 : f32 to vector<2x128xf32>
    %408 = arith.addf %407, %406 : vector<2x128xf32>
    %409 = arith.divf %407, %408 : vector<2x128xf32>
    %410 = math.tanh %404 : vector<2x128xf32>
    %411 = vector.extract_strided_slice %409 {offsets = [0, 0], sizes = [2, 32], strides = [1, 1]} : vector<2x128xf32> to vector<2x32xf32>
    %412 = vector.extract_strided_slice %409 {offsets = [0, 32], sizes = [2, 32], strides = [1, 1]} : vector<2x128xf32> to vector<2x32xf32>
    %413 = vector.extract_strided_slice %409 {offsets = [0, 96], sizes = [2, 32], strides = [1, 1]} : vector<2x128xf32> to vector<2x32xf32>
    %414 = vector.extract_strided_slice %410 {offsets = [0, 64], sizes = [2, 32], strides = [1, 1]} : vector<2x128xf32> to vector<2x32xf32>
    %415 = arith.mulf %412, %354 : vector<2x32xf32>
    %416 = arith.mulf %411, %414 : vector<2x32xf32>
    %417 = arith.addf %415, %416 : vector<2x32xf32>
    %418 = math.tanh %417 : vector<2x32xf32>
    %419 = arith.mulf %413, %418 : vector<2x32xf32>
    %420 = tpu.concatenate %375, %419 in 1 : vector<2x32xf32>, vector<2x32xf32> -> vector<2x64xf32>
    %cst_98 = arith.constant dense<0.000000e+00> : vector<2x128xf32>
    %421 = tpu.matmul %420, %3, %cst_98 {dimension_numbers = #tpu.dot_dimension_numbers<[1], [0], [0], [1], [0, 0, 1, 1], [], []>} : vector<2x64xf32>, vector<64x128xf32>, vector<2x128xf32> -> vector<2x128xf32>
    %422 = arith.addf %400, %421 : vector<2x128xf32>
    %423 = arith.addf %422, %10 : vector<2x128xf32>
    %424 = arith.negf %423 : vector<2x128xf32>
    %425 = math.exp %424 : vector<2x128xf32>
    %cst_99 = arith.constant 1.000000e+00 : f32
    %426 = vector.broadcast %cst_99 : f32 to vector<2x128xf32>
    %427 = arith.addf %426, %425 : vector<2x128xf32>
    %428 = arith.divf %426, %427 : vector<2x128xf32>
    %429 = math.tanh %423 : vector<2x128xf32>
    %430 = vector.extract_strided_slice %428 {offsets = [0, 0], sizes = [2, 32], strides = [1, 1]} : vector<2x128xf32> to vector<2x32xf32>
    %431 = vector.extract_strided_slice %428 {offsets = [0, 32], sizes = [2, 32], strides = [1, 1]} : vector<2x128xf32> to vector<2x32xf32>
    %432 = vector.extract_strided_slice %428 {offsets = [0, 96], sizes = [2, 32], strides = [1, 1]} : vector<2x128xf32> to vector<2x32xf32>
    %433 = vector.extract_strided_slice %429 {offsets = [0, 64], sizes = [2, 32], strides = [1, 1]} : vector<2x128xf32> to vector<2x32xf32>
    %434 = arith.mulf %431, %373 : vector<2x32xf32>
    %435 = arith.mulf %430, %433 : vector<2x32xf32>
    %436 = arith.addf %434, %435 : vector<2x32xf32>
    %437 = math.tanh %436 : vector<2x32xf32>
    %438 = arith.mulf %432, %437 : vector<2x32xf32>
    %cst_100 = arith.constant dense<0.000000e+00> : vector<2x128xf32>
    %439 = tpu.matmul %438, %4, %cst_100 {dimension_numbers = #tpu.dot_dimension_numbers<[1], [0], [0], [1], [0, 0, 1, 1], [], []>} : vector<2x32xf32>, vector<32x128xf32>, vector<2x128xf32> -> vector<2x128xf32>
    %440 = arith.addf %439, %13 : vector<2x128xf32>
    %cst_101 = arith.constant dense<0xFF800000> : vector<128xf32>
    %441 = vector.multi_reduction <maximumf>, %440, %cst_101 [0] : vector<2x128xf32> to vector<128xf32>
    %442 = vector.shape_cast %441 : vector<128xf32> to vector<1x128xf32>
    %443 = vector.broadcast %442 : vector<1x128xf32> to vector<2x128xf32>
    %444 = arith.subf %440, %443 : vector<2x128xf32>
    %445 = math.exp %444 : vector<2x128xf32>
    %cst_102 = arith.constant dense<0.000000e+00> : vector<128xf32>
    %446 = vector.multi_reduction <add>, %445, %cst_102 [0] : vector<2x128xf32> to vector<128xf32>
    %447 = vector.shape_cast %446 : vector<128xf32> to vector<1x128xf32>
    %448 = vector.broadcast %447 : vector<1x128xf32> to vector<2x128xf32>
    %449 = arith.divf %445, %448 : vector<2x128xf32>
    %cst_103 = arith.constant dense<0xFF800000> : vector<2xf32>
    %450 = vector.multi_reduction <maximumf>, %449, %cst_103 [1] : vector<2x128xf32> to vector<2xf32>
    %451 = vector.shape_cast %450 : vector<2xf32> to vector<2x1xf32>
    %452 = vector.broadcast %451 : vector<2x1xf32> to vector<2x128xf32>
    %453 = arith.cmpf oge, %449, %452 : vector<2x128xf32>
    %c128_i32_104 = arith.constant 128 : i32
    %454 = vector.broadcast %c128_i32_104 : i32 to vector<2x128xi32>
    %455 = arith.select %453, %22, %454 : vector<2x128xi1>, vector<2x128xi32>
    %cst_105 = arith.constant dense<2147483647> : vector<2xi32>
    %456 = vector.multi_reduction <minsi>, %455, %cst_105 [1] : vector<2x128xi32> to vector<2xi32>
    %457 = vector.shape_cast %456 : vector<2xi32> to vector<2x1xi32>
    %458 = vector.broadcast %457 : vector<2x1xi32> to vector<2x128xi32>
    %459 = arith.cmpi eq, %22, %458 : vector<2x128xi32>
    %460 = arith.extui %459 : vector<2x128xi1> to vector<2x128xi32>
    %461 = arith.sitofp %460 : vector<2x128xi32> to vector<2x128xf32>
    %c128_106 = arith.constant 128 : index
    %c0_107 = arith.constant 0 : index
    %462 = vector.load %arg2[%c128_106, %c0_107] : memref<288x128xf32, #tpu.memory_space<vmem>>, vector<128x128xf32>
    %cst_108 = arith.constant dense<0.000000e+00> : vector<2x128xf32>
    %463 = tpu.matmul %461, %462, %cst_108 {dimension_numbers = #tpu.dot_dimension_numbers<[1], [0], [0], [1], [0, 0, 1, 1], [], []>} : vector<2x128xf32>, vector<128x128xf32>, vector<2x128xf32> -> vector<2x128xf32>
    %464 = vector.extract_strided_slice %20 {offsets = [14, 0], sizes = [2, 128], strides = [1, 1]} : vector<16x128xf32> to vector<2x128xf32>
    %cst_109 = arith.constant dense<0.000000e+00> : vector<2x128xf32>
    %465 = tpu.matmul %419, %2, %cst_109 {dimension_numbers = #tpu.dot_dimension_numbers<[1], [0], [0], [1], [0, 0, 1, 1], [], []>} : vector<2x32xf32>, vector<32x128xf32>, vector<2x128xf32> -> vector<2x128xf32>
    %466 = arith.addf %464, %465 : vector<2x128xf32>
    %467 = arith.addf %466, %7 : vector<2x128xf32>
    %468 = arith.negf %467 : vector<2x128xf32>
    %469 = math.exp %468 : vector<2x128xf32>
    %cst_110 = arith.constant 1.000000e+00 : f32
    %470 = vector.broadcast %cst_110 : f32 to vector<2x128xf32>
    %471 = arith.addf %470, %469 : vector<2x128xf32>
    %472 = arith.divf %470, %471 : vector<2x128xf32>
    %473 = math.tanh %467 : vector<2x128xf32>
    %474 = vector.extract_strided_slice %472 {offsets = [0, 0], sizes = [2, 32], strides = [1, 1]} : vector<2x128xf32> to vector<2x32xf32>
    %475 = vector.extract_strided_slice %472 {offsets = [0, 32], sizes = [2, 32], strides = [1, 1]} : vector<2x128xf32> to vector<2x32xf32>
    %476 = vector.extract_strided_slice %472 {offsets = [0, 96], sizes = [2, 32], strides = [1, 1]} : vector<2x128xf32> to vector<2x32xf32>
    %477 = vector.extract_strided_slice %473 {offsets = [0, 64], sizes = [2, 32], strides = [1, 1]} : vector<2x128xf32> to vector<2x32xf32>
    %478 = arith.mulf %475, %417 : vector<2x32xf32>
    %479 = arith.mulf %474, %477 : vector<2x32xf32>
    %480 = arith.addf %478, %479 : vector<2x32xf32>
    %481 = math.tanh %480 : vector<2x32xf32>
    %482 = arith.mulf %476, %481 : vector<2x32xf32>
    %483 = tpu.concatenate %438, %482 in 1 : vector<2x32xf32>, vector<2x32xf32> -> vector<2x64xf32>
    %cst_111 = arith.constant dense<0.000000e+00> : vector<2x128xf32>
    %484 = tpu.matmul %483, %3, %cst_111 {dimension_numbers = #tpu.dot_dimension_numbers<[1], [0], [0], [1], [0, 0, 1, 1], [], []>} : vector<2x64xf32>, vector<64x128xf32>, vector<2x128xf32> -> vector<2x128xf32>
    %485 = arith.addf %463, %484 : vector<2x128xf32>
    %486 = arith.addf %485, %10 : vector<2x128xf32>
    %487 = arith.negf %486 : vector<2x128xf32>
    %488 = math.exp %487 : vector<2x128xf32>
    %cst_112 = arith.constant 1.000000e+00 : f32
    %489 = vector.broadcast %cst_112 : f32 to vector<2x128xf32>
    %490 = arith.addf %489, %488 : vector<2x128xf32>
    %491 = arith.divf %489, %490 : vector<2x128xf32>
    %492 = math.tanh %486 : vector<2x128xf32>
    %493 = vector.extract_strided_slice %491 {offsets = [0, 0], sizes = [2, 32], strides = [1, 1]} : vector<2x128xf32> to vector<2x32xf32>
    %494 = vector.extract_strided_slice %491 {offsets = [0, 32], sizes = [2, 32], strides = [1, 1]} : vector<2x128xf32> to vector<2x32xf32>
    %495 = vector.extract_strided_slice %491 {offsets = [0, 96], sizes = [2, 32], strides = [1, 1]} : vector<2x128xf32> to vector<2x32xf32>
    %496 = vector.extract_strided_slice %492 {offsets = [0, 64], sizes = [2, 32], strides = [1, 1]} : vector<2x128xf32> to vector<2x32xf32>
    %497 = arith.mulf %494, %436 : vector<2x32xf32>
    %498 = arith.mulf %493, %496 : vector<2x32xf32>
    %499 = arith.addf %497, %498 : vector<2x32xf32>
    %500 = math.tanh %499 : vector<2x32xf32>
    %501 = arith.mulf %495, %500 : vector<2x32xf32>
    %cst_113 = arith.constant dense<0.000000e+00> : vector<2x128xf32>
    %502 = tpu.matmul %501, %4, %cst_113 {dimension_numbers = #tpu.dot_dimension_numbers<[1], [0], [0], [1], [0, 0, 1, 1], [], []>} : vector<2x32xf32>, vector<32x128xf32>, vector<2x128xf32> -> vector<2x128xf32>
    %503 = arith.addf %502, %13 : vector<2x128xf32>
    %cst_114 = arith.constant dense<0xFF800000> : vector<128xf32>
    %504 = vector.multi_reduction <maximumf>, %503, %cst_114 [0] : vector<2x128xf32> to vector<128xf32>
    %505 = vector.shape_cast %504 : vector<128xf32> to vector<1x128xf32>
    %506 = vector.broadcast %505 : vector<1x128xf32> to vector<2x128xf32>
    %507 = arith.subf %503, %506 : vector<2x128xf32>
    %508 = math.exp %507 : vector<2x128xf32>
    %cst_115 = arith.constant dense<0.000000e+00> : vector<128xf32>
    %509 = vector.multi_reduction <add>, %508, %cst_115 [0] : vector<2x128xf32> to vector<128xf32>
    %510 = vector.shape_cast %509 : vector<128xf32> to vector<1x128xf32>
    %511 = vector.broadcast %510 : vector<1x128xf32> to vector<2x128xf32>
    %512 = arith.divf %508, %511 : vector<2x128xf32>
    %513 = vector.extract_strided_slice %71 {offsets = [0, 0], sizes = [1, 128], strides = [1, 1]} : vector<2x128xf32> to vector<1x128xf32>
    %514 = vector.extract_strided_slice %134 {offsets = [0, 0], sizes = [1, 128], strides = [1, 1]} : vector<2x128xf32> to vector<1x128xf32>
    %515 = vector.extract_strided_slice %197 {offsets = [0, 0], sizes = [1, 128], strides = [1, 1]} : vector<2x128xf32> to vector<1x128xf32>
    %516 = vector.extract_strided_slice %260 {offsets = [0, 0], sizes = [1, 128], strides = [1, 1]} : vector<2x128xf32> to vector<1x128xf32>
    %517 = vector.extract_strided_slice %323 {offsets = [0, 0], sizes = [1, 128], strides = [1, 1]} : vector<2x128xf32> to vector<1x128xf32>
    %518 = vector.extract_strided_slice %386 {offsets = [0, 0], sizes = [1, 128], strides = [1, 1]} : vector<2x128xf32> to vector<1x128xf32>
    %519 = vector.extract_strided_slice %449 {offsets = [0, 0], sizes = [1, 128], strides = [1, 1]} : vector<2x128xf32> to vector<1x128xf32>
    %520 = vector.extract_strided_slice %512 {offsets = [0, 0], sizes = [1, 128], strides = [1, 1]} : vector<2x128xf32> to vector<1x128xf32>
    %521 = tpu.concatenate %513, %514, %515, %516, %517, %518, %519, %520 in 0 : vector<1x128xf32>, vector<1x128xf32>, vector<1x128xf32>, vector<1x128xf32>, vector<1x128xf32>, vector<1x128xf32>, vector<1x128xf32>, vector<1x128xf32> -> vector<8x128xf32>
    %c0_116 = arith.constant 0 : index
    %c0_117 = arith.constant 0 : index
    %522 = vector.load %arg4[%c0_116, %c0_117] : memref<44x128xf32, #tpu.memory_space<vmem>>, vector<8x128xf32>
    tpu.vector_store %arg4[%c0_116, %c0_117], %521 {strides = array<i32>} : memref<44x128xf32, #tpu.memory_space<vmem>>, vector<8x128xf32>,
    %523 = vector.extract_strided_slice %71 {offsets = [1, 0], sizes = [1, 128], strides = [1, 1]} : vector<2x128xf32> to vector<1x128xf32>
    %524 = vector.extract_strided_slice %134 {offsets = [1, 0], sizes = [1, 128], strides = [1, 1]} : vector<2x128xf32> to vector<1x128xf32>
    %525 = vector.extract_strided_slice %197 {offsets = [1, 0], sizes = [1, 128], strides = [1, 1]} : vector<2x128xf32> to vector<1x128xf32>
    %526 = vector.extract_strided_slice %260 {offsets = [1, 0], sizes = [1, 128], strides = [1, 1]} : vector<2x128xf32> to vector<1x128xf32>
    %527 = vector.extract_strided_slice %323 {offsets = [1, 0], sizes = [1, 128], strides = [1, 1]} : vector<2x128xf32> to vector<1x128xf32>
    %528 = vector.extract_strided_slice %386 {offsets = [1, 0], sizes = [1, 128], strides = [1, 1]} : vector<2x128xf32> to vector<1x128xf32>
    %529 = vector.extract_strided_slice %449 {offsets = [1, 0], sizes = [1, 128], strides = [1, 1]} : vector<2x128xf32> to vector<1x128xf32>
    %530 = vector.extract_strided_slice %512 {offsets = [1, 0], sizes = [1, 128], strides = [1, 1]} : vector<2x128xf32> to vector<1x128xf32>
    %531 = tpu.concatenate %523, %524, %525, %526, %527, %528, %529, %530 in 0 : vector<1x128xf32>, vector<1x128xf32>, vector<1x128xf32>, vector<1x128xf32>, vector<1x128xf32>, vector<1x128xf32>, vector<1x128xf32>, vector<1x128xf32> -> vector<8x128xf32>
    %c22 = arith.constant 22 : index
    %c0_118 = arith.constant 0 : index
    %532 = vector.load %arg4[%c22, %c0_118] : memref<44x128xf32, #tpu.memory_space<vmem>>, vector<8x128xf32>
    tpu.vector_store %arg4[%c22, %c0_118], %531 {strides = array<i32>} : memref<44x128xf32, #tpu.memory_space<vmem>>, vector<8x128xf32>,
    return
  }
}

</mosaic_0001>

<bundles_post_ra>
// kernel: decoder_forward.1
= control target key start
LH: loop header
LB: loop body
LE: loop exit
PB: predicated region body
PF: predicated region fallthrough
CT: control target
= control target key end

     0   :  { %9 = vsyncpa [#allocation3], 0  ;;  %s4814_s15 = smov [#allocation2]   ;;  %s5604_s0 = inlined_call_operand.vmem [shape: f32[16,32], index: 0, kind: input, shape index: {}]   ;;  %s5605_s1 = inlined_call_operand.vmem [shape: f32[8,32], index: 1, kind: input, shape index: {}]   ;;  %s5606_s2 = inlined_call_operand.hbm [shape: f32[288,128], index: 2, kind: input, shape index: {}]   ;;  %s5607_s3 = inlined_call_operand.vmem [shape: f32[3,128], index: 3, kind: input, shape index: {}]   ;;  %s5608_s4 = inlined_call_operand.vmem [shape: f32[44,128], index: 4, kind: output, shape index: {}]  }
   0x1   :  { %s19_s16 = sshll.u32 %s4814_s15, 4  ;;  %s4790_s19 = scalar_lea.hbm %s5606_s2, 4608  ;;  %s20_s16 = int_to_ptr.vmem [resolvable:$true] %s19_s16 }
   0x2   :  { %p4791_p0 = scmp.ne.s32.totalorder %s5606_s2, %s4790_s19  ;;  %p4794_p1 = scmp.lt.u32.totalorder %s4790_s19, %s5606_s2 }
   0x4   :  { %p4796_p2 = pnand %p4794_p1, %p4791_p0 }
   0x6   :  { %4799 = shalt.err (!%p4796_p2)
}
   0x7   :  { %s4800_s24 = scalar_lea.vmem %s20_s16, 4608  ;;  %p4805_p4 = scmp.lt.s32.totalorder %s20_s16, %s20_s16 }
   0x8   :  { %p4801_p3 = scmp.ne.s32.totalorder %s20_s16, %s4800_s24  ;;  %p4806_p5 = scmp.lt.s32.totalorder %s4800_s24, %s4800_s24 }
   0xa   :  { %p4807_p6 = por %p4806_p5, %p4805_p4 }
   0xc   :  { %p4808_p7 = pnand %p4807_p6, %p4801_p3 }
   0xe   :  { %4811 = shalt.err (!%p4808_p7)
}
   0xf   :  { %s4815_s25 = smov 128   ;;  %s4816_s26 = smov 8  }
  0x10   :  { %25 = dma.hbm_to_vmem [thread:$0]  %s5606_s2, 4608, %s20_s16, [#allocation3], %s4815_s25, %s4815_s25, %s4816_s26  }
  0x11   :  { %4812 = dma.done.wait [#allocation3], 4608  }
  0x12   :  { %4813 = vsyncadd [#allocation3], 4294962688  ;;  %v4817_v0 = vmov 0.0   ;;  %v4818_v1 = vmov 0.0|0.0   ;;  %vm4819_vm0 = vmmov 0   ;;  %v74_v2 = vld [vmem:[#allocation2] sm:$0xff] }
  0x13   :  { %32 = vst [vmem:[%s5608_s4 + $0x8] sm:$0xff] %v4817_v0  ;;  %35 = vst [vmem:[%s5608_s4 + $0x20] sm:$0xff] %v4817_v0  ;;  %4256 = vmatprep.subr.bf16.mxu1 %v4818_v1  ;;  %3683 = vmatprep.mubr.msk.f32.mxu1 %vm4819_vm0, %v4817_v0  ;;  %v75_v3 = vld [vmem:[#allocation2 + $0x8] sm:$0xff]  ;;  %v37_v4 = vld [vmem:[#allocation2 + $0x20] sm:$0xff]  ;;  %vm78_vm1 = vcmask 261120   ;;  %s4820_s19 = smov 64  }
  0x14   :  { %36 = vst [vmem:[%s5608_s4 + $0x28] sm:$0xf] %v4817_v0  ;;  %33 = vst [vmem:[%s5608_s4 + $0x10] sm:$0xff] %v4817_v0  ;;  %v4248_v5 = vpack.c.bf16 %v75_v3, %v74_v2  ;;  %v38_v6 = vld [vmem:[#allocation2 + $0x28] sm:$0xff]  ;;  %v76_v7 = vld [vmem:[#allocation2 + $0x10] sm:$0xff]  ;;  %s4821_s22 = smov 32  }
  0x15   :  { %34 = vst [vmem:[%s5608_s4 + $0x18] sm:$0xff] %v4817_v0  ;;  %v77_v8 = vld [vmem:[#allocation2 + $0x18] sm:$0xff]  ;;  %v4883_v9 = vpack.c.bf16 %v38_v6, %v37_v4  ;;  %v39_v11 = vld [vmem:[#allocation2 + $0x30] sm:$0xff]  ;;  %v72_v13 = vld [vmem:[%s5604_s0] sm:$0xff]  ;;  %vm270_vm2 = vcmask 523264   ;;  %vm447_vm3 = vcmask 1041408  }
  0x16   :  { %v4252_v10 = vpack.c.bf16 %v77_v8, %v76_v7  ;;  %v40_v12 = vld [vmem:[#allocation2 + $0x38] sm:$0xff]  ;;  %4249 = vmatprep.subr.bf16.mxu0 %v4248_v5  ;;  %3672 = vmatprep.mubr.msk.f32.mxu0 %vm78_vm1, %v72_v13  ;;  %v73_v15 = vld [vmem:[%s5604_s0 + $0x8] sm:$0xff]  ;;  %v68_v16 = vld [vmem:[%s5605_s1] sm:$0x3] }
  0x17   :  { %4251 = vmatpush3.bf16.msra.mxu0 %v4248_v5  ;;  %4258 = vmatpush3.bf16.msra.mxu1 %v4883_v9  ;;  %v4890_v14 = vpack.c.bf16 %v40_v12, %v39_v11  ;;  %v4913_v19 = vld [vmem:[%s5607_s3] ss:$0 sm:$0xff]  ;;  %v69_v25 = vld [vmem:[%s5605_s1 + $0x2] sm:$0x3]  ;;  %v42_v37 = vld [vmem:[#allocation2 + $0x48] sm:$0xff] }
  0x18   :  { %4253 = vmatprep.subr.bf16.mxu0 %v4252_v10  ;;  %4259 = vmatprep.subr.bf16.mxu1 %v4818_v1  ;;  %v41_v36 = vld [vmem:[#allocation2 + $0x40] sm:$0xff]  ;;  %v43_v38 = vld [vmem:[#allocation2 + $0x50] sm:$0xff]  ;;  %v44_v40 = vld [vmem:[#allocation2 + $0x58] sm:$0xff] }
  0x19   :  { %v4928_v39 = vpack.c.bf16 %v42_v37, %v41_v36  ;;  %v4931_v41 = vpack.c.bf16 %v44_v40, %v43_v38  ;;  %v45_v42 = vld [vmem:[#allocation2 + $0x60] sm:$0xff]  ;;  %v46_v43 = vld [vmem:[#allocation2 + $0x68] sm:$0xff]  ;;  %v47_v45 = vld [vmem:[#allocation2 + $0x70] sm:$0xff] }
  0x1a   :  { %v4935_v44 = vpack.c.bf16 %v46_v43, %v45_v42  ;;  %v48_v46 = vld [vmem:[#allocation2 + $0x78] sm:$0xff]  ;;  %v71_v51 = vld [vmem:[%s5605_s1 + $0x6] sm:$0x3]  ;;  %v70_v52 = vld [vmem:[%s5605_s1 + $0x4] sm:$0x3] }
  0x1b   :  { %4255 = vmatpush3.bf16.msra.mxu0 %v4252_v10  ;;  %4261 = vmatpush3.bf16.msra.mxu1 %v4890_v14  ;;  %v4940_v48 = vpack.c.bf16 %v48_v46, %v47_v45  ;;  %v4968_v55 = vld [vmem:[%s5607_s3 + $0x1] ss:$0 sm:$0xff]  ;;  %v50_v10 = vld [vmem:[#allocation2 + $0x108] sm:$0xff]  ;;  %v51_v11 = vld [vmem:[#allocation2 + $0x110] sm:$0xff] }
  0x1c   :  { %4262 = vmatprep.subr.bf16.mxu0 %v4818_v1  ;;  %4274 = vmatprep.subr.bf16.mxu1 %v4818_v1  ;;  %v49_v8 = vld [vmem:[#allocation2 + $0x100] sm:$0xff]  ;;  %v52_v13 = vld [vmem:[#allocation2 + $0x118] sm:$0xff] }
  0x1d   :  { %v4976_v12 = vpack.c.bf16 %v50_v10, %v49_v8 }
  0x1e   :  { %3673 = vmatmul.mubr.msk.f32.vlgmr.msra.gmra.mrb[0].mxu0 %vm78_vm1, %v73_v15  ;;  %3684 = vmatmul.mubr.msk.f32.vlgmr.msra.gmra.mrb[0].mxu1 %vm78_vm1, %v68_v16  ;;  %v4979_v15 = vpack.c.bf16 %v52_v13, %v51_v11 }
  0x1f   :  { %3702 = vmatprep.mubr.msk.f32.mxu0 %vm4819_vm0, %v4817_v0  ;;  %3713 = vmatprep.mubr.msk.f32.mxu1 %vm4819_vm0, %v4817_v0 }
  0x20   :  { %4264 = vmatpush3.bf16.msra.mxu0 %v4928_v39  ;;  %4276 = vmatpush3.bf16.msra.mxu1 %v4976_v12 }
  0x21   :  { %4265 = vmatprep.subr.bf16.mxu0 %v4818_v1  ;;  %4277 = vmatprep.subr.bf16.mxu1 %v4818_v1 }
  0x24   :  { %4267 = vmatpush3.bf16.msra.mxu0 %v4931_v41  ;;  %4279 = vmatpush3.bf16.msra.mxu1 %v4979_v15 }
  0x25   :  { %4268 = vmatprep.subr.bf16.mxu0 %v4818_v1  ;;  %4280 = vmatprep.subr.bf16.mxu1 %v4818_v1 }
  0x28   :  { %4270 = vmatpush3.bf16.msra.mxu0 %v4935_v44 }
  0x29   :  { %4271 = vmatprep.subr.bf16.mxu0 %v4818_v1 }
  0x2c   :  { %4273 = vmatpush3.bf16.msra.mxu0 %v4940_v48 }
  0x2d   :  { %4286 = vmatprep.subr.bf16.mxu0 %v4818_v1 }
  0xf1   :  { %v4908_v17 = vpop.f32.mrb[0].mxu0  ;;  %v231_v18 = vpop.f32.mrb[0].mxu1 }
  0xf2   :  { %v4915_v20 = vpop.f32.mrb[1].mxu0  ;;  %v3685_v21 = vpop.f32.mrb[1].mxu1 }
  0xf3   :  { %v235_v22 = vadd.f32 %v231_v18, %v4915_v20 }
  0xf5   :  { %v236_v23 = vadd.f32 %v4913_v19, %v235_v22 }
  0xf7   :  { %4625 = vtanh.f32 %v236_v23  ;;  %v3334_v26 = vmul.f32 -1.442695, %v236_v23 }
  0xf9   :  { %4627 = vpow2.f32 %v3334_v26 }
 0x101   :  { %v4626_v24 = vpop.eup %4625 }
 0x102   :  { %250 = vrot.lane.b32.xlu0 %v4626_v24, %s4820_s19  ;;  %v5003_v24 = vld [vmem:[%s5607_s3 + $0x2] ss:$0 sm:$0xff] }
 0x103   :  { %v4628_v27 = vpop.eup %4627 }
 0x104   :  { %v240_v28 = vadd.f32 1.0, %v4628_v27 }
 0x106   :  { %245 = vrot.lane.b32.xlu0 %v69_v25, %s4821_s22  ;;  %4629 = vrcp.f32 %v240_v28 }
 0x110   :  { %v4630_v29 = vpop.eup %4629 }
 0x174   :  { %v251_v30 = vpop.permute.xlu0 %250 }
 0x175   :  { %v253_v31 = vmul.f32 %v4630_v29, %v251_v30 }
 0x177   :  { %255 = vrot.lane.b32.xlu1 %v253_v31, %s4821_s22 }
 0x178   :  { %v246_v32 = vpop.permute.xlu0 %245 }
 0x179   :  { %v248_v33 = vmul.f32 %v4630_v29, %v246_v32 }
 0x1e9   :  { %v256_v34 = vpop.permute.xlu1 %255 }
 0x1ea   :  { %v4925_v35 = vadd.f32 %v256_v34, %v248_v33 }
 0x1ec   :  { %4631 = vtanh.f32 %v4925_v35 }
 0x1f6   :  { %v4632_v47 = vpop.eup %4631 }
 0x1f7   :  { %261 = vrot.lane.b32.xlu1 %v4632_v47, %s4820_s19 }
 0x269   :  { %v262_v49 = vpop.permute.xlu1 %261 }
 0x26a   :  { %v264_v50 = vmul.f32 %v4630_v29, %v262_v49 }
 0x26c   :  { %266 = vrot.lane.b32.xlu0 %v264_v50, %s4820_s19 }
 0x270   :  { %352 = vrot.lane.b32.xlu0 %v71_v51, %s4821_s22 }
 0x2de   :  { %v267_v53 = vpop.permute.xlu0 %266 }
 0x2df   :  { %v269_v54 = vsel %vm78_vm1, %v70_v52, %v267_v53 }
 0x2e0   :  { %3703 = vmatmul.mubr.msk.f32.vlgmr.msra.gmra.mrb[2].mxu0 %vm270_vm2, %v269_v54 }
 0x2e1   :  { %4288 = vmatpush3.bf16.msra.mxu0 %v4928_v39  ;;  %3743 = vmatprep.mubr.msk.f32.mxu0 %vm4819_vm0, %v4817_v0 }
 0x2e2   :  { %4289 = vmatprep.subr.bf16.mxu0 %v4818_v1  ;;  %v353_v4 = vpop.permute.xlu0 %352 }
 0x2e5   :  { %4291 = vmatpush3.bf16.msra.mxu0 %v4931_v41 }
 0x2e6   :  { %4292 = vmatprep.subr.bf16.mxu0 %v4818_v1 }
 0x2e9   :  { %4294 = vmatpush3.bf16.msra.mxu0 %v4935_v44 }
 0x2ea   :  { %4295 = vmatprep.subr.bf16.mxu0 %v4818_v1 }
 0x2ed   :  { %4297 = vmatpush3.bf16.msra.mxu0 %v4940_v48 }
 0x2ee   :  { %4322 = vmatprep.subr.bf16.mxu0 %v4818_v1 }
 0x3b3   :  { %v340_v56 = vpop.f32.mrb[2].mxu0 }
 0x3b4   :  { %v341_v57 = vadd.f32 %v4968_v55, %v340_v56  ;;  %v3704_v58 = vpop.f32.mrb[3].mxu0 }
 0x3b6   :  { %4633 = vtanh.f32 %v341_v57  ;;  %v3336_v60 = vmul.f32 -1.442695, %v341_v57 }
 0x3b8   :  { %4635 = vpow2.f32 %v3336_v60 }
 0x3c0   :  { %v4634_v59 = vpop.eup %4633 }
 0x3c1   :  { %357 = vrot.lane.b32.xlu1 %v4634_v59, %s4820_s19 }
 0x3c2   :  { %v4636_v61 = vpop.eup %4635 }
 0x3c3   :  { %v347_v62 = vadd.f32 1.0, %v4636_v61 }
 0x3c5   :  { %4637 = vrcp.f32 %v347_v62 }
 0x3cf   :  { %v4638_v63 = vpop.eup %4637 }
 0x3d0   :  { %v355_v5 = vmul.f32 %v4638_v63, %v353_v4  ;;  %v160_v4 = vlaneseq }
 0x433   :  { %v358_v2 = vpop.permute.xlu1 %357 }
 0x434   :  { %v360_v3 = vmul.f32 %v4638_v63, %v358_v2 }
 0x436   :  { %362 = vrot.lane.b32.xlu1 %v360_v3, %s4821_s22 }
 0x4a8   :  { %v363_v6 = vpop.permute.xlu1 %362 }
 0x4a9   :  { %v4973_v7 = vadd.f32 %v363_v6, %v355_v5  ;;  %v5019_v5 = vand.u32 127, %v160_v4 }
 0x4ab   :  { %4639 = vtanh.f32 %v4973_v7 }
 0x4b5   :  { %v4640_v16 = vpop.eup %4639 }
 0x4b6   :  { %368 = vrot.lane.b32.xlu0 %v4640_v16, %s4820_s19  ;;  %v593_v16 = vrot.slane %v4925_v35, 6  ;;  %v494_v35 = vld [vmem:[#allocation2 + $0xa0] sm:$0xff] }
 0x4ba   :  { %506 = vrot.lane.b32.xlu0 %v264_v50, %s4821_s22 }
 0x528   :  { %v369_v18 = vpop.permute.xlu0 %368 }
 0x529   :  { %v371_v21 = vmul.f32 %v4638_v63, %v369_v18 }
 0x52b   :  { %373 = vrot.lane.b32.xlu1 %v371_v21, %s4821_s22 }
 0x52c   :  { %v507_v23 = vpop.permute.xlu0 %506 }
 0x59d   :  { %v4987_v22 = vpop.permute.xlu1 %373 }
 0x59e   :  { %3714 = vmatmul.mubr.msk.f32.vlgmr.msra.gmra.mrb[2].mxu1 %vm78_vm1, %v4987_v22 }
 0x59f   :  { %4282 = vmatpush3.bf16.msra.mxu1 %v4883_v9  ;;  %3724 = vmatprep.mubr.msk.f32.mxu1 %vm4819_vm0, %v4817_v0 }
 0x5a0   :  { %4283 = vmatprep.subr.bf16.mxu1 %v4818_v1 }
 0x5a3   :  { %4285 = vmatpush3.bf16.msra.mxu1 %v4890_v14 }
 0x5a4   :  { %4298 = vmatprep.subr.bf16.mxu1 %v4818_v1 }
 0x5a6   :  { %3725 = vmatmul.mubr.msk.f32.vlgmr.msra.gmra.mrb[4].mxu1 %vm78_vm1, %v507_v23 }
 0x5a7   :  { %3778 = vmatprep.mubr.msk.f32.mxu1 %vm4819_vm0, %v4817_v0 }
 0x671   :  { %v443_v25 = vpop.f32.mrb[2].mxu1 }
 0x672   :  { %v444_v26 = vadd.f32 %v5003_v24, %v443_v25  ;;  %v3715_v27 = vpop.f32.mrb[3].mxu1  ;;  %v490_v25 = vld [vmem:[#allocation2 + $0x80] sm:$0xff] }
 0x673   :  { %v492_v27 = vld [vmem:[#allocation2 + $0x90] sm:$0xff] }
 0x674   :  { %v448_v28 = vsel %vm447_vm3, %v444_v26, -inf }
 0x675   :  { %v449_v29 = vrot.slane %v448_v28, 4 }
 0x677   :  { %v450_v30 = vmax.f32 %v448_v28, %v449_v29  ;;  %v493_v29 = vld [vmem:[#allocation2 + $0x98] sm:$0xff] }
 0x679   :  { %v451_v31 = vrot.slane %v450_v30, 2  ;;  %v576_v32 = vpop.f32.mrb[4].mxu1 }
 0x67a   :  { %v581_v33 = vrot.slane %v576_v32, 6  ;;  %v3726_v34 = vpop.f32.mrb[5].mxu1 }
 0x67b   :  { %v452_v36 = vmax.f32 %v450_v30, %v451_v31  ;;  %v5032_v30 = vpack.c.bf16 %v493_v29, %v492_v27  ;;  %v495_v31 = vld [vmem:[#allocation2 + $0xa8] sm:$0xff]  ;;  %v496_v34 = vld [vmem:[#allocation2 + $0xb0] sm:$0xff] }
 0x67c   :  { %v583_v37 = vadd.f32 %v581_v33, %v4915_v20  ;;  %v5036_v32 = vpack.c.bf16 %v495_v31, %v494_v35 }
 0x67d   :  { %v453_v38 = vrot.slane %v452_v36, 1 }
 0x67e   :  { %v584_v40 = vadd.f32 %v4913_v19, %v583_v37 }
 0x67f   :  { %v454_v42 = vmax.f32 %v452_v36, %v453_v38  ;;  %v497_v36 = vld [vmem:[#allocation2 + $0xb8] sm:$0xff]  ;;  %v498_v38 = vld [vmem:[#allocation2 + $0xc0] sm:$0xff] }
 0x680   :  { %4641 = vtanh.f32 %v584_v40  ;;  %v3340_v60 = vmul.f32 -1.442695, %v584_v40  ;;  %v5041_v37 = vpack.c.bf16 %v497_v36, %v496_v34  ;;  %v499_v40 = vld [vmem:[#allocation2 + $0xc8] sm:$0xff] }
 0x681   :  { %v455_v43 = vsub.f32 %v444_v26, %v454_v42  ;;  %v491_v26 = vld [vmem:[#allocation2 + $0x88] sm:$0xff]  ;;  %v5045_v42 = vpack.c.bf16 %v499_v40, %v498_v38 }
 0x682   :  { %v5029_v28 = vpack.c.bf16 %v491_v26, %v490_v25 }
 0x683   :  { %v456_v45 = vmul.f32 1.442695, %v455_v43  ;;  %v500_v43 = vld [vmem:[#allocation2 + $0xd0] sm:$0xff] }
 0x684   :  { %4300 = vmatpush3.bf16.msra.mxu1 %v5029_v28 }
 0x685   :  { %4643 = vpow2.f32 %v456_v45  ;;  %4301 = vmatprep.subr.bf16.mxu1 %v4818_v1  ;;  %v501_v45 = vld [vmem:[#allocation2 + $0xd8] sm:$0xff] }
 0x688   :  { %4303 = vmatpush3.bf16.msra.mxu1 %v5032_v30 }
 0x689   :  { %4304 = vmatprep.subr.bf16.mxu1 %v4818_v1 }
 0x68a   :  { %v4642_v46 = vpop.eup %4641 }
 0x68b   :  { %597 = vrot.lane.b32.xlu1 %v4642_v46, %s4820_s19  ;;  %v5049_v46 = vpack.c.bf16 %v501_v45, %v500_v43 }
 0x68c   :  { %4306 = vmatpush3.bf16.msra.mxu1 %v5036_v32 }
 0x68d   :  { %4307 = vmatprep.subr.bf16.mxu1 %v4818_v1 }
 0x68f   :  { %v4644_v47 = vpop.eup %4643 }
 0x690   :  { %v458_v49 = vsel %vm447_vm3, %v4644_v47, 0.0  ;;  %4309 = vmatpush3.bf16.msra.mxu1 %v5041_v37 }
 0x691   :  { %v459_v50 = vrot.slane %v458_v49, 4  ;;  %4310 = vmatprep.subr.bf16.mxu1 %v4818_v1 }
 0x693   :  { %v460_v51 = vadd.f32 %v459_v50, %v458_v49  ;;  %v503_v49 = vld [vmem:[#allocation2 + $0xe8] sm:$0xff] }
 0x694   :  { %4312 = vmatpush3.bf16.msra.mxu1 %v5045_v42 }
 0x695   :  { %v461_v52 = vrot.slane %v460_v51, 2  ;;  %4313 = vmatprep.subr.bf16.mxu1 %v4818_v1 }
 0x697   :  { %v462_v53 = vadd.f32 %v461_v52, %v460_v51 }
 0x698   :  { %4315 = vmatpush3.bf16.msra.mxu1 %v5049_v46 }
 0x699   :  { %v463_v54 = vrot.slane %v462_v53, 1  ;;  %4316 = vmatprep.subr.bf16.mxu1 %v4818_v1 }
 0x69b   :  { %v464_v56 = vadd.f32 %v463_v54, %v462_v53 }
 0x69d   :  { %4645 = vrcp.f32 %v464_v56  ;;  %v504_v56 = vld [vmem:[#allocation2 + $0xf0] sm:$0xff] }
 0x69e   :  { %4647 = vpow2.f32 %v3340_v60 }
 0x6a7   :  { %v4646_v57 = vpop.eup %4645 }
 0x6a8   :  { %v5011_v58 = vmul.f32 %v4646_v57, %v4644_v47  ;;  %v4648_v61 = vpop.eup %4647  ;;  %v502_v47 = vld [vmem:[#allocation2 + $0xe0] sm:$0xff]  ;;  %v505_v57 = vld [vmem:[#allocation2 + $0xf8] sm:$0xff] }
 0x6a9   :  { %v588_v62 = vadd.f32 1.0, %v4648_v61  ;;  %v5053_v50 = vpack.c.bf16 %v503_v49, %v502_v47 }
 0x6aa   :  { %v467_v59 = vsel %vm447_vm3, %v5011_v58, -inf }
 0x6ab   :  { %468 = vmax.xlane.f32.xlu0 %v467_v59  ;;  %4649 = vrcp.f32 %v588_v62  ;;  %4318 = vmatpush3.bf16.msra.mxu1 %v5053_v50  ;;  %v5058_v59 = vpack.c.bf16 %v505_v57, %v504_v56 }
 0x6ac   :  { %4319 = vmatprep.subr.bf16.mxu1 %v4818_v1 }
 0x6af   :  { %4321 = vmatpush3.bf16.msra.mxu1 %v5058_v59 }
 0x6b0   :  { %4346 = vmatprep.subr.bf16.mxu1 %v4818_v1 }
 0x6b5   :  { %v5015_v63 = vpop.eup %4649 }
 0x6b6   :  { %v595_v18 = vmul.f32 %v5015_v63, %v593_v16 }
 0x6fd   :  { %v598_v2 = vpop.permute.xlu1 %597 }
 0x6fe   :  { %v600_v3 = vmul.f32 %v5015_v63, %v598_v2 }
 0x700   :  { %602 = vrot.lane.b32.xlu1 %v600_v3, %s4821_s22 }
 0x738   :  { %v469_v6 = vpop.xlane.xlu0 %468 }
 0x739   :  { %vm470_vm4 = vcmp.ge.f32.partialorder %v5011_v58, %v469_v6 }
 0x73a   :  { %v471_v8 = vsel %vm470_vm4, %v5019_v5, 128 }
 0x73b   :  { %v472_v10 = vsel %vm447_vm3, %v471_v8, 2147483647 }
 0x73c   :  { %v474_v11 = vshra.s32 %v472_v10, 16  ;;  %v473_v51 = vand.u32 65535, %v472_v10  ;;  %v4822_v10 = vmov 1.0  }
 0x73e   :  { %v476_v13 = vcvt.s32.f32 %v474_v11  ;;  %v475_v53 = vcvt.s32.f32 %v473_v51 }
 0x740   :  { %477 = vmin.xlane.f32.xlu1 %v476_v13 }
 0x772   :  { %v603_v21 = vpop.permute.xlu1 %602 }
 0x773   :  { %v5026_v23 = vadd.f32 %v603_v21, %v595_v18 }
 0x775   :  { %4651 = vtanh.f32 %v5026_v23 }
 0x77f   :  { %v4652_v33 = vpop.eup %4651 }
 0x780   :  { %608 = vrot.lane.b32.xlu0 %v4652_v33, %s4820_s19 }
 0x7cd   :  { %v478_v52 = vpop.xlane.xlu1 %477 }
 0x7ce   :  { %vm479_vm5 = vcmp.eq.f32.partialorder %v476_v13, %v478_v52  ;;  %v484_v2 = vcvt.f32.s32 %v478_v52 }
 0x7cf   :  { %v480_v54 = vsel %vm479_vm5, %v475_v53, inf }
 0x7d0   :  { %481 = vmin.xlane.f32.xlu1 %v480_v54  ;;  %v485_v4 = vshll.u32 %v484_v2, 16 }
 0x7f2   :  { %v609_v60 = vpop.permute.xlu0 %608 }
 0x7f3   :  { %v611_v61 = vmul.f32 %v5015_v63, %v609_v60 }
 0x7f5   :  { %v614_v62 = vrot.slane %v611_v61, 2 }
 0x7f7   :  { %615 = vrot.lane.b32.xlu1 %v614_v62, %s4820_s19 }
 0x85d   :  { %v482_v3 = vpop.xlane.xlu1 %481 }
 0x85e   :  { %v483_v6 = vcvt.f32.s32 %v482_v3 }
 0x860   :  { %v486_v8 = vadd.s32 %v485_v4, %v483_v6 }
 0x862   :  { %vm487_vm6 = vcmp.eq.s32.totalorder %v5019_v5, %v486_v8 }
 0x863   :  { %3779 = vmatmul.mubr.msk.f32.vlgmr.msra.gmra.mrb[6].mxu1 %vm487_vm6, %v4822_v10 }
 0x864   :  { %4348 = vmatpush3.bf16.msra.mxu1 %v5029_v28  ;;  %3854 = vmatprep.mubr.msk.f32.mxu1 %vm4819_vm0, %v4817_v0 }
 0x865   :  { %4349 = vmatprep.subr.bf16.mxu1 %v4818_v1 }
 0x868   :  { %4351 = vmatpush3.bf16.msra.mxu1 %v5032_v30 }
 0x869   :  { %v616_v63 = vpop.permute.xlu1 %615  ;;  %4352 = vmatprep.subr.bf16.mxu1 %v4818_v1 }
 0x86a   :  { %v618_v11 = vsel %vm78_vm1, %v4987_v22, %v616_v63 }
 0x86b   :  { %3744 = vmatmul.mubr.msk.f32.vlgmr.msra.gmra.mrb[4].mxu0 %vm270_vm2, %v618_v11 }
 0x86c   :  { %4324 = vmatpush3.bf16.msra.mxu0 %v4976_v12  ;;  %3789 = vmatprep.mubr.msk.f32.mxu0 %vm4819_vm0, %v4817_v0 }
 0x86d   :  { %4325 = vmatprep.subr.bf16.mxu0 %v4818_v1  ;;  %4354 = vmatpush3.bf16.msra.mxu1 %v5036_v32 }
 0x86e   :  { %4355 = vmatprep.subr.bf16.mxu1 %v4818_v1 }
 0x870   :  { %4327 = vmatpush3.bf16.msra.mxu0 %v4979_v15 }
 0x871   :  { %4328 = vmatprep.subr.bf16.mxu0 %v4818_v1  ;;  %4357 = vmatpush3.bf16.msra.mxu1 %v5041_v37 }
 0x872   :  { %4358 = vmatprep.subr.bf16.mxu1 %v4818_v1 }
 0x875   :  { %4360 = vmatpush3.bf16.msra.mxu1 %v5045_v42 }
 0x876   :  { %4361 = vmatprep.subr.bf16.mxu1 %v4818_v1 }
 0x879   :  { %4363 = vmatpush3.bf16.msra.mxu1 %v5049_v46 }
 0x87a   :  { %4364 = vmatprep.subr.bf16.mxu1 %v4818_v1 }
 0x87d   :  { %4366 = vmatpush3.bf16.msra.mxu1 %v5053_v50 }
 0x87e   :  { %4367 = vmatprep.subr.bf16.mxu1 %v4818_v1 }
 0x881   :  { %4369 = vmatpush3.bf16.msra.mxu1 %v5058_v59 }
 0x882   :  { %4394 = vmatprep.subr.bf16.mxu1 %v4818_v1 }
 0x936   :  { %v758_v22 = vpop.f32.mrb[6].mxu1 }
 0x937   :  { %v3780_v13 = vpop.f32.mrb[7].mxu1 }
 0x93e   :  { %v688_v16 = vpop.f32.mrb[4].mxu0 }
 0x93f   :  { %v759_v18 = vadd.f32 %v758_v22, %v688_v16  ;;  %v3745_v21 = vpop.f32.mrb[5].mxu0 }
 0x941   :  { %v762_v25 = vadd.f32 %v4968_v55, %v759_v18 }
 0x943   :  { %4653 = vtanh.f32 %v762_v25  ;;  %v3343_v27 = vmul.f32 -1.442695, %v762_v25 }
 0x945   :  { %4655 = vpow2.f32 %v3343_v27 }
 0x94d   :  { %v4654_v26 = vpop.eup %4653 }
 0x94e   :  { %772 = vrot.lane.b32.xlu0 %v4654_v26, %s4820_s19 }
 0x94f   :  { %v4656_v29 = vpop.eup %4655 }
 0x950   :  { %v766_v35 = vadd.f32 1.0, %v4656_v29 }
 0x952   :  { %4657 = vrcp.f32 %v766_v35 }
 0x95c   :  { %v4658_v31 = vpop.eup %4657 }
 0x95d   :  { %v770_v36 = vmul.f32 %v4658_v31, %v4973_v7 }
 0x9c0   :  { %v773_v33 = vpop.permute.xlu0 %772 }
 0x9c1   :  { %v775_v34 = vmul.f32 %v4658_v31, %v773_v33 }
 0x9c3   :  { %777 = vrot.lane.b32.xlu0 %v775_v34, %s4821_s22 }
 0xa35   :  { %v778_v38 = vpop.permute.xlu0 %777 }
 0xa36   :  { %v5097_v40 = vadd.f32 %v778_v38, %v770_v36 }
 0xa38   :  { %4659 = vtanh.f32 %v5097_v40 }
 0xa42   :  { %v4660_v43 = vpop.eup %4659 }
 0xa43   :  { %783 = vrot.lane.b32.xlu0 %v4660_v43, %s4820_s19 }
 0xa47   :  { %904 = vrot.lane.b32.xlu0 %v614_v62, %s4821_s22 }
 0xab5   :  { %v784_v45 = vpop.permute.xlu0 %783 }
 0xab6   :  { %v786_v47 = vmul.f32 %v4658_v31, %v784_v45 }
 0xab8   :  { %788 = vrot.lane.b32.xlu1 %v786_v47, %s4821_s22 }
 0xab9   :  { %v905_v7 = vpop.permute.xlu0 %904 }
 0xb2a   :  { %v5103_v49 = vpop.permute.xlu1 %788 }
 0xb2b   :  { %3790 = vmatmul.mubr.msk.f32.vlgmr.msra.gmra.mrb[6].mxu0 %vm78_vm1, %v5103_v49 }
 0xb2c   :  { %4330 = vmatpush3.bf16.msra.mxu0 %v4883_v9  ;;  %3800 = vmatprep.mubr.msk.f32.mxu0 %vm4819_vm0, %v4817_v0 }
 0xb2d   :  { %4331 = vmatprep.subr.bf16.mxu0 %v4818_v1 }
 0xb30   :  { %4333 = vmatpush3.bf16.msra.mxu0 %v4890_v14 }
 0xb31   :  { %4334 = vmatprep.subr.bf16.mxu0 %v4818_v1 }
 0xb33   :  { %3801 = vmatmul.mubr.msk.f32.vlgmr.msra.gmra.mrb[8].mxu0 %vm78_vm1, %v905_v7 }
 0xb34   :  { %4336 = vmatpush3.bf16.msra.mxu0 %v4928_v39  ;;  %3819 = vmatprep.mubr.msk.f32.mxu0 %vm4819_vm0, %v4817_v0 }
 0xb35   :  { %4337 = vmatprep.subr.bf16.mxu0 %v4818_v1 }
 0xb38   :  { %4339 = vmatpush3.bf16.msra.mxu0 %v4931_v41 }
 0xb39   :  { %4340 = vmatprep.subr.bf16.mxu0 %v4818_v1 }
 0xb3c   :  { %4342 = vmatpush3.bf16.msra.mxu0 %v4935_v44 }
 0xb3d   :  { %4343 = vmatprep.subr.bf16.mxu0 %v4818_v1 }
 0xb40   :  { %4345 = vmatpush3.bf16.msra.mxu0 %v4940_v48 }
 0xb41   :  { %4370 = vmatprep.subr.bf16.mxu0 %v4818_v1 }
 0xbfe   :  { %v858_v51 = vpop.f32.mrb[6].mxu0 }
 0xbff   :  { %v859_v52 = vadd.f32 %v5003_v24, %v858_v51  ;;  %v3791_v53 = vpop.f32.mrb[7].mxu0 }
 0xc01   :  { %v862_v54 = vsel %vm447_vm3, %v859_v52, -inf }
 0xc02   :  { %v863_v56 = vrot.slane %v862_v54, 4 }
 0xc04   :  { %v864_v57 = vmax.f32 %v862_v54, %v863_v56 }
 0xc06   :  { %v865_v60 = vrot.slane %v864_v57, 2  ;;  %v974_v61 = vpop.f32.mrb[8].mxu0 }
 0xc07   :  { %v979_v62 = vrot.slane %v974_v61, 4  ;;  %v3802_v2 = vpop.f32.mrb[9].mxu0 }
 0xc08   :  { %v866_v3 = vmax.f32 %v864_v57, %v865_v60  ;;  %v991_v57 = vrot.slane %v5026_v23, 6 }
 0xc09   :  { %v981_v4 = vadd.f32 %v979_v62, %v4915_v20 }
 0xc0a   :  { %v867_v6 = vrot.slane %v866_v3, 1 }
 0xc0b   :  { %v982_v8 = vadd.f32 %v4913_v19, %v981_v4 }
 0xc0c   :  { %v868_v63 = vmax.f32 %v866_v3, %v867_v6 }
 0xc0d   :  { %4661 = vtanh.f32 %v982_v8  ;;  %v3347_v36 = vmul.f32 -1.442695, %v982_v8 }
 0xc0e   :  { %v869_v11 = vsub.f32 %v859_v52, %v868_v63 }
 0xc10   :  { %v870_v22 = vmul.f32 1.442695, %v869_v11 }
 0xc12   :  { %4663 = vpow2.f32 %v870_v22 }
 0xc17   :  { %v4662_v13 = vpop.eup %4661 }
 0xc18   :  { %995 = vrot.lane.b32.xlu1 %v4662_v13, %s4820_s19 }
 0xc1c   :  { %v4664_v16 = vpop.eup %4663 }
 0xc1d   :  { %v872_v18 = vsel %vm447_vm3, %v4664_v16, 0.0 }
 0xc1e   :  { %v873_v21 = vrot.slane %v872_v18, 4 }
 0xc20   :  { %v874_v25 = vadd.f32 %v873_v21, %v872_v18 }
 0xc22   :  { %v875_v26 = vrot.slane %v874_v25, 2 }
 0xc24   :  { %v876_v27 = vadd.f32 %v875_v26, %v874_v25 }
 0xc26   :  { %v877_v29 = vrot.slane %v876_v27, 1 }
 0xc28   :  { %v878_v35 = vadd.f32 %v877_v29, %v876_v27 }
 0xc2a   :  { %4665 = vrcp.f32 %v878_v35 }
 0xc2b   :  { %4667 = vpow2.f32 %v3347_v36 }
 0xc34   :  { %v4666_v31 = vpop.eup %4665 }
 0xc35   :  { %v5130_v33 = vmul.f32 %v4666_v31, %v4664_v16  ;;  %v4668_v38 = vpop.eup %4667 }
 0xc36   :  { %v986_v43 = vadd.f32 1.0, %v4668_v38 }
 0xc37   :  { %v881_v34 = vsel %vm447_vm3, %v5130_v33, -inf }
 0xc38   :  { %882 = vmax.xlane.f32.xlu0 %v881_v34  ;;  %4669 = vrcp.f32 %v986_v43 }
 0xc42   :  { %v4670_v45 = vpop.eup %4669 }
 0xc43   :  { %v993_v60 = vmul.f32 %v4670_v45, %v991_v57 }
 0xc8a   :  { %v996_v47 = vpop.permute.xlu1 %995 }
 0xc8b   :  { %v998_v7 = vmul.f32 %v4670_v45, %v996_v47 }
 0xc8d   :  { %1000 = vrot.lane.b32.xlu1 %v998_v7, %s4821_s22 }
 0xcc5   :  { %v883_v51 = vpop.xlane.xlu0 %882 }
 0xcc6   :  { %vm884_vm7 = vcmp.ge.f32.partialorder %v5130_v33, %v883_v51 }
 0xcc7   :  { %v885_v52 = vsel %vm884_vm7, %v5019_v5, 128 }
 0xcc8   :  { %v886_v53 = vsel %vm447_vm3, %v885_v52, 2147483647 }
 0xcc9   :  { %v888_v54 = vshra.s32 %v886_v53, 16  ;;  %v887_v3 = vand.u32 65535, %v886_v53 }
 0xccb   :  { %v890_v56 = vcvt.s32.f32 %v888_v54  ;;  %v889_v6 = vcvt.s32.f32 %v887_v3 }
 0xccd   :  { %891 = vmin.xlane.f32.xlu1 %v890_v56 }
 0xcff   :  { %v1001_v61 = vpop.permute.xlu1 %1000 }
 0xd00   :  { %v5139_v62 = vadd.f32 %v1001_v61, %v993_v60 }
 0xd02   :  { %4671 = vtanh.f32 %v5139_v62 }
 0xd0c   :  { %v4672_v2 = vpop.eup %4671 }
 0xd0d   :  { %1006 = vrot.lane.b32.xlu0 %v4672_v2, %s4820_s19 }
 0xd5a   :  { %v892_v4 = vpop.xlane.xlu1 %891 }
 0xd5b   :  { %vm893_vm8 = vcmp.eq.f32.partialorder %v890_v56, %v892_v4  ;;  %v898_v23 = vcvt.f32.s32 %v892_v4 }
 0xd5c   :  { %v894_v8 = vsel %vm893_vm8, %v889_v6, inf }
 0xd5d   :  { %895 = vmin.xlane.f32.xlu1 %v894_v8  ;;  %v899_v16 = vshll.u32 %v898_v23, 16 }
 0xd7f   :  { %v1007_v63 = vpop.permute.xlu0 %1006 }
 0xd80   :  { %v1009_v11 = vmul.f32 %v4670_v45, %v1007_v63 }
 0xd82   :  { %v1012_v22 = vrot.slane %v1009_v11, 4 }
 0xd84   :  { %1013 = vrot.lane.b32.xlu1 %v1012_v22, %s4820_s19 }
 0xdea   :  { %v896_v13 = vpop.xlane.xlu1 %895 }
 0xdeb   :  { %v897_v18 = vcvt.f32.s32 %v896_v13 }
 0xded   :  { %v900_v21 = vadd.s32 %v899_v16, %v897_v18 }
 0xdef   :  { %vm901_vm9 = vcmp.eq.s32.totalorder %v5019_v5, %v900_v21 }
 0xdf0   :  { %3855 = vmatmul.mubr.msk.f32.vlgmr.msra.gmra.mrb[8].mxu1 %vm901_vm9, %v4822_v10 }
 0xdf1   :  { %4396 = vmatpush3.bf16.msra.mxu1 %v5029_v28  ;;  %3930 = vmatprep.mubr.msk.f32.mxu1 %vm4819_vm0, %v4817_v0 }
 0xdf2   :  { %4397 = vmatprep.subr.bf16.mxu1 %v4818_v1 }
 0xdf5   :  { %4399 = vmatpush3.bf16.msra.mxu1 %v5032_v30 }
 0xdf6   :  { %v1014_v25 = vpop.permute.xlu1 %1013  ;;  %4400 = vmatprep.subr.bf16.mxu1 %v4818_v1 }
 0xdf7   :  { %v1016_v26 = vsel %vm78_vm1, %v5103_v49, %v1014_v25 }
 0xdf8   :  { %3820 = vmatmul.mubr.msk.f32.vlgmr.msra.gmra.mrb[10].mxu0 %vm270_vm2, %v1016_v26 }
 0xdf9   :  { %4372 = vmatpush3.bf16.msra.mxu0 %v4976_v12  ;;  %3865 = vmatprep.mubr.msk.f32.mxu0 %vm4819_vm0, %v4817_v0 }
 0xdfa   :  { %4373 = vmatprep.subr.bf16.mxu0 %v4818_v1  ;;  %4402 = vmatpush3.bf16.msra.mxu1 %v5036_v32 }
 0xdfb   :  { %4403 = vmatprep.subr.bf16.mxu1 %v4818_v1 }
 0xdfd   :  { %4375 = vmatpush3.bf16.msra.mxu0 %v4979_v15 }
 0xdfe   :  { %4376 = vmatprep.subr.bf16.mxu0 %v4818_v1  ;;  %4405 = vmatpush3.bf16.msra.mxu1 %v5041_v37 }
 0xdff   :  { %4406 = vmatprep.subr.bf16.mxu1 %v4818_v1 }
 0xe02   :  { %4408 = vmatpush3.bf16.msra.mxu1 %v5045_v42 }
 0xe03   :  { %4409 = vmatprep.subr.bf16.mxu1 %v4818_v1 }
 0xe06   :  { %4411 = vmatpush3.bf16.msra.mxu1 %v5049_v46 }
 0xe07   :  { %4412 = vmatprep.subr.bf16.mxu1 %v4818_v1 }
 0xe0a   :  { %4414 = vmatpush3.bf16.msra.mxu1 %v5053_v50 }
 0xe0b   :  { %4415 = vmatprep.subr.bf16.mxu1 %v4818_v1 }
 0xe0e   :  { %4417 = vmatpush3.bf16.msra.mxu1 %v5058_v59 }
 0xe0f   :  { %4442 = vmatprep.subr.bf16.mxu1 %v4818_v1 }
 0xec3   :  { %v1156_v49 = vpop.f32.mrb[8].mxu1 }
 0xec4   :  { %v3856_v27 = vpop.f32.mrb[9].mxu1 }
 0xecb   :  { %v1086_v29 = vpop.f32.mrb[10].mxu0 }
 0xecc   :  { %v1157_v35 = vadd.f32 %v1156_v49, %v1086_v29  ;;  %v3821_v31 = vpop.f32.mrb[11].mxu0 }
 0xece   :  { %v1160_v34 = vadd.f32 %v4968_v55, %v1157_v35 }
 0xed0   :  { %4673 = vtanh.f32 %v1160_v34  ;;  %v3350_v38 = vmul.f32 -1.442695, %v1160_v34 }
 0xed2   :  { %4675 = vpow2.f32 %v3350_v38 }
 0xeda   :  { %v4674_v36 = vpop.eup %4673 }
 0xedb   :  { %1170 = vrot.lane.b32.xlu0 %v4674_v36, %s4820_s19 }
 0xedc   :  { %v4676_v43 = vpop.eup %4675 }
 0xedd   :  { %v1164_v45 = vadd.f32 1.0, %v4676_v43 }
 0xedf   :  { %4677 = vrcp.f32 %v1164_v45 }
 0xee9   :  { %v4678_v47 = vpop.eup %4677 }
 0xeea   :  { %v1168_v52 = vmul.f32 %v4678_v47, %v5097_v40 }
 0xf4d   :  { %v1171_v7 = vpop.permute.xlu0 %1170 }
 0xf4e   :  { %v1173_v51 = vmul.f32 %v4678_v47, %v1171_v7 }
 0xf50   :  { %1175 = vrot.lane.b32.xlu0 %v1173_v51, %s4821_s22 }
 0xfc2   :  { %v1176_v53 = vpop.permute.xlu0 %1175 }
 0xfc3   :  { %v5177_v54 = vadd.f32 %v1176_v53, %v1168_v52 }
 0xfc5   :  { %4679 = vtanh.f32 %v5177_v54 }
 0xfcf   :  { %v4680_v56 = vpop.eup %4679 }
 0xfd0   :  { %1181 = vrot.lane.b32.xlu0 %v4680_v56, %s4820_s19 }
 0xfd4   :  { %1302 = vrot.lane.b32.xlu0 %v1012_v22, %s4821_s22 }
0x1042   :  { %v1182_v57 = vpop.permute.xlu0 %1181 }
0x1043   :  { %v1184_v60 = vmul.f32 %v4678_v47, %v1182_v57 }
0x1045   :  { %1186 = vrot.lane.b32.xlu1 %v1184_v60, %s4821_s22 }
0x1046   :  { %v1303_v40 = vpop.permute.xlu0 %1302 }
0x10b7   :  { %v5183_v61 = vpop.permute.xlu1 %1186 }
0x10b8   :  { %3866 = vmatmul.mubr.msk.f32.vlgmr.msra.gmra.mrb[12].mxu0 %vm78_vm1, %v5183_v61 }
0x10b9   :  { %4378 = vmatpush3.bf16.msra.mxu0 %v4883_v9  ;;  %3876 = vmatprep.mubr.msk.f32.mxu0 %vm4819_vm0, %v4817_v0 }
0x10ba   :  { %4379 = vmatprep.subr.bf16.mxu0 %v4818_v1 }
0x10bd   :  { %4381 = vmatpush3.bf16.msra.mxu0 %v4890_v14 }
0x10be   :  { %4382 = vmatprep.subr.bf16.mxu0 %v4818_v1 }
0x10c0   :  { %3877 = vmatmul.mubr.msk.f32.vlgmr.msra.gmra.mrb[14].mxu0 %vm78_vm1, %v1303_v40 }
0x10c1   :  { %4384 = vmatpush3.bf16.msra.mxu0 %v4928_v39  ;;  %3895 = vmatprep.mubr.msk.f32.mxu0 %vm4819_vm0, %v4817_v0 }
0x10c2   :  { %4385 = vmatprep.subr.bf16.mxu0 %v4818_v1 }
0x10c5   :  { %4387 = vmatpush3.bf16.msra.mxu0 %v4931_v41 }
0x10c6   :  { %4388 = vmatprep.subr.bf16.mxu0 %v4818_v1 }
0x10c9   :  { %4390 = vmatpush3.bf16.msra.mxu0 %v4935_v44 }
0x10ca   :  { %4391 = vmatprep.subr.bf16.mxu0 %v4818_v1 }
0x10cd   :  { %4393 = vmatpush3.bf16.msra.mxu0 %v4940_v48 }
0x10ce   :  { %4418 = vmatprep.subr.bf16.mxu0 %v4818_v1 }
0x118b   :  { %v1256_v2 = vpop.f32.mrb[12].mxu0 }
0x118c   :  { %v1257_v3 = vadd.f32 %v5003_v24, %v1256_v2  ;;  %v3867_v4 = vpop.f32.mrb[13].mxu0 }
0x118e   :  { %v1260_v0 = vsel %vm447_vm3, %v1257_v3, -inf }
0x118f   :  { %v1261_v6 = vrot.slane %v1260_v0, 4 }
0x1191   :  { %v1262_v8 = vmax.f32 %v1260_v0, %v1261_v6  ;;  %v1389_v0 = vrot.slane %v5139_v62, 6 }
0x1193   :  { %v1263_v63 = vrot.slane %v1262_v8, 2  ;;  %v1372_v11 = vpop.f32.mrb[14].mxu0 }
0x1194   :  { %v1377_v22 = vrot.slane %v1372_v11, 2  ;;  %v3878_v23 = vpop.f32.mrb[15].mxu0 }
0x1195   :  { %v1264_v13 = vmax.f32 %v1262_v8, %v1263_v63 }
0x1196   :  { %v1379_v16 = vadd.f32 %v1377_v22, %v4915_v20 }
0x1197   :  { %v1265_v18 = vrot.slane %v1264_v13, 1 }
0x1198   :  { %v1380_v21 = vadd.f32 %v4913_v19, %v1379_v16 }
0x1199   :  { %v1266_v25 = vmax.f32 %v1264_v13, %v1265_v18 }
0x119a   :  { %4681 = vtanh.f32 %v1380_v21  ;;  %v3354_v7 = vmul.f32 -1.442695, %v1380_v21 }
0x119b   :  { %v1267_v26 = vsub.f32 %v1257_v3, %v1266_v25 }
0x119d   :  { %v1268_v49 = vmul.f32 1.442695, %v1267_v26 }
0x119f   :  { %4683 = vpow2.f32 %v1268_v49 }
0x11a4   :  { %v4682_v27 = vpop.eup %4681 }
0x11a5   :  { %1393 = vrot.lane.b32.xlu1 %v4682_v27, %s4820_s19 }
0x11a9   :  { %v4684_v29 = vpop.eup %4683 }
0x11aa   :  { %v1270_v35 = vsel %vm447_vm3, %v4684_v29, 0.0 }
0x11ab   :  { %v1271_v31 = vrot.slane %v1270_v35, 4 }
0x11ad   :  { %v1272_v34 = vadd.f32 %v1271_v31, %v1270_v35  ;;  %v5230_v35 = vld [vmem:[%s5608_s4 + $0x8] sm:$0xff] }
0x11af   :  { %v1273_v36 = vrot.slane %v1272_v34, 2 }
0x11b1   :  { %v1274_v38 = vadd.f32 %v1273_v36, %v1272_v34 }
0x11b3   :  { %v1275_v43 = vrot.slane %v1274_v38, 1 }
0x11b5   :  { %v1276_v20 = vadd.f32 %v1275_v43, %v1274_v38 }
0x11b7   :  { %4685 = vrcp.f32 %v1276_v20 }
0x11b8   :  { %4687 = vpow2.f32 %v3354_v7 }
0x11c1   :  { %v4686_v45 = vpop.eup %4685 }
0x11c2   :  { %v5210_v19 = vmul.f32 %v4686_v45, %v4684_v29  ;;  %v4688_v51 = vpop.eup %4687 }
0x11c3   :  { %v1384_v52 = vadd.f32 1.0, %v4688_v51 }
0x11c4   :  { %v1279_v47 = vsel %vm447_vm3, %v5210_v19, -inf }
0x11c5   :  { %1280 = vmax.xlane.f32.xlu0 %v1279_v47  ;;  %4689 = vrcp.f32 %v1384_v52 }
0x11cf   :  { %v4690_v53 = vpop.eup %4689 }
0x11d0   :  { %v1391_v6 = vmul.f32 %v4690_v53, %v1389_v0 }
0x1217   :  { %v1394_v56 = vpop.permute.xlu1 %1393 }
0x1218   :  { %v1396_v57 = vmul.f32 %v4690_v53, %v1394_v56 }
0x121a   :  { %1398 = vrot.lane.b32.xlu1 %v1396_v57, %s4821_s22 }
0x1252   :  { %v1281_v60 = vpop.xlane.xlu0 %1280 }
0x1253   :  { %vm1282_vm10 = vcmp.ge.f32.partialorder %v5210_v19, %v1281_v60 }
0x1254   :  { %v1283_v40 = vsel %vm1282_vm10, %v5019_v5, 128 }
0x1255   :  { %v1284_v2 = vsel %vm447_vm3, %v1283_v40, 2147483647 }
0x1256   :  { %v1286_v3 = vshra.s32 %v1284_v2, 16  ;;  %v1285_v22 = vand.u32 65535, %v1284_v2 }
0x1258   :  { %v1288_v4 = vcvt.s32.f32 %v1286_v3  ;;  %v1287_v13 = vcvt.s32.f32 %v1285_v22 }
0x125a   :  { %1289 = vmin.xlane.f32.xlu1 %v1288_v4 }
0x128c   :  { %v1399_v8 = vpop.permute.xlu1 %1398 }
0x128d   :  { %v5219_v63 = vadd.f32 %v1399_v8, %v1391_v6 }
0x128f   :  { %4691 = vtanh.f32 %v5219_v63 }
0x1299   :  { %v4692_v11 = vpop.eup %4691 }
0x129a   :  { %1404 = vrot.lane.b32.xlu0 %v4692_v11, %s4820_s19 }
0x12e7   :  { %v1290_v23 = vpop.xlane.xlu1 %1289 }
0x12e8   :  { %vm1291_vm11 = vcmp.eq.f32.partialorder %v1288_v4, %v1290_v23  ;;  %v1296_v62 = vcvt.f32.s32 %v1290_v23 }
0x12e9   :  { %v1292_v16 = vsel %vm1291_vm11, %v1287_v13, inf }
0x12ea   :  { %1293 = vmin.xlane.f32.xlu1 %v1292_v16  ;;  %v1297_v49 = vshll.u32 %v1296_v62, 16 }
0x130c   :  { %v1405_v18 = vpop.permute.xlu0 %1404 }
0x130d   :  { %v1407_v21 = vmul.f32 %v4690_v53, %v1405_v18 }
0x130f   :  { %v1410_v25 = vrot.slane %v1407_v21, 6 }
0x1311   :  { %1411 = vrot.lane.b32.xlu1 %v1410_v25, %s4820_s19 }
0x1377   :  { %v1294_v26 = vpop.xlane.xlu1 %1293 }
0x1378   :  { %v1295_v27 = vcvt.f32.s32 %v1294_v26  ;;  %v5295_v26 = vld [vmem:[%s5607_s3] ss:$0 sm:$0xff] }
0x137a   :  { %v1298_v29 = vadd.s32 %v1297_v49, %v1295_v27 }
0x137c   :  { %vm1299_vm12 = vcmp.eq.s32.totalorder %v5019_v5, %v1298_v29 }
0x137d   :  { %3931 = vmatmul.mubr.msk.f32.vlgmr.msra.gmra.mrb[10].mxu1 %vm1299_vm12, %v4822_v10 }
0x137e   :  { %4444 = vmatpush3.bf16.msra.mxu1 %v5029_v28  ;;  %4006 = vmatprep.mubr.msk.f32.mxu1 %vm4819_vm0, %v5230_v35 }
0x137f   :  { %4445 = vmatprep.subr.bf16.mxu1 %v4818_v1 }
0x1382   :  { %4447 = vmatpush3.bf16.msra.mxu1 %v5032_v30 }
0x1383   :  { %v1412_v31 = vpop.permute.xlu1 %1411  ;;  %4448 = vmatprep.subr.bf16.mxu1 %v4818_v1 }
0x1384   :  { %v1414_v34 = vsel %vm78_vm1, %v5183_v61, %v1412_v31 }
0x1385   :  { %3896 = vmatmul.mubr.msk.f32.vlgmr.msra.gmra.mrb[16].mxu0 %vm270_vm2, %v1414_v34 }
0x1386   :  { %4420 = vmatpush3.bf16.msra.mxu0 %v4976_v12  ;;  %3941 = vmatprep.mubr.msk.f32.mxu0 %vm4819_vm0, %v5230_v35 }
0x1387   :  { %4421 = vmatprep.subr.bf16.mxu0 %v4818_v1  ;;  %4450 = vmatpush3.bf16.msra.mxu1 %v5036_v32 }
0x1388   :  { %4451 = vmatprep.subr.bf16.mxu1 %v4818_v1 }
0x138a   :  { %4423 = vmatpush3.bf16.msra.mxu0 %v4979_v15 }
0x138b   :  { %4424 = vmatprep.subr.bf16.mxu0 %v4818_v1  ;;  %4453 = vmatpush3.bf16.msra.mxu1 %v5041_v37 }
0x138c   :  { %4454 = vmatprep.subr.bf16.mxu1 %v4818_v1 }
0x138f   :  { %4456 = vmatpush3.bf16.msra.mxu1 %v5045_v42 }
0x1390   :  { %4457 = vmatprep.subr.bf16.mxu1 %v4818_v1 }
0x1393   :  { %4459 = vmatpush3.bf16.msra.mxu1 %v5049_v46 }
0x1394   :  { %4460 = vmatprep.subr.bf16.mxu1 %v4818_v1 }
0x1397   :  { %4462 = vmatpush3.bf16.msra.mxu1 %v5053_v50 }
0x1398   :  { %4463 = vmatprep.subr.bf16.mxu1 %v4818_v1 }
0x139b   :  { %4465 = vmatpush3.bf16.msra.mxu1 %v5058_v59 }
0x139c   :  { %4490 = vmatprep.subr.bf16.mxu1 %v4818_v1 }
0x1450   :  { %v1554_v61 = vpop.f32.mrb[10].mxu1 }
0x1451   :  { %v3932_v36 = vpop.f32.mrb[11].mxu1 }
0x1458   :  { %v1484_v38 = vpop.f32.mrb[16].mxu0 }
0x1459   :  { %v1555_v43 = vadd.f32 %v1554_v61, %v1484_v38  ;;  %v3897_v20 = vpop.f32.mrb[17].mxu0 }
0x145b   :  { %v1558_v45 = vadd.f32 %v4968_v55, %v1555_v43 }
0x145d   :  { %4693 = vtanh.f32 %v1558_v45  ;;  %v3357_v7 = vmul.f32 -1.442695, %v1558_v45 }
0x145f   :  { %4695 = vpow2.f32 %v3357_v7 }
0x1467   :  { %v4694_v47 = vpop.eup %4693 }
0x1468   :  { %1568 = vrot.lane.b32.xlu0 %v4694_v47, %s4820_s19 }
0x1469   :  { %v4696_v51 = vpop.eup %4695 }
0x146a   :  { %v1562_v52 = vadd.f32 1.0, %v4696_v51 }
0x146c   :  { %4697 = vrcp.f32 %v1562_v52 }
0x1476   :  { %v4698_v53 = vpop.eup %4697 }
0x1477   :  { %v1566_v60 = vmul.f32 %v4698_v53, %v5177_v54 }
0x14da   :  { %v1569_v56 = vpop.permute.xlu0 %1568 }
0x14db   :  { %v1571_v57 = vmul.f32 %v4698_v53, %v1569_v56 }
0x14dd   :  { %1573 = vrot.lane.b32.xlu0 %v1571_v57, %s4821_s22 }
0x154f   :  { %v1574_v40 = vpop.permute.xlu0 %1573 }
0x1550   :  { %v5262_v2 = vadd.f32 %v1574_v40, %v1566_v60 }
0x1552   :  { %4699 = vtanh.f32 %v5262_v2 }
0x155c   :  { %v4700_v55 = vpop.eup %4699 }
0x155d   :  { %1579 = vrot.lane.b32.xlu0 %v4700_v55, %s4820_s19 }
0x1561   :  { %1700 = vrot.lane.b32.xlu0 %v1410_v25, %s4821_s22 }
0x15cf   :  { %v1580_v3 = vpop.permute.xlu0 %1579 }
0x15d0   :  { %v1582_v4 = vmul.f32 %v4698_v53, %v1580_v3 }
0x15d2   :  { %1584 = vrot.lane.b32.xlu1 %v1582_v4, %s4821_s22 }
0x15d3   :  { %v1701_v54 = vpop.permute.xlu0 %1700 }
0x1644   :  { %v5268_v0 = vpop.permute.xlu1 %1584 }
0x1645   :  { %3942 = vmatmul.mubr.msk.f32.vlgmr.msra.gmra.mrb[18].mxu0 %vm78_vm1, %v5268_v0 }
0x1646   :  { %4426 = vmatpush3.bf16.msra.mxu0 %v4883_v9  ;;  %3952 = vmatprep.mubr.msk.f32.mxu0 %vm4819_vm0, %v5230_v35 }
0x1647   :  { %4427 = vmatprep.subr.bf16.mxu0 %v4818_v1 }
0x164a   :  { %4429 = vmatpush3.bf16.msra.mxu0 %v4890_v14 }
0x164b   :  { %4430 = vmatprep.subr.bf16.mxu0 %v4818_v1 }
0x164d   :  { %3953 = vmatmul.mubr.msk.f32.vlgmr.msra.gmra.mrb[20].mxu0 %vm78_vm1, %v1701_v54 }
0x164e   :  { %4432 = vmatpush3.bf16.msra.mxu0 %v4928_v39  ;;  %3971 = vmatprep.mubr.msk.f32.mxu0 %vm4819_vm0, %v5230_v35 }
0x164f   :  { %4433 = vmatprep.subr.bf16.mxu0 %v4818_v1 }
0x1652   :  { %4435 = vmatpush3.bf16.msra.mxu0 %v4931_v41 }
0x1653   :  { %4436 = vmatprep.subr.bf16.mxu0 %v4818_v1 }
0x1656   :  { %4438 = vmatpush3.bf16.msra.mxu0 %v4935_v44 }
0x1657   :  { %4439 = vmatprep.subr.bf16.mxu0 %v4818_v1 }
0x165a   :  { %4441 = vmatpush3.bf16.msra.mxu0 %v4940_v48 }
0x165b   :  { %4466 = vmatprep.subr.bf16.mxu0 %v4818_v1 }
0x1718   :  { %v1654_v6 = vpop.f32.mrb[18].mxu0 }
0x1719   :  { %v1655_v8 = vadd.f32 %v5003_v24, %v1654_v6  ;;  %v3943_v11 = vpop.f32.mrb[19].mxu0 }
0x171b   :  { %v1658_v22 = vsel %vm447_vm3, %v1655_v8, -inf }
0x171c   :  { %v1659_v23 = vrot.slane %v1658_v22, 4 }
0x171e   :  { %v1660_v13 = vmax.f32 %v1658_v22, %v1659_v23  ;;  %v1784_v22 = vrot.slane %v5219_v63, 6 }
0x1720   :  { %v1661_v16 = vrot.slane %v1660_v13, 2  ;;  %v1770_v18 = vpop.f32.mrb[20].mxu0 }
0x1721   :  { %v1774_v21 = vadd.f32 %v4908_v17, %v1770_v18  ;;  %v3954_v25 = vpop.f32.mrb[21].mxu0 }
0x1722   :  { %v1662_v62 = vmax.f32 %v1660_v13, %v1661_v16 }
0x1723   :  { %v1775_v49 = vadd.f32 %v5295_v26, %v1774_v21 }
0x1724   :  { %v1663_v27 = vrot.slane %v1662_v62, 1 }
0x1725   :  { %4701 = vtanh.f32 %v1775_v49  ;;  %v3361_v56 = vmul.f32 -1.442695, %v1775_v49 }
0x1726   :  { %v1664_v24 = vmax.f32 %v1662_v62, %v1663_v27 }
0x1728   :  { %v1665_v29 = vsub.f32 %v1655_v8, %v1664_v24 }
0x172a   :  { %v1666_v31 = vmul.f32 1.442695, %v1665_v29 }
0x172c   :  { %4703 = vpow2.f32 %v1666_v31 }
0x172f   :  { %v4702_v34 = vpop.eup %4701 }
0x1730   :  { %1788 = vrot.lane.b32.xlu1 %v4702_v34, %s4820_s19 }
0x1736   :  { %v4704_v61 = vpop.eup %4703 }
0x1737   :  { %v1668_v36 = vsel %vm447_vm3, %v4704_v61, 0.0 }
0x1738   :  { %v1669_v38 = vrot.slane %v1668_v36, 4 }
0x173a   :  { %v1670_v43 = vadd.f32 %v1669_v38, %v1668_v36 }
0x173c   :  { %v1671_v20 = vrot.slane %v1670_v43, 2 }
0x173e   :  { %v1672_v45 = vadd.f32 %v1671_v20, %v1670_v43 }
0x1740   :  { %v1673_v47 = vrot.slane %v1672_v45, 1 }
0x1742   :  { %v1674_v7 = vadd.f32 %v1673_v47, %v1672_v45 }
0x1744   :  { %4705 = vrcp.f32 %v1674_v7  ;;  %v5346_v7 = vld [vmem:[%s5607_s3 + $0x1] ss:$0 sm:$0xff] }
0x1745   :  { %4707 = vpow2.f32 %v3361_v56 }
0x174e   :  { %v4706_v51 = vpop.eup %4705 }
0x174f   :  { %v5300_v52 = vmul.f32 %v4706_v51, %v4704_v61  ;;  %v4708_v57 = vpop.eup %4707 }
0x1750   :  { %v1779_v60 = vadd.f32 1.0, %v4708_v57 }
0x1751   :  { %v1677_v53 = vsel %vm447_vm3, %v5300_v52, -inf }
0x1752   :  { %1678 = vmax.xlane.f32.xlu0 %v1677_v53  ;;  %4709 = vrcp.f32 %v1779_v60 }
0x175c   :  { %v4710_v40 = vpop.eup %4709 }
0x175d   :  { %v1786_v23 = vmul.f32 %v4710_v40, %v1784_v22 }
0x17a2   :  { %v1789_v55 = vpop.permute.xlu1 %1788 }
0x17a3   :  { %v1791_v3 = vmul.f32 %v4710_v40, %v1789_v55 }
0x17a5   :  { %1793 = vrot.lane.b32.xlu1 %v1791_v3, %s4821_s22 }
0x17df   :  { %v1679_v4 = vpop.xlane.xlu0 %1678 }
0x17e0   :  { %vm1680_vm13 = vcmp.ge.f32.partialorder %v5300_v52, %v1679_v4 }
0x17e1   :  { %v1681_v54 = vsel %vm1680_vm13, %v5019_v5, 128  ;;  %vm3293_vm13 = vcmask 1044480  }
0x17e2   :  { %v1682_v6 = vsel %vm447_vm3, %v1681_v54, 2147483647 }
0x17e3   :  { %v1684_v8 = vshra.s32 %v1682_v6, 16  ;;  %v1683_v21 = vand.u32 65535, %v1682_v6 }
0x17e5   :  { %v1686_v11 = vcvt.s32.f32 %v1684_v8  ;;  %v1685_v62 = vcvt.s32.f32 %v1683_v21 }
0x17e7   :  { %1687 = vmin.xlane.f32.xlu1 %v1686_v11 }
0x1817   :  { %v1794_v13 = vpop.permute.xlu1 %1793 }
0x1818   :  { %v5309_v16 = vadd.f32 %v1794_v13, %v1786_v23 }
0x181a   :  { %4711 = vtanh.f32 %v5309_v16 }
0x1824   :  { %v4712_v18 = vpop.eup %4711 }
0x1825   :  { %1799 = vrot.lane.b32.xlu0 %v4712_v18, %s4820_s19  ;;  %v5382_v18 = vld [vmem:[%s5607_s3 + $0x2] ss:$0 sm:$0xff] }
0x1874   :  { %v1688_v25 = vpop.xlane.xlu1 %1687 }
0x1875   :  { %vm1689_vm14 = vcmp.eq.f32.partialorder %v1686_v11, %v1688_v25  ;;  %v1694_v63 = vcvt.f32.s32 %v1688_v25 }
0x1876   :  { %v1690_v49 = vsel %vm1689_vm14, %v1685_v62, inf  ;;  %vm3295_vm14 = vcmask 1045504  }
0x1877   :  { %1691 = vmin.xlane.f32.xlu1 %v1690_v49  ;;  %v1695_v31 = vshll.u32 %v1694_v63, 16 }
0x1897   :  { %v1800_v27 = vpop.permute.xlu0 %1799 }
0x1898   :  { %v1802_v24 = vmul.f32 %v4710_v40, %v1800_v27 }
0x189a   :  { %1805 = vrot.lane.b32.xlu1 %v1802_v24, %s4820_s19 }
0x1904   :  { %v1692_v29 = vpop.xlane.xlu1 %1691 }
0x1905   :  { %v1693_v34 = vcvt.f32.s32 %v1692_v29 }
0x1907   :  { %v1696_v61 = vadd.s32 %v1695_v31, %v1693_v34 }
0x1909   :  { %vm1697_vm15 = vcmp.eq.s32.totalorder %v5019_v5, %v1696_v61 }
0x190a   :  { %4007 = vmatmul.mubr.msk.f32.vlgmr.msra.gmra.mrb[12].mxu1 %vm1697_vm15, %v4822_v10  ;;  %vm3297_vm15 = vcmask 1046528  }
0x190b   :  { %4492 = vmatpush3.bf16.msra.mxu1 %v5029_v28  ;;  %4082 = vmatprep.mubr.msk.f32.mxu1 %vm4819_vm0, %v5230_v35 }
0x190c   :  { %v1806_v36 = vpop.permute.xlu1 %1805  ;;  %4493 = vmatprep.subr.bf16.mxu1 %v4818_v1 }
0x190d   :  { %v1808_v38 = vsel %vm78_vm1, %v5268_v0, %v1806_v36 }
0x190e   :  { %3972 = vmatmul.mubr.msk.f32.vlgmr.msra.gmra.mrb[22].mxu0 %vm270_vm2, %v1808_v38 }
0x190f   :  { %4468 = vmatpush3.bf16.msra.mxu0 %v4976_v12  ;;  %4017 = vmatprep.mubr.msk.f32.mxu0 %vm4819_vm0, %v5230_v35 }
0x1910   :  { %4469 = vmatprep.subr.bf16.mxu0 %v4818_v1  ;;  %4495 = vmatpush3.bf16.msra.mxu1 %v5032_v30 }
0x1911   :  { %4496 = vmatprep.subr.bf16.mxu1 %v4818_v1 }
0x1913   :  { %4471 = vmatpush3.bf16.msra.mxu0 %v4979_v15 }
0x1914   :  { %4472 = vmatprep.subr.bf16.mxu0 %v4818_v1  ;;  %4498 = vmatpush3.bf16.msra.mxu1 %v5036_v32 }
0x1915   :  { %4499 = vmatprep.subr.bf16.mxu1 %v4818_v1 }
0x1918   :  { %4501 = vmatpush3.bf16.msra.mxu1 %v5041_v37 }
0x1919   :  { %4502 = vmatprep.subr.bf16.mxu1 %v4818_v1 }
0x191c   :  { %4504 = vmatpush3.bf16.msra.mxu1 %v5045_v42 }
0x191d   :  { %4505 = vmatprep.subr.bf16.mxu1 %v4818_v1 }
0x1920   :  { %4507 = vmatpush3.bf16.msra.mxu1 %v5049_v46 }
0x1921   :  { %4508 = vmatprep.subr.bf16.mxu1 %v4818_v1 }
0x1924   :  { %4510 = vmatpush3.bf16.msra.mxu1 %v5053_v50 }
0x1925   :  { %4511 = vmatprep.subr.bf16.mxu1 %v4818_v1 }
0x1928   :  { %4513 = vmatpush3.bf16.msra.mxu1 %v5058_v59 }
0x1929   :  { %4538 = vmatprep.subr.bf16.mxu1 %v4818_v1 }
0x19dd   :  { %v1948_v0 = vpop.f32.mrb[12].mxu1 }
0x19de   :  { %v4008_v43 = vpop.f32.mrb[13].mxu1 }
0x19e1   :  { %v1878_v20 = vpop.f32.mrb[22].mxu0 }
0x19e2   :  { %v1949_v45 = vadd.f32 %v1948_v0, %v1878_v20  ;;  %v3973_v47 = vpop.f32.mrb[23].mxu0 }
0x19e4   :  { %v1952_v51 = vadd.f32 %v5346_v7, %v1949_v45 }
0x19e6   :  { %4713 = vtanh.f32 %v1952_v51  ;;  %v3364_v56 = vmul.f32 -1.442695, %v1952_v51 }
0x19e8   :  { %4715 = vpow2.f32 %v3364_v56 }
0x19f0   :  { %v4714_v53 = vpop.eup %4713 }
0x19f1   :  { %1962 = vrot.lane.b32.xlu0 %v4714_v53, %s4820_s19 }
0x19f2   :  { %v4716_v57 = vpop.eup %4715 }
0x19f3   :  { %v1956_v60 = vadd.f32 1.0, %v4716_v57 }
0x19f5   :  { %4717 = vrcp.f32 %v1956_v60 }
0x19ff   :  { %v4718_v40 = vpop.eup %4717 }
0x1a00   :  { %v1960_v4 = vmul.f32 %v4718_v40, %v5262_v2 }
0x1a63   :  { %v1963_v55 = vpop.permute.xlu0 %1962 }
0x1a64   :  { %v1965_v3 = vmul.f32 %v4718_v40, %v1963_v55 }
0x1a66   :  { %1967 = vrot.lane.b32.xlu0 %v1965_v3, %s4821_s22 }
0x1ad8   :  { %v1968_v54 = vpop.permute.xlu0 %1967 }
0x1ad9   :  { %v5352_v6 = vadd.f32 %v1968_v54, %v1960_v4 }
0x1adb   :  { %4719 = vtanh.f32 %v5352_v6 }
0x1ae5   :  { %v4720_v8 = vpop.eup %4719 }
0x1ae6   :  { %1973 = vrot.lane.b32.xlu0 %v4720_v8, %s4820_s19 }
0x1aea   :  { %2094 = vrot.lane.b32.xlu0 %v1802_v24, %s4821_s22 }
0x1b58   :  { %v1974_v11 = vpop.permute.xlu0 %1973 }
0x1b59   :  { %v1976_v22 = vmul.f32 %v4718_v40, %v1974_v11 }
0x1b5b   :  { %1978 = vrot.lane.b32.xlu1 %v1976_v22, %s4821_s22 }
0x1b5c   :  { %v2095_v2 = vpop.permute.xlu0 %2094 }
0x1bcd   :  { %v5358_v23 = vpop.permute.xlu1 %1978 }
0x1bce   :  { %4018 = vmatmul.mubr.msk.f32.vlgmr.msra.gmra.mrb[24].mxu0 %vm78_vm1, %v5358_v23 }
0x1bcf   :  { %4474 = vmatpush3.bf16.msra.mxu0 %v4883_v9  ;;  %4028 = vmatprep.mubr.msk.f32.mxu0 %vm4819_vm0, %v5230_v35 }
0x1bd0   :  { %4475 = vmatprep.subr.bf16.mxu0 %v4818_v1 }
0x1bd3   :  { %4477 = vmatpush3.bf16.msra.mxu0 %v4890_v14 }
0x1bd4   :  { %4478 = vmatprep.subr.bf16.mxu0 %v4818_v1 }
0x1bd6   :  { %4029 = vmatmul.mubr.msk.f32.vlgmr.msra.gmra.mrb[26].mxu0 %vm78_vm1, %v2095_v2 }
0x1bd7   :  { %4480 = vmatpush3.bf16.msra.mxu0 %v4928_v39  ;;  %4047 = vmatprep.mubr.msk.f32.mxu0 %vm4819_vm0, %v5230_v35 }
0x1bd8   :  { %4481 = vmatprep.subr.bf16.mxu0 %v4818_v1 }
0x1bdb   :  { %4483 = vmatpush3.bf16.msra.mxu0 %v4931_v41 }
0x1bdc   :  { %4484 = vmatprep.subr.bf16.mxu0 %v4818_v1 }
0x1bdf   :  { %4486 = vmatpush3.bf16.msra.mxu0 %v4935_v44 }
0x1be0   :  { %4487 = vmatprep.subr.bf16.mxu0 %v4818_v1 }
0x1be3   :  { %4489 = vmatpush3.bf16.msra.mxu0 %v4940_v48 }
0x1be4   :  { %4514 = vmatprep.subr.bf16.mxu0 %v4818_v1 }
0x1ca1   :  { %v2048_v13 = vpop.f32.mrb[24].mxu0 }
0x1ca2   :  { %v2049_v21 = vadd.f32 %v5382_v18, %v2048_v13  ;;  %v4019_v25 = vpop.f32.mrb[25].mxu0 }
0x1ca4   :  { %v2052_v62 = vsel %vm447_vm3, %v2049_v21, -inf }
0x1ca5   :  { %v2053_v49 = vrot.slane %v2052_v62, 4 }
0x1ca7   :  { %v2054_v27 = vmax.f32 %v2052_v62, %v2053_v49 }
0x1ca9   :  { %v2055_v24 = vrot.slane %v2054_v27, 2  ;;  %v2164_v63 = vpop.f32.mrb[26].mxu0 }
0x1caa   :  { %v2169_v29 = vrot.slane %v2164_v63, 6  ;;  %v4030_v31 = vpop.f32.mrb[27].mxu0  ;;  %v2181_v63 = vrot.slane %v5309_v16, 6 }
0x1cab   :  { %v2056_v34 = vmax.f32 %v2054_v27, %v2055_v24 }
0x1cac   :  { %v2171_v61 = vadd.f32 %v4908_v17, %v2169_v29 }
0x1cad   :  { %v2057_v36 = vrot.slane %v2056_v34, 1 }
0x1cae   :  { %v2172_v38 = vadd.f32 %v5295_v26, %v2171_v61 }
0x1caf   :  { %v2058_v0 = vmax.f32 %v2056_v34, %v2057_v36 }
0x1cb0   :  { %4721 = vtanh.f32 %v2172_v38  ;;  %v3368_v8 = vmul.f32 -1.442695, %v2172_v38 }
0x1cb1   :  { %v2059_v43 = vsub.f32 %v2049_v21, %v2058_v0 }
0x1cb3   :  { %v2060_v20 = vmul.f32 1.442695, %v2059_v43 }
0x1cb5   :  { %4723 = vpow2.f32 %v2060_v20 }
0x1cba   :  { %v4722_v45 = vpop.eup %4721 }
0x1cbb   :  { %2185 = vrot.lane.b32.xlu1 %v4722_v45, %s4820_s19 }
0x1cbf   :  { %v4724_v47 = vpop.eup %4723 }
0x1cc0   :  { %v2062_v51 = vsel %vm447_vm3, %v4724_v47, 0.0 }
0x1cc1   :  { %v2063_v53 = vrot.slane %v2062_v51, 4 }
0x1cc3   :  { %v2064_v56 = vadd.f32 %v2063_v53, %v2062_v51 }
0x1cc5   :  { %v2065_v57 = vrot.slane %v2064_v56, 2 }
0x1cc7   :  { %v2066_v60 = vadd.f32 %v2065_v57, %v2064_v56 }
0x1cc9   :  { %v2067_v40 = vrot.slane %v2066_v60, 1 }
0x1ccb   :  { %v2068_v55 = vadd.f32 %v2067_v40, %v2066_v60 }
0x1ccd   :  { %4725 = vrcp.f32 %v2068_v55 }
0x1cce   :  { %4727 = vpow2.f32 %v3368_v8 }
0x1cd7   :  { %v4726_v3 = vpop.eup %4725 }
0x1cd8   :  { %v5390_v4 = vmul.f32 %v4726_v3, %v4724_v47  ;;  %v4728_v11 = vpop.eup %4727 }
0x1cd9   :  { %v2176_v22 = vadd.f32 1.0, %v4728_v11 }
0x1cda   :  { %v2071_v54 = vsel %vm447_vm3, %v5390_v4, -inf }
0x1cdb   :  { %2072 = vmax.xlane.f32.xlu0 %v2071_v54  ;;  %4729 = vrcp.f32 %v2176_v22 }
0x1ce5   :  { %v4730_v2 = vpop.eup %4729 }
0x1ce6   :  { %v2183_v29 = vmul.f32 %v4730_v2, %v2181_v63 }
0x1d2d   :  { %v2186_v13 = vpop.permute.xlu1 %2185 }
0x1d2e   :  { %v2188_v21 = vmul.f32 %v4730_v2, %v2186_v13 }
0x1d30   :  { %2190 = vrot.lane.b32.xlu1 %v2188_v21, %s4821_s22 }
0x1d68   :  { %v2073_v25 = vpop.xlane.xlu0 %2072 }
0x1d69   :  { %vm2074_vm4 = vcmp.ge.f32.partialorder %v5390_v4, %v2073_v25 }
0x1d6a   :  { %v2075_v62 = vsel %vm2074_vm4, %v5019_v5, 128 }
0x1d6b   :  { %v2076_v49 = vsel %vm447_vm3, %v2075_v62, 2147483647 }
0x1d6c   :  { %v2078_v27 = vshra.s32 %v2076_v49, 16  ;;  %v2077_v36 = vand.u32 65535, %v2076_v49 }
0x1d6e   :  { %v2080_v24 = vcvt.s32.f32 %v2078_v27  ;;  %v2079_v0 = vcvt.s32.f32 %v2077_v36 }
0x1d70   :  { %2081 = vmin.xlane.f32.xlu1 %v2080_v24 }
0x1da2   :  { %v2191_v31 = vpop.permute.xlu1 %2190 }
0x1da3   :  { %v5399_v34 = vadd.f32 %v2191_v31, %v2183_v29 }
0x1da5   :  { %4731 = vtanh.f32 %v5399_v34 }
0x1daf   :  { %v4732_v61 = vpop.eup %4731 }
0x1db0   :  { %2196 = vrot.lane.b32.xlu0 %v4732_v61, %s4820_s19 }
0x1dfd   :  { %v2082_v38 = vpop.xlane.xlu1 %2081 }
0x1dfe   :  { %vm2083_vm5 = vcmp.eq.f32.partialorder %v2080_v24, %v2082_v38  ;;  %v2088_v16 = vcvt.f32.s32 %v2082_v38 }
0x1dff   :  { %v2084_v43 = vsel %vm2083_vm5, %v2079_v0, inf }
0x1e00   :  { %2085 = vmin.xlane.f32.xlu1 %v2084_v43  ;;  %v2089_v53 = vshll.u32 %v2088_v16, 16 }
0x1e22   :  { %v2197_v20 = vpop.permute.xlu0 %2196 }
0x1e23   :  { %v2199_v45 = vmul.f32 %v4730_v2, %v2197_v20 }
0x1e25   :  { %v2202_v47 = vrot.slane %v2199_v45, 2 }
0x1e27   :  { %2203 = vrot.lane.b32.xlu1 %v2202_v47, %s4820_s19 }
0x1e8d   :  { %v2086_v51 = vpop.xlane.xlu1 %2085 }
0x1e8e   :  { %v2087_v56 = vcvt.f32.s32 %v2086_v51 }
0x1e90   :  { %v2090_v57 = vadd.s32 %v2089_v53, %v2087_v56 }
0x1e92   :  { %vm2091_vm6 = vcmp.eq.s32.totalorder %v5019_v5, %v2090_v57 }
0x1e93   :  { %4083 = vmatmul.mubr.msk.f32.vlgmr.msra.gmra.mrb[14].mxu1 %vm2091_vm6, %v4822_v10 }
0x1e94   :  { %4540 = vmatpush3.bf16.msra.mxu1 %v5029_v28  ;;  %4158 = vmatprep.mubr.msk.f32.mxu1 %vm4819_vm0, %v5230_v35 }
0x1e95   :  { %4541 = vmatprep.subr.bf16.mxu1 %v4818_v1 }
0x1e98   :  { %4543 = vmatpush3.bf16.msra.mxu1 %v5032_v30 }
0x1e99   :  { %v2204_v60 = vpop.permute.xlu1 %2203  ;;  %4544 = vmatprep.subr.bf16.mxu1 %v4818_v1 }
0x1e9a   :  { %v2206_v40 = vsel %vm78_vm1, %v5358_v23, %v2204_v60 }
0x1e9b   :  { %4048 = vmatmul.mubr.msk.f32.vlgmr.msra.gmra.mrb[28].mxu0 %vm270_vm2, %v2206_v40 }
0x1e9c   :  { %4516 = vmatpush3.bf16.msra.mxu0 %v4976_v12  ;;  %4093 = vmatprep.mubr.msk.f32.mxu0 %vm4819_vm0, %v5230_v35 }
0x1e9d   :  { %4517 = vmatprep.subr.bf16.mxu0 %v4818_v1  ;;  %4546 = vmatpush3.bf16.msra.mxu1 %v5036_v32 }
0x1e9e   :  { %4547 = vmatprep.subr.bf16.mxu1 %v4818_v1 }
0x1ea0   :  { %4519 = vmatpush3.bf16.msra.mxu0 %v4979_v15 }
0x1ea1   :  { %4520 = vmatprep.subr.bf16.mxu0 %v4818_v1  ;;  %4549 = vmatpush3.bf16.msra.mxu1 %v5041_v37 }
0x1ea2   :  { %4550 = vmatprep.subr.bf16.mxu1 %v4818_v1 }
0x1ea5   :  { %4552 = vmatpush3.bf16.msra.mxu1 %v5045_v42 }
0x1ea6   :  { %4553 = vmatprep.subr.bf16.mxu1 %v4818_v1 }
0x1ea9   :  { %4555 = vmatpush3.bf16.msra.mxu1 %v5049_v46 }
0x1eaa   :  { %4556 = vmatprep.subr.bf16.mxu1 %v4818_v1 }
0x1ead   :  { %4558 = vmatpush3.bf16.msra.mxu1 %v5053_v50 }
0x1eae   :  { %4559 = vmatprep.subr.bf16.mxu1 %v4818_v1 }
0x1eb1   :  { %4561 = vmatpush3.bf16.msra.mxu1 %v5058_v59 }
0x1eb2   :  { %4586 = vmatprep.subr.bf16.mxu1 %v4818_v1 }
0x1f66   :  { %v2346_v23 = vpop.f32.mrb[14].mxu1 }
0x1f67   :  { %v4084_v55 = vpop.f32.mrb[15].mxu1 }
0x1f6e   :  { %v2276_v3 = vpop.f32.mrb[28].mxu0 }
0x1f6f   :  { %v2347_v54 = vadd.f32 %v2346_v23, %v2276_v3  ;;  %v4049_v8 = vpop.f32.mrb[29].mxu0 }
0x1f71   :  { %v2350_v11 = vadd.f32 %v5346_v7, %v2347_v54 }
0x1f73   :  { %4733 = vtanh.f32 %v2350_v11  ;;  %v3371_v2 = vmul.f32 -1.442695, %v2350_v11 }
0x1f75   :  { %4735 = vpow2.f32 %v3371_v2 }
0x1f7d   :  { %v4734_v22 = vpop.eup %4733 }
0x1f7e   :  { %2360 = vrot.lane.b32.xlu0 %v4734_v22, %s4820_s19 }
0x1f7f   :  { %v4736_v13 = vpop.eup %4735 }
0x1f80   :  { %v2354_v21 = vadd.f32 1.0, %v4736_v13 }
0x1f82   :  { %4737 = vrcp.f32 %v2354_v21 }
0x1f8c   :  { %v4738_v25 = vpop.eup %4737 }
0x1f8d   :  { %v2358_v27 = vmul.f32 %v4738_v25, %v5352_v6 }
0x1ff0   :  { %v2361_v62 = vpop.permute.xlu0 %2360 }
0x1ff1   :  { %v2363_v49 = vmul.f32 %v4738_v25, %v2361_v62 }
0x1ff3   :  { %2365 = vrot.lane.b32.xlu0 %v2363_v49, %s4821_s22 }
0x2065   :  { %v2366_v24 = vpop.permute.xlu0 %2365 }
0x2066   :  { %v5437_v63 = vadd.f32 %v2366_v24, %v2358_v27 }
0x2068   :  { %4739 = vtanh.f32 %v5437_v63 }
0x2072   :  { %v4740_v29 = vpop.eup %4739 }
0x2073   :  { %2371 = vrot.lane.b32.xlu0 %v4740_v29, %s4820_s19 }
0x2077   :  { %2492 = vrot.lane.b32.xlu0 %v2202_v47, %s4821_s22 }
0x20e5   :  { %v2372_v31 = vpop.permute.xlu0 %2371 }
0x20e6   :  { %v2374_v61 = vmul.f32 %v4738_v25, %v2372_v31 }
0x20e8   :  { %2376 = vrot.lane.b32.xlu1 %v2374_v61, %s4821_s22 }
0x20e9   :  { %v2493_v6 = vpop.permute.xlu0 %2492 }
0x215a   :  { %v5443_v36 = vpop.permute.xlu1 %2376 }
0x215b   :  { %4094 = vmatmul.mubr.msk.f32.vlgmr.msra.gmra.mrb[30].mxu0 %vm78_vm1, %v5443_v36 }
0x215c   :  { %4522 = vmatpush3.bf16.msra.mxu0 %v4883_v9  ;;  %4104 = vmatprep.mubr.msk.f32.mxu0 %vm4819_vm0, %v5230_v35 }
0x215d   :  { %4523 = vmatprep.subr.bf16.mxu0 %v4818_v1 }
0x2160   :  { %4525 = vmatpush3.bf16.msra.mxu0 %v4890_v14 }
0x2161   :  { %4526 = vmatprep.subr.bf16.mxu0 %v4818_v1 }
0x2163   :  { %4105 = vmatmul.mubr.msk.f32.vlgmr.msra.gmra.mrb[32].mxu0 %vm78_vm1, %v2493_v6 }
0x2164   :  { %4528 = vmatpush3.bf16.msra.mxu0 %v4928_v39  ;;  %4123 = vmatprep.mubr.msk.f32.mxu0 %vm4819_vm0, %v5230_v35 }
0x2165   :  { %4529 = vmatprep.subr.bf16.mxu0 %v4818_v1 }
0x2168   :  { %4531 = vmatpush3.bf16.msra.mxu0 %v4931_v41 }
0x2169   :  { %4532 = vmatprep.subr.bf16.mxu0 %v4818_v1 }
0x216c   :  { %4534 = vmatpush3.bf16.msra.mxu0 %v4935_v44 }
0x216d   :  { %4535 = vmatprep.subr.bf16.mxu0 %v4818_v1 }
0x2170   :  { %4537 = vmatpush3.bf16.msra.mxu0 %v4940_v48 }
0x2171   :  { %4562 = vmatprep.subr.bf16.mxu0 %v4818_v1 }
0x222e   :  { %v2446_v38 = vpop.f32.mrb[30].mxu0 }
0x222f   :  { %v2447_v0 = vadd.f32 %v5382_v18, %v2446_v38  ;;  %v4095_v43 = vpop.f32.mrb[31].mxu0 }
0x2231   :  { %v2450_v20 = vsel %vm447_vm3, %v2447_v0, -inf }
0x2232   :  { %v2451_v45 = vrot.slane %v2450_v20, 4 }
0x2234   :  { %v2452_v47 = vmax.f32 %v2450_v20, %v2451_v45 }
0x2236   :  { %v2453_v16 = vrot.slane %v2452_v47, 2  ;;  %v2562_v51 = vpop.f32.mrb[32].mxu0 }
0x2237   :  { %v2567_v53 = vrot.slane %v2562_v51, 4  ;;  %v4106_v56 = vpop.f32.mrb[33].mxu0 }
0x2238   :  { %v2454_v57 = vmax.f32 %v2452_v47, %v2453_v16 }
0x2239   :  { %v2569_v60 = vadd.f32 %v4908_v17, %v2567_v53  ;;  %v2579_v53 = vrot.slane %v5399_v34, 6 }
0x223a   :  { %v2455_v40 = vrot.slane %v2454_v57, 1 }
0x223b   :  { %v2570_v23 = vadd.f32 %v5295_v26, %v2569_v60 }
0x223c   :  { %v2456_v55 = vmax.f32 %v2454_v57, %v2455_v40 }
0x223d   :  { %4741 = vtanh.f32 %v2570_v23  ;;  %v3375_v31 = vmul.f32 -1.442695, %v2570_v23 }
0x223e   :  { %v2457_v3 = vsub.f32 %v2447_v0, %v2456_v55 }
0x2240   :  { %v2458_v54 = vmul.f32 1.442695, %v2457_v3 }
0x2242   :  { %4743 = vpow2.f32 %v2458_v54 }
0x2247   :  { %v4742_v8 = vpop.eup %4741 }
0x2248   :  { %2583 = vrot.lane.b32.xlu1 %v4742_v8, %s4820_s19 }
0x224c   :  { %v4744_v11 = vpop.eup %4743 }
0x224d   :  { %v2460_v22 = vsel %vm447_vm3, %v4744_v11, 0.0 }
0x224e   :  { %v2461_v2 = vrot.slane %v2460_v22, 4 }
0x2250   :  { %v2462_v13 = vadd.f32 %v2461_v2, %v2460_v22 }
0x2252   :  { %v2463_v21 = vrot.slane %v2462_v13, 2 }
0x2254   :  { %v2464_v25 = vadd.f32 %v2463_v21, %v2462_v13 }
0x2256   :  { %v2465_v62 = vrot.slane %v2464_v25, 1 }
0x2258   :  { %v2466_v49 = vadd.f32 %v2465_v62, %v2464_v25 }
0x225a   :  { %4745 = vrcp.f32 %v2466_v49 }
0x225b   :  { %4747 = vpow2.f32 %v3375_v31 }
0x2264   :  { %v4746_v27 = vpop.eup %4745 }
0x2265   :  { %v5470_v24 = vmul.f32 %v4746_v27, %v4744_v11  ;;  %v4748_v61 = vpop.eup %4747 }
0x2266   :  { %v2574_v6 = vadd.f32 1.0, %v4748_v61 }
0x2267   :  { %v2469_v29 = vsel %vm447_vm3, %v5470_v24, -inf }
0x2268   :  { %2470 = vmax.xlane.f32.xlu0 %v2469_v29  ;;  %4749 = vrcp.f32 %v2574_v6 }
0x2272   :  { %v4750_v38 = vpop.eup %4749 }
0x2273   :  { %v2581_v56 = vmul.f32 %v4750_v38, %v2579_v53 }
0x22ba   :  { %v2584_v0 = vpop.permute.xlu1 %2583 }
0x22bb   :  { %v2586_v43 = vmul.f32 %v4750_v38, %v2584_v0 }
0x22bd   :  { %2588 = vrot.lane.b32.xlu1 %v2586_v43, %s4821_s22 }
0x22f5   :  { %v2471_v20 = vpop.xlane.xlu0 %2470 }
0x22f6   :  { %vm2472_vm7 = vcmp.ge.f32.partialorder %v5470_v24, %v2471_v20 }
0x22f7   :  { %v2473_v45 = vsel %vm2472_vm7, %v5019_v5, 128 }
0x22f8   :  { %v2474_v47 = vsel %vm447_vm3, %v2473_v45, 2147483647 }
0x22f9   :  { %v2476_v16 = vshra.s32 %v2474_v47, 16  ;;  %v2475_v23 = vand.u32 65535, %v2474_v47 }
0x22fb   :  { %v2478_v51 = vcvt.s32.f32 %v2476_v16  ;;  %v2477_v3 = vcvt.s32.f32 %v2475_v23 }
0x22fd   :  { %2479 = vmin.xlane.f32.xlu1 %v2478_v51 }
0x232f   :  { %v2589_v57 = vpop.permute.xlu1 %2588 }
0x2330   :  { %v5479_v60 = vadd.f32 %v2589_v57, %v2581_v56 }
0x2332   :  { %4751 = vtanh.f32 %v5479_v60 }
0x233c   :  { %v4752_v40 = vpop.eup %4751 }
0x233d   :  { %2594 = vrot.lane.b32.xlu0 %v4752_v40, %s4820_s19 }
0x238a   :  { %v2480_v55 = vpop.xlane.xlu1 %2479 }
0x238b   :  { %vm2481_vm8 = vcmp.eq.f32.partialorder %v2478_v51, %v2480_v55  ;;  %v2486_v34 = vcvt.f32.s32 %v2480_v55 }
0x238c   :  { %v2482_v54 = vsel %vm2481_vm8, %v2477_v3, inf }
0x238d   :  { %2483 = vmin.xlane.f32.xlu1 %v2482_v54  ;;  %v2487_v13 = vshll.u32 %v2486_v34, 16 }
0x23af   :  { %v2595_v8 = vpop.permute.xlu0 %2594 }
0x23b0   :  { %v2597_v11 = vmul.f32 %v4750_v38, %v2595_v8 }
0x23b2   :  { %v2600_v22 = vrot.slane %v2597_v11, 4 }
0x23b4   :  { %2601 = vrot.lane.b32.xlu1 %v2600_v22, %s4820_s19 }
0x241a   :  { %v2484_v2 = vpop.xlane.xlu1 %2483 }
0x241b   :  { %v2485_v21 = vcvt.f32.s32 %v2484_v2 }
0x241d   :  { %v2488_v25 = vadd.s32 %v2487_v13, %v2485_v21 }
0x241f   :  { %vm2489_vm9 = vcmp.eq.s32.totalorder %v5019_v5, %v2488_v25 }
0x2420   :  { %4159 = vmatmul.mubr.msk.f32.vlgmr.msra.gmra.mrb[16].mxu1 %vm2489_vm9, %v4822_v10 }
0x2421   :  { %4588 = vmatpush3.bf16.msra.mxu1 %v5029_v28  ;;  %4234 = vmatprep.mubr.msk.f32.mxu1 %vm4819_vm0, %v5230_v35 }
0x2422   :  { %4589 = vmatprep.subr.bf16.mxu1 %v4818_v1 }
0x2425   :  { %4591 = vmatpush3.bf16.msra.mxu1 %v5032_v30 }
0x2426   :  { %v2602_v62 = vpop.permute.xlu1 %2601  ;;  %4592 = vmatprep.subr.bf16.mxu1 %v4818_v1 }
0x2427   :  { %v2604_v49 = vsel %vm78_vm1, %v5443_v36, %v2602_v62 }
0x2428   :  { %4124 = vmatmul.mubr.msk.f32.vlgmr.msra.gmra.mrb[34].mxu0 %vm270_vm2, %v2604_v49 }
0x2429   :  { %4564 = vmatpush3.bf16.msra.mxu0 %v4976_v12  ;;  %4169 = vmatprep.mubr.msk.f32.mxu0 %vm4819_vm0, %v5230_v35 }
0x242a   :  { %4565 = vmatprep.subr.bf16.mxu0 %v4818_v1  ;;  %4594 = vmatpush3.bf16.msra.mxu1 %v5036_v32 }
0x242b   :  { %4595 = vmatprep.subr.bf16.mxu1 %v4818_v1 }
0x242d   :  { %4567 = vmatpush3.bf16.msra.mxu0 %v4979_v15 }
0x242e   :  { %4568 = vmatprep.subr.bf16.mxu0 %v4818_v1  ;;  %4597 = vmatpush3.bf16.msra.mxu1 %v5041_v37 }
0x242f   :  { %4598 = vmatprep.subr.bf16.mxu1 %v4818_v1 }
0x2432   :  { %4600 = vmatpush3.bf16.msra.mxu1 %v5045_v42 }
0x2433   :  { %4601 = vmatprep.subr.bf16.mxu1 %v4818_v1 }
0x2436   :  { %4603 = vmatpush3.bf16.msra.mxu1 %v5049_v46 }
0x2437   :  { %4604 = vmatprep.subr.bf16.mxu1 %v4818_v1 }
0x243a   :  { %4606 = vmatpush3.bf16.msra.mxu1 %v5053_v50 }
0x243b   :  { %4607 = vmatprep.subr.bf16.mxu1 %v4818_v1 }
0x243e   :  { %4609 = vmatpush3.bf16.msra.mxu1 %v5058_v59 }
0x24f3   :  { %v2744_v28 = vpop.f32.mrb[16].mxu1 }
0x24f4   :  { %v4160_v30 = vpop.f32.mrb[17].mxu1 }
0x24fb   :  { %v2674_v32 = vpop.f32.mrb[34].mxu0 }
0x24fc   :  { %v2745_v37 = vadd.f32 %v2744_v28, %v2674_v32  ;;  %v4125_v36 = vpop.f32.mrb[35].mxu0 }
0x24fe   :  { %v2748_v27 = vadd.f32 %v5346_v7, %v2745_v37 }
0x2500   :  { %4753 = vtanh.f32 %v2748_v27  ;;  %v3378_v46 = vmul.f32 -1.442695, %v2748_v27 }
0x2502   :  { %4755 = vpow2.f32 %v3378_v46 }
0x250a   :  { %v4754_v42 = vpop.eup %4753 }
0x250b   :  { %2758 = vrot.lane.b32.xlu0 %v4754_v42, %s4820_s19 }
0x250c   :  { %v4756_v29 = vpop.eup %4755 }
0x250d   :  { %v2752_v31 = vadd.f32 1.0, %v4756_v29 }
0x250f   :  { %4757 = vrcp.f32 %v2752_v31 }
0x2519   :  { %v4758_v50 = vpop.eup %4757 }
0x251a   :  { %v2756_v59 = vmul.f32 %v4758_v50, %v5437_v63 }
0x257d   :  { %v2759_v61 = vpop.permute.xlu0 %2758 }
0x257e   :  { %v2761_v6 = vmul.f32 %v4758_v50, %v2759_v61  ;;  %v2977_v61 = vrot.slane %v5479_v60, 6 }
0x2580   :  { %2763 = vrot.lane.b32.xlu0 %v2761_v6, %s4821_s22 }
0x25f2   :  { %v2764_v38 = vpop.permute.xlu0 %2763 }
0x25f3   :  { %v5516_v0 = vadd.f32 %v2764_v38, %v2756_v59 }
0x25f5   :  { %4759 = vtanh.f32 %v5516_v0 }
0x25ff   :  { %v4760_v43 = vpop.eup %4759 }
0x2600   :  { %2769 = vrot.lane.b32.xlu0 %v4760_v43, %s4820_s19 }
0x2604   :  { %2890 = vrot.lane.b32.xlu0 %v2600_v22, %s4821_s22 }
0x2672   :  { %v2770_v20 = vpop.permute.xlu0 %2769 }
0x2673   :  { %v2772_v45 = vmul.f32 %v4758_v50, %v2770_v20 }
0x2675   :  { %2774 = vrot.lane.b32.xlu1 %v2772_v45, %s4821_s22 }
0x2676   :  { %v2891_v63 = vpop.permute.xlu0 %2890 }
0x26e7   :  { %v5522_v47 = vpop.permute.xlu1 %2774 }
0x26e8   :  { %4170 = vmatmul.mubr.msk.f32.vlgmr.msra.gmra.mrb[36].mxu0 %vm78_vm1, %v5522_v47 }
0x26e9   :  { %4570 = vmatpush3.bf16.msra.mxu0 %v4883_v9  ;;  %4180 = vmatprep.mubr.msk.f32.mxu0 %vm4819_vm0, %v5230_v35 }
0x26ea   :  { %4571 = vmatprep.subr.bf16.mxu0 %v4818_v1 }
0x26ed   :  { %4573 = vmatpush3.bf16.msra.mxu0 %v4890_v14 }
0x26ee   :  { %4574 = vmatprep.subr.bf16.mxu0 %v4818_v1 }
0x26f0   :  { %4181 = vmatmul.mubr.msk.f32.vlgmr.msra.gmra.mrb[38].mxu0 %vm78_vm1, %v2891_v63 }
0x26f1   :  { %4576 = vmatpush3.bf16.msra.mxu0 %v4928_v39  ;;  %4199 = vmatprep.mubr.msk.f32.mxu0 %vm4819_vm0, %v5230_v35 }
0x26f2   :  { %4577 = vmatprep.subr.bf16.mxu0 %v4818_v1 }
0x26f5   :  { %4579 = vmatpush3.bf16.msra.mxu0 %v4931_v41 }
0x26f6   :  { %4580 = vmatprep.subr.bf16.mxu0 %v4818_v1 }
0x26f9   :  { %4582 = vmatpush3.bf16.msra.mxu0 %v4935_v44 }
0x26fa   :  { %4583 = vmatprep.subr.bf16.mxu0 %v4818_v1 }
0x26fd   :  { %4585 = vmatpush3.bf16.msra.mxu0 %v4940_v48 }
0x26fe   :  { %4610 = vmatprep.subr.bf16.mxu0 %v4818_v1 }
0x27bb   :  { %v2844_v9 = vpop.f32.mrb[36].mxu0 }
0x27bc   :  { %v2845_v14 = vadd.f32 %v5382_v18, %v2844_v9  ;;  %v4171_v39 = vpop.f32.mrb[37].mxu0 }
0x27be   :  { %v2848_v35 = vsel %vm447_vm3, %v2845_v14, -inf }
0x27bf   :  { %v2849_v16 = vrot.slane %v2848_v35, 4 }
0x27c1   :  { %v2850_v51 = vmax.f32 %v2848_v35, %v2849_v16 }
0x27c3   :  { %v2851_v53 = vrot.slane %v2850_v51, 2  ;;  %v2960_v41 = vpop.f32.mrb[38].mxu0 }
0x27c4   :  { %v2965_v56 = vrot.slane %v2960_v41, 2  ;;  %v4182_v57 = vpop.f32.mrb[39].mxu0 }
0x27c5   :  { %v2852_v40 = vmax.f32 %v2850_v51, %v2851_v53 }
0x27c6   :  { %v2967_v44 = vadd.f32 %v4908_v17, %v2965_v56 }
0x27c7   :  { %v2853_v23 = vrot.slane %v2852_v40, 1 }
0x27c8   :  { %v2968_v48 = vadd.f32 %v5295_v26, %v2967_v44 }
0x27c9   :  { %v2854_v55 = vmax.f32 %v2852_v40, %v2853_v23  ;;  %v4789_v40 = vld [vmem:[%s5608_s4 + $0x8] sm:$0xff] }
0x27ca   :  { %4761 = vtanh.f32 %v2968_v48  ;;  %v3382_v28 = vmul.f32 -1.442695, %v2968_v48 }
0x27cb   :  { %v2855_v3 = vsub.f32 %v2845_v14, %v2854_v55 }
0x27cd   :  { %v2856_v54 = vmul.f32 1.442695, %v2855_v3 }
0x27cf   :  { %4763 = vpow2.f32 %v2856_v54 }
0x27d4   :  { %v4762_v8 = vpop.eup %4761 }
0x27d5   :  { %2981 = vrot.lane.b32.xlu1 %v4762_v8, %s4820_s19 }
0x27d9   :  { %v4764_v11 = vpop.eup %4763 }
0x27da   :  { %v2858_v22 = vsel %vm447_vm3, %v4764_v11, 0.0 }
0x27db   :  { %v2859_v34 = vrot.slane %v2858_v22, 4 }
0x27dd   :  { %v2860_v2 = vadd.f32 %v2859_v34, %v2858_v22 }
0x27df   :  { %v2861_v13 = vrot.slane %v2860_v2, 2 }
0x27e1   :  { %v2862_v21 = vadd.f32 %v2861_v13, %v2860_v2 }
0x27e3   :  { %v2863_v25 = vrot.slane %v2862_v21, 1 }
0x27e5   :  { %v2864_v17 = vadd.f32 %v2863_v25, %v2862_v21 }
0x27e7   :  { %4765 = vrcp.f32 %v2864_v17 }
0x27e8   :  { %4767 = vpow2.f32 %v3382_v28 }
0x27f1   :  { %v4766_v62 = vpop.eup %4765 }
0x27f2   :  { %v5549_v26 = vmul.f32 %v4766_v62, %v4764_v11  ;;  %v4768_v30 = vpop.eup %4767 }
0x27f3   :  { %v2972_v32 = vadd.f32 1.0, %v4768_v30 }
0x27f4   :  { %v2867_v49 = vsel %vm447_vm3, %v5549_v26, -inf }
0x27f5   :  { %2868 = vmax.xlane.f32.xlu0 %v2867_v49  ;;  %4769 = vrcp.f32 %v2972_v32 }
0x27ff   :  { %v4770_v37 = vpop.eup %4769 }
0x2800   :  { %v2979_v6 = vmul.f32 %v4770_v37, %v2977_v61 }
0x2847   :  { %v2982_v36 = vpop.permute.xlu1 %2981 }
0x2848   :  { %v2984_v27 = vmul.f32 %v4770_v37, %v2982_v36 }
0x284a   :  { %2986 = vrot.lane.b32.xlu1 %v2984_v27, %s4821_s22 }
0x2882   :  { %v2869_v42 = vpop.xlane.xlu0 %2868 }
0x2883   :  { %vm2870_vm10 = vcmp.ge.f32.partialorder %v5549_v26, %v2869_v42 }
0x2884   :  { %v2871_v46 = vsel %vm2870_vm10, %v5019_v5, 128 }
0x2885   :  { %v2872_v29 = vsel %vm447_vm3, %v2871_v46, 2147483647 }
0x2886   :  { %v2874_v31 = vshra.s32 %v2872_v29, 16  ;;  %v2873_v20 = vand.u32 65535, %v2872_v29 }
0x2888   :  { %v2876_v50 = vcvt.s32.f32 %v2874_v31  ;;  %v2875_v63 = vcvt.s32.f32 %v2873_v20  ;;  %v3269_v20 = vrot.slane %v5210_v19, 6 }
0x288a   :  { %2877 = vmin.xlane.f32.xlu1 %v2876_v50 }
0x28bc   :  { %v2987_v59 = vpop.permute.xlu1 %2986 }
0x28bd   :  { %v2989_v38 = vadd.f32 %v2987_v59, %v2979_v6 }
0x28bf   :  { %4771 = vtanh.f32 %v2989_v38  ;;  %v3266_v38 = vrot.slane %v5130_v33, 7 }
0x28c9   :  { %v4772_v43 = vpop.eup %4771 }
0x28ca   :  { %2992 = vrot.lane.b32.xlu0 %v4772_v43, %s4820_s19  ;;  %v3301_v43 = vrot.slane %v5011_v58, 1 }
0x2917   :  { %v2878_v45 = vpop.xlane.xlu1 %2877 }
0x2918   :  { %vm2879_vm11 = vcmp.eq.f32.partialorder %v2876_v50, %v2878_v45  ;;  %v2884_v16 = vcvt.f32.s32 %v2878_v45  ;;  %v3303_v45 = vrot.slane %v5210_v19, 7  ;;  %v3309_v19 = vrot.slane %v5470_v24, 4 }
0x2919   :  { %v2880_v9 = vsel %vm2879_vm11, %v2875_v63, inf }
0x291a   :  { %2881 = vmin.xlane.f32.xlu1 %v2880_v9  ;;  %v2885_v51 = vshll.u32 %v2884_v16, 16  ;;  %v3272_v9 = vrot.slane %v5300_v52, 5  ;;  %v3307_v16 = vrot.slane %v5390_v4, 5 }
0x293c   :  { %v2993_v14 = vpop.permute.xlu0 %2992 }
0x293d   :  { %v2995_v39 = vmul.f32 %v4770_v37, %v2993_v14  ;;  %v3305_v14 = vrot.slane %v5300_v52, 6  ;;  %v3281_v52 = vrot.slane %v5549_v26, 2 }
0x293f   :  { %v2998_v35 = vrot.slane %v2995_v39, 6 }
0x2941   :  { %2999 = vrot.lane.b32.xlu1 %v2998_v35, %s4820_s19  ;;  %v3275_v35 = vrot.slane %v5390_v4, 4 }
0x29a7   :  { %v2882_v60 = vpop.xlane.xlu1 %2881 }
0x29a8   :  { %v2883_v53 = vcvt.f32.s32 %v2882_v60 }
0x29aa   :  { %v2886_v41 = vadd.s32 %v2885_v51, %v2883_v53  ;;  %v3278_v51 = vrot.slane %v5470_v24, 3 }
0x29ac   :  { %vm2887_vm12 = vcmp.eq.s32.totalorder %v5019_v5, %v2886_v41 }
0x29ad   :  { %4235 = vmatmul.mubr.msk.f32.vlgmr.msra.gmra.mrb[18].mxu1 %vm2887_vm12, %v4822_v10 }
0x29b3   :  { %v3000_v56 = vpop.permute.xlu1 %2999 }
0x29b4   :  { %v3002_v57 = vsel %vm78_vm1, %v5522_v47, %v3000_v56 }
0x29b5   :  { %4200 = vmatmul.mubr.msk.f32.vlgmr.msra.gmra.mrb[40].mxu0 %vm270_vm2, %v3002_v57  ;;  %vm3291_vm2 = vcmask 1043456  }
0x29b6   :  { %4612 = vmatpush3.bf16.msra.mxu0 %v4976_v12  ;;  %4245 = vmatprep.mubr.msk.f32.mxu0 %vm4819_vm0, %v4789_v40  ;;  %vm3286_vm0 = vcmask 1040384  }
0x29b7   :  { %4613 = vmatprep.subr.bf16.mxu0 %v4818_v1  ;;  %v3315_v63 = vsel %vm3286_vm0, %v3301_v43, %v5130_v33  ;;  %v3287_v39 = vsel %vm3286_vm0, %v5011_v58, %v3266_v38  ;;  %v3311_v58 = vrot.slane %v5549_v26, 3 }
0x29b8   :  { %v3288_v60 = vsel %vm447_vm3, %v3287_v39, %v3269_v20  ;;  %v3316_v33 = vsel %vm447_vm3, %v3315_v63, %v3303_v45 }
0x29ba   :  { %4615 = vmatpush3.bf16.msra.mxu0 %v4979_v15 }
0x2a80   :  { %v3142_v5 = vpop.f32.mrb[18].mxu1 }
0x2a81   :  { %v4236_v10 = vpop.f32.mrb[19].mxu1 }
0x2a88   :  { %v3072_v44 = vpop.f32.mrb[40].mxu0 }
0x2a89   :  { %v3143_v23 = vadd.f32 %v3142_v5, %v3072_v44  ;;  %v4201_v48 = vpop.f32.mrb[41].mxu0 }
0x2a8b   :  { %v3146_v47 = vadd.f32 %v5346_v7, %v3143_v23 }
0x2a8d   :  { %4773 = vtanh.f32 %v3146_v47  ;;  %v3385_v12 = vmul.f32 -1.442695, %v3146_v47 }
0x2a8f   :  { %4775 = vpow2.f32 %v3385_v12 }
0x2a97   :  { %v4774_v55 = vpop.eup %4773 }
0x2a98   :  { %3156 = vrot.lane.b32.xlu0 %v4774_v55, %s4820_s19 }
0x2a99   :  { %v4776_v3 = vpop.eup %4775 }
0x2a9a   :  { %v3150_v54 = vadd.f32 1.0, %v4776_v3 }
0x2a9c   :  { %4777 = vrcp.f32 %v3150_v54 }
0x2aa6   :  { %v4778_v8 = vpop.eup %4777 }
0x2aa7   :  { %v3154_v15 = vmul.f32 %v4778_v8, %v5516_v0 }
0x2b0a   :  { %v3157_v1 = vpop.permute.xlu0 %3156 }
0x2b0b   :  { %v3159_v11 = vmul.f32 %v4778_v8, %v3157_v1 }
0x2b0d   :  { %3161 = vrot.lane.b32.xlu0 %v3159_v11, %s4821_s22 }
0x2b7f   :  { %v3162_v22 = vpop.permute.xlu0 %3161 }
0x2b80   :  { %v3164_v34 = vadd.f32 %v3162_v22, %v3154_v15 }
0x2b82   :  { %4779 = vtanh.f32 %v3164_v34 }
0x2b8c   :  { %v4780_v7 = vpop.eup %4779 }
0x2b8d   :  { %3167 = vrot.lane.b32.xlu0 %v4780_v7, %s4820_s19 }
0x2bff   :  { %v3168_v2 = vpop.permute.xlu0 %3167 }
0x2c00   :  { %v3170_v13 = vmul.f32 %v4778_v8, %v3168_v2 }
0x2c02   :  { %3172 = vrot.lane.b32.xlu1 %v3170_v13, %s4821_s22 }
0x2c74   :  { %v3173_v21 = vpop.permute.xlu1 %3172 }
0x2c75   :  { %4246 = vmatmul.mubr.msk.f32.vlgmr.msra.gmra.mrb[42].mxu0 %vm78_vm1, %v3173_v21  ;;  %vm3289_vm1 = vcmask 1042432  }
0x2c76   :  { %v3290_v41 = vsel %vm3289_vm1, %v3288_v60, %v3272_v9  ;;  %v3317_v56 = vsel %vm3289_vm1, %v3316_v33, %v3305_v14 }
0x2c77   :  { %v3292_v4 = vsel %vm3291_vm2, %v3290_v41, %v3275_v35  ;;  %v3318_v40 = vsel %vm3291_vm2, %v3317_v56, %v3307_v16 }
0x2c78   :  { %v3294_v5 = vsel %vm3293_vm13, %v3292_v4, %v3278_v51  ;;  %v3319_v10 = vsel %vm3293_vm13, %v3318_v40, %v3309_v19 }
0x2c79   :  { %v3296_v24 = vsel %vm3295_vm14, %v3294_v5, %v3281_v52  ;;  %v3320_v48 = vsel %vm3295_vm14, %v3319_v10, %v3311_v58 }
0x2d48   :  { %v3242_v25 = vpop.f32.mrb[42].mxu0 }
0x2d49   :  { %v3243_v17 = vadd.f32 %v5382_v18, %v3242_v25  ;;  %v4247_v62 = vpop.f32.mrb[43].mxu0 }
0x2d4b   :  { %v3246_v49 = vsel %vm447_vm3, %v3243_v17, -inf }
0x2d4c   :  { %v3247_v0 = vrot.slane %v3246_v49, 4 }
0x2d4e   :  { %v3248_v28 = vmax.f32 %v3246_v49, %v3247_v0 }
0x2d50   :  { %v3249_v30 = vrot.slane %v3248_v28, 2 }
0x2d52   :  { %v3250_v32 = vmax.f32 %v3248_v28, %v3249_v30 }
0x2d54   :  { %v3251_v37 = vrot.slane %v3250_v32, 1 }
0x2d56   :  { %v3252_v36 = vmax.f32 %v3250_v32, %v3251_v37 }
0x2d58   :  { %v3253_v27 = vsub.f32 %v3243_v17, %v3252_v36 }
0x2d5a   :  { %v3254_v42 = vmul.f32 1.442695, %v3253_v27 }
0x2d5c   :  { %4781 = vpow2.f32 %v3254_v42 }
0x2d66   :  { %v4782_v46 = vpop.eup %4781 }
0x2d67   :  { %v3256_v29 = vsel %vm447_vm3, %v4782_v46, 0.0 }
0x2d68   :  { %v3257_v31 = vrot.slane %v3256_v29, 4 }
0x2d6a   :  { %v3258_v50 = vadd.f32 %v3257_v31, %v3256_v29 }
0x2d6c   :  { %v3259_v61 = vrot.slane %v3258_v50, 2 }
0x2d6e   :  { %v3260_v6 = vadd.f32 %v3259_v61, %v3258_v50 }
0x2d70   :  { %v3261_v18 = vrot.slane %v3260_v6, 1 }
0x2d72   :  { %v3262_v59 = vadd.f32 %v3261_v18, %v3260_v6 }
0x2d74   :  { %4783 = vrcp.f32 %v3262_v59 }
0x2d7e   :  { %v4784_v53 = vpop.eup %4783 }
0x2d7f   :  { %v3264_v57 = vmul.f32 %v4784_v53, %v4782_v46 }
0x2d81   :  { %v3284_v44 = vrot.slane %v3264_v57, 1  ;;  %v3313_v23 = vrot.slane %v3264_v57, 2 }
0x2d83   :  { %v3298_v47 = vsel %vm3297_vm15, %v3296_v24, %v3284_v44  ;;  %v3321_v55 = vsel %vm3297_vm15, %v3320_v48, %v3313_v23 }
0x2d84   :  { %3299 = vst [vmem:[%s5608_s4] sm:$0xff] %v3298_v47  ;;  %3322 = vst [vmem:[%s5608_s4 + $0x16] sm:$0xff] %v3321_v55 }
0x2d85   :  { %3327 = vsyncpa [#allocation3], 1 }

</bundles_post_ra>
